<compile_context>
chip_gen: v7x
topology: tpu7x:2x2x1
jax: 0.10.0
libtpu: 0.0.40
codegen_flags: <defaults>
</compile_context>

<pallas_src>
import jax
import jax.numpy as jnp
import numpy as np
from jax.experimental import pallas as pl
from jax.experimental.pallas import tpu as pltpu

LANE = 128
SUBLANE = 8
PREC = jax.lax.Precision.HIGHEST   # keep f32 matmuls true-f32 on the MXU


def _round_up(x, m):
    return (x + m - 1) // m * m


def _pad2(a, rows, cols):
    r, c = a.shape
    return jnp.pad(a, ((0, rows - r), (0, cols - c)))


# ------------------------------------------------------------------ kernel ---
def _fused_kernel(xt_ref, yt_ref, xg_ref, yg_ref, eps_ref,
                  wsm_ref, wmv_ref, wz_ref, b_ref,
                  out_t_ref, out_g_ref, kl_ref):
    """Single invocation; both branches (0=tree, 1=graph) statically unrolled.

    xt/yt/xg/yg_ref : [B*Lp_branch, H]  flattened activations (seq padded to 8k)
    eps_ref         : [2, B, HZ]        reparameterization noise (zero-padded)
    wsm_ref         : [4H, HU]          per branch: U weight rows, W x-weight rows
    wmv_ref         : [2*HU, 2*HZ]      per branch: fused [T/G_mean | T/G_var]
    wz_ref          : [2*HZ, HU]        per branch: W z-weight
    b_ref           : [2, 4, BW]        per branch rows: U bias(+cond),
                                        mean|var bias (fused), W bias(+cond), 0
    out_t/out_g_ref : [B*Lp_branch, HU] ReLU(W_*([x, z, cond])), lane-padded
    kl_ref          : [1, HZ]           per-lane KL partial sums (wrapper reduces)
    """
    H = wsm_ref.shape[0] // 4
    HU = wz_ref.shape[1]
    HZ = wz_ref.shape[0] // 2
    B = eps_ref.shape[1]

    def branch(idx, xv_ref, yv_ref, out_ref):
        Lp = xv_ref.shape[0] // B
        base = 2 * H * idx
        # static, aligned views into the packed parameter slabs (free)
        uw = wsm_ref[base:base + H, :]                     # [H, HU]
        wwx = wsm_ref[base + H:base + 2 * H, :]            # [H, HU]
        wmv = wmv_ref[HU * idx:HU * (idx + 1), :]          # [HU, 2*HZ]
        wwz = wz_ref[HZ * idx:HZ * (idx + 1), :]           # [HZ, HU]
        bias = b_ref[idx]                                  # [4, BW]
        u_b = bias[0:1, :HU]
        mv_b = bias[1:2, :2 * HZ]
        w_b = bias[2:3, :HU]
        eps = eps_ref[idx]                                 # [B, HZ]

        xf = xv_ref[...]                                   # [B*Lp, H]
        yf = yv_ref[...]
        d = yf - xf
        # diff = y.sum(seq) - x.sum(seq) via static sublane-aligned slices
        # (Lp % 8 == 0) -- no in-kernel reshape anywhere.
        diff = jnp.concatenate(
            [jnp.sum(d[b * Lp:(b + 1) * Lp, :], axis=0, keepdims=True)
             for b in range(B)], axis=0)                   # [B, H]

        # U_* : ReLU(Linear([diff, cond]))   (cond path folded into u_b)
        u = jnp.maximum(
            jnp.dot(diff, uw, precision=PREC,
                    preferred_element_type=jnp.float32) + u_b, 0.0)      # [B, HU]

        # rsample: fused mean|var matmul -- one N = 2*HZ pass through the MXU
        mv = jnp.dot(u, wmv, precision=PREC,
                     preferred_element_type=jnp.float32) + mv_b          # [B, 2*HZ]
        z_mean = mv[:, :HZ]
        z_log_var = -jnp.abs(mv[:, HZ:])
        s = jnp.exp(0.5 * z_log_var)          # exp(z_log_var) == s * s

        # KL: padded lanes give 1 + 0 - 0 - 1 == 0 exactly; reduce over batch
        # only and emit a lane-dense row; the wrapper sums the lanes.
        term = 1.0 + z_log_var - z_mean * z_mean - s * s
        kl_row = (-0.5 / B) * jnp.sum(term, axis=0, keepdims=True)       # [1, HZ]

        z = z_mean + s * eps                                             # [B, HZ]
        # per-batch [z, cond] contribution (cond path folded into w_b)
        zc = jnp.dot(z, wwz, precision=PREC,
                     preferred_element_type=jnp.float32) + w_b           # [B, HU]

        # W_* : ReLU(Linear([x_vecs, z, cond])) -- one flat MXU matmul over all
        # B*Lp rows; per-batch dense, aligned broadcast-add stores.
        prod = jnp.dot(xf, wwx, precision=PREC,
                       preferred_element_type=jnp.float32)               # [B*Lp, HU]
        for b in range(B):
            out_ref[b * Lp:(b + 1) * Lp, :] = jnp.maximum(
                prod[b * Lp:(b + 1) * Lp, :] + zc[b:b + 1, :], 0.0)
        return kl_row

    kl_t = branch(0, xt_ref, yt_ref, out_t_ref)
    kl_g = branch(1, xg_ref, yg_ref, out_g_ref)
    kl_ref[...] = kl_t + kl_g


# ---------------------------------------------------------- param packing ----
def pack_weights(params, hidden, latent):
    """Pack per-branch weights into lane-dense, sublane-aligned slabs (once)."""
    HU = _round_up(hidden, LANE)
    HZ = _round_up(latent, LANE)

    def small(p):      # U weight rows then W x-weight rows -> [2H, HU]
        return jnp.concatenate([_pad2(p["uw_h"], hidden, HU),
                                _pad2(p["ww_h"], hidden, HU)], axis=0)

    def meanvar(p):    # fused [mean | var] -> [HU, 2*HZ]
        return jnp.concatenate([_pad2(p["tmw"], HU, HZ),
                                _pad2(p["tvw"], HU, HZ)], axis=1)

    def zslab(p):      # W z-weight -> [HZ, HU]
        return _pad2(p["ww_z"], HZ, HU)

    t, g = params["tree"], params["graph"]
    return {"w_small": jnp.concatenate([small(t), small(g)], axis=0),    # [4H, HU]
            "w_mv": jnp.concatenate([meanvar(t), meanvar(g)], axis=0),   # [2HU, 2HZ]
            "w_z": jnp.concatenate([zslab(t), zslab(g)], axis=0)}        # [2HZ, HU]


def pack_bias(params, cond, hidden, latent):
    """Fold the degenerate condition-path contractions into the bias rows.
    Done once per cond (outside the per-call wrapper)."""
    HU = _round_up(hidden, LANE)
    HZ = _round_up(latent, LANE)
    BW = max(HU, 2 * HZ)
    cond2d = cond.reshape(1, -1).astype(jnp.float32)

    def rows(p):
        u_b = jnp.dot(cond2d, p["uw_c"], precision=PREC) + p["ub"]       # [1, hidden]
        w_b = jnp.dot(cond2d, p["ww_c"], precision=PREC) + p["wb"]       # [1, hidden]
        mv_b = jnp.concatenate([_pad2(p["tmb"], 1, HZ),
                                _pad2(p["tvb"], 1, HZ)], axis=1)         # [1, 2HZ]
        return jnp.concatenate([_pad2(u_b, 1, BW), _pad2(mv_b, 1, BW),
                                _pad2(w_b, 1, BW),
                                jnp.zeros((1, BW), jnp.float32)], axis=0)  # [4, BW]

    return jnp.stack([rows(params["tree"]), rows(params["graph"])])      # [2, 4, BW]


# ----------------------------------------------------------------- wrapper ---
@jax.jit
def hier_cond_vgnn_core(packed, bias, x_root_vecs,
                        x_tree_vecs, x_graph_vecs,
                        y_tree_vecs, y_graph_vecs,
                        eps_tree, eps_graph, beta):
    B, L_tree, H = x_tree_vecs.shape
    L_graph = x_graph_vecs.shape[1]
    latent = eps_tree.shape[1]
    HU = packed["w_z"].shape[1]
    HZ = packed["w_z"].shape[0] // 2
    Lpt = _round_up(L_tree, SUBLANE)      # per-branch padding (tree)
    Lpg = _round_up(L_graph, SUBLANE)     # per-branch padding (graph)

    def flat(v, Lp):
        v = jnp.pad(v.astype(jnp.float32), ((0, 0), (0, Lp - v.shape[1]), (0, 0)))
        return v.reshape(B * Lp, H)

    def pad_eps(e):
        return jnp.pad(e.astype(jnp.float32), ((0, 0), (0, HZ - latent)))

    xt, yt = flat(x_tree_vecs, Lpt), flat(y_tree_vecs, Lpt)
    xg, yg = flat(x_graph_vecs, Lpg), flat(y_graph_vecs, Lpg)
    eps = jnp.stack([pad_eps(eps_tree), pad_eps(eps_graph)])
    # TODO(synk): have the HierMPNEncoder emit already padded/flattened x/y vecs
    # and padded eps so these per-call pad/reshape/stack XLA ops disappear.

    vmem = pl.BlockSpec(memory_space=pltpu.MemorySpace.VMEM)
    out_t, out_g, kl_row = pl.pallas_call(
        _fused_kernel,
        in_specs=[vmem] * 9,
        out_specs=(vmem, vmem, vmem),
        out_shape=(
            jax.ShapeDtypeStruct((B * Lpt, HU), jnp.float32),
            jax.ShapeDtypeStruct((B * Lpg, HU), jnp.float32),
            jax.ShapeDtypeStruct((1, HZ), jnp.float32),
        ),
    )(xt, yt, xg, yg, eps,
      packed["w_small"], packed["w_mv"], packed["w_z"], bias)
    # TODO(synk): on v7x, split the two branches across the 2 TensorCores with a
    # branch grid axis marked pltpu.CORE_PARALLEL; at production sizes add a row
    # grid over B*Lp (weight index_maps constant along it so slabs stay
    # VMEM-resident), feed the MXU bf16, and size activation tiles per
    # generation (halve tiles on v7x's 64 MiB VMEM, set vmem_limit_bytes).

    # padded lanes are exactly zero; padded seq rows are garbage -> slice them off
    out_tree = out_t.reshape(B, Lpt, HU)[:, :L_tree, :H]
    out_graph = out_g.reshape(B, Lpg, HU)[:, :L_graph, :H]
    kl_div = jnp.sum(kl_row)

    # TODO(synk): HierMPNDecoder((x_root_vecs, out_tree, out_graph), ...) -- the
    # autoregressive graph decoder (and graph-MPN encoder) have no Pallas
    # equivalent; final loss = decoder_loss + beta * kl_div.
    return x_root_vecs, out_tree, out_graph, kl_div, beta * kl_div


# --------------------------------------------------------- pure-JAX reference
def _ref_branch(xv, yv, cond, eps, p):
    B, L, _ = xv.shape
    condB = jnp.broadcast_to(cond.reshape(1, -1), (B, cond.shape[-1]))
    Uw = jnp.concatenate([p["uw_h"], p["uw_c"]], axis=0)
    diff = jnp.concatenate([yv.sum(1) - xv.sum(1), condB], -1)
    u = jnp.maximum(jnp.dot(diff, Uw, precision=PREC) + p["ub"], 0.0)
    zm = jnp.dot(u, p["tmw"], precision=PREC) + p["tmb"]
    zlv = -jnp.abs(jnp.dot(u, p["tvw"], precision=PREC) + p["tvb"])
    kl = -0.5 * jnp.sum(1.0 + zlv - zm * zm - jnp.exp(zlv)) / B
    z = zm + jnp.exp(zlv / 2.0) * eps
    zc = jnp.concatenate([z, condB], -1)
    zcL = jnp.broadcast_to(zc[:, None, :], (B, L, zc.shape[-1]))
    Ww = jnp.concatenate([p["ww_h"], p["ww_z"], p["ww_c"]], axis=0)
    cat = jnp.concatenate([xv, zcL], -1)
    out = jnp.maximum(jnp.einsum("blf,fh->blh", cat, Ww, precision=PREC)
                      + p["wb"], 0.0)
    return out, kl


# -------------------------------------------------------------- param setup --
def _linear(key, fan_in, fan_out):
    kw, kb = jax.random.split(key)
    bound = 1.0 / np.sqrt(fan_in)
    w = jax.random.uniform(kw, (fan_in, fan_out), jnp.float32, -bound, bound)
    b = jax.random.uniform(kb, (1, fan_out), jnp.float32, -bound, bound)
    return w, b


def make_params(key, hidden, latent, cond_size):
    keys = jax.random.split(key, 8)

    def branch_params(ku, km, kv, kw):
        uw, ub = _linear(ku, hidden + cond_size, hidden)             # U_*
        tmw, tmb = _linear(km, hidden, latent)                       # T/G_mean
        tvw, tvb = _linear(kv, hidden, latent)                       # T/G_var
        ww, wb = _linear(kw, hidden + latent + cond_size, hidden)    # W_*
        return {
            "uw_h": uw[:hidden], "uw_c": uw[hidden:], "ub": ub,
            "tmw": tmw, "tmb": tmb, "tvw": tvw, "tvb": tvb,
            "ww_h": ww[:hidden], "ww_z": ww[hidden:hidden + latent],
            "ww_c": ww[hidden + latent:], "wb": wb,
        }

    return {"tree": branch_params(*keys[0:4]),
            "graph": branch_params(*keys[4:8])}


# -------------------------------------------------------------------- main ---
if __name__ == "__main__":
    B, L_TREE, L_GRAPH = 2, 8, 12
    HIDDEN, LATENT, COND = 32, 16, 8
    BETA = 0.3

    key = jax.random.PRNGKey(0)
    (k_par, k_xr, k_xt, k_xg, k_yt, k_yg,
     k_c, k_et, k_eg) = jax.random.split(key, 9)

    params = make_params(k_par, HIDDEN, LATENT, COND)
    cond = jax.random.normal(k_c, (COND,), jnp.float32)
    packed = pack_weights(params, HIDDEN, LATENT)
    bias = pack_bias(params, cond, HIDDEN, LATENT)   # hoisted: once per cond

    x_root = jax.random.normal(k_xr, (B, HIDDEN), jnp.float32)
    x_tree = jax.random.normal(k_xt, (B, L_TREE, HIDDEN), jnp.float32)
    x_graph = jax.random.normal(k_xg, (B, L_GRAPH, HIDDEN), jnp.float32)
    y_tree = jax.random.normal(k_yt, (B, L_TREE, HIDDEN), jnp.float32)
    y_graph = jax.random.normal(k_yg, (B, L_GRAPH, HIDDEN), jnp.float32)
    eps_tree = jax.random.normal(k_et, (B, LATENT), jnp.float32)
    eps_graph = jax.random.normal(k_eg, (B, LATENT), jnp.float32)

    root_out, tree_out, graph_out, kl_div, beta_kl = jax.block_until_ready(
        hier_cond_vgnn_core(packed, bias, x_root, x_tree, x_graph,
                            y_tree, y_graph, eps_tree, eps_graph, BETA))

    # correctness check against a pure-JAX reference of the same math
    ref_tree, ref_kl_t = _ref_branch(x_tree, y_tree, cond, eps_tree, params["tree"])
    ref_graph, ref_kl_g = _ref_branch(x_graph, y_graph, cond, eps_graph, params["graph"])
    np.testing.assert_allclose(np.asarray(tree_out), np.asarray(ref_tree),
                               rtol=2e-4, atol=2e-4)
    np.testing.assert_allclose(np.asarray(graph_out), np.asarray(ref_graph),
                               rtol=2e-4, atol=2e-4)
    np.testing.assert_allclose(np.asarray(kl_div),
                               np.asarray(ref_kl_t + ref_kl_g),
                               rtol=2e-4, atol=2e-4)

    print("KERNEL_OK")
</pallas_src>

<mosaic_0001>
module attributes {stable_mosaic.version = 11 : i64} {
  func.func @_fused_kernel(%arg0: memref<16x32xf32, #tpu.memory_space<vmem>>, %arg1: memref<16x32xf32, #tpu.memory_space<vmem>>, %arg2: memref<32x32xf32, #tpu.memory_space<vmem>>, %arg3: memref<32x32xf32, #tpu.memory_space<vmem>>, %arg4: memref<2x2x128xf32, #tpu.memory_space<vmem>>, %arg5: memref<128x128xf32, #tpu.memory_space<vmem>>, %arg6: memref<256x256xf32, #tpu.memory_space<vmem>>, %arg7: memref<256x128xf32, #tpu.memory_space<vmem>>, %arg8: memref<2x4x256xf32, #tpu.memory_space<vmem>>, %arg9: memref<16x128xf32, #tpu.memory_space<vmem>>, %arg10: memref<32x128xf32, #tpu.memory_space<vmem>>, %arg11: memref<1x128xf32, #tpu.memory_space<vmem>>) attributes {dimension_semantics = [], scalar_prefetch = 0 : i64, scratch_operands = 0 : i64, tpu.core_type = #tpu.core_type<tc>} {
    %c0 = arith.constant 0 : index
    %c0_0 = arith.constant 0 : index
    %0 = vector.load %arg5[%c0, %c0_0] : memref<128x128xf32, #tpu.memory_space<vmem>>, vector<32x128xf32>
    %c32 = arith.constant 32 : index
    %c0_1 = arith.constant 0 : index
    %1 = vector.load %arg5[%c32, %c0_1] : memref<128x128xf32, #tpu.memory_space<vmem>>, vector<32x128xf32>
    %c0_2 = arith.constant 0 : index
    %c0_3 = arith.constant 0 : index
    %2 = vector.load %arg6[%c0_2, %c0_3] : memref<256x256xf32, #tpu.memory_space<vmem>>, vector<128x256xf32>
    %c0_4 = arith.constant 0 : index
    %c0_5 = arith.constant 0 : index
    %3 = vector.load %arg7[%c0_4, %c0_5] : memref<256x128xf32, #tpu.memory_space<vmem>>, vector<128x128xf32>
    %c0_6 = arith.constant 0 : index
    %c0_7 = arith.constant 0 : index
    %c0_8 = arith.constant 0 : index
    %4 = vector.load %arg8[%c0_6, %c0_7, %c0_8] : memref<2x4x256xf32, #tpu.memory_space<vmem>>, vector<1x4x256xf32>
    %5 = vector.shape_cast %4 : vector<1x4x256xf32> to vector<4x256xf32>
    %6 = vector.extract_strided_slice %5 {offsets = [0, 0], sizes = [1, 128], strides = [1, 1]} : vector<4x256xf32> to vector<1x128xf32>
    %7 = vector.extract_strided_slice %5 {offsets = [1, 0], sizes = [1, 256], strides = [1, 1]} : vector<4x256xf32> to vector<1x256xf32>
    %8 = vector.extract_strided_slice %5 {offsets = [2, 0], sizes = [1, 128], strides = [1, 1]} : vector<4x256xf32> to vector<1x128xf32>
    %c0_9 = arith.constant 0 : index
    %c0_10 = arith.constant 0 : index
    %c0_11 = arith.constant 0 : index
    %9 = vector.load %arg4[%c0_9, %c0_10, %c0_11] : memref<2x2x128xf32, #tpu.memory_space<vmem>>, vector<1x2x128xf32>
    %10 = vector.shape_cast %9 : vector<1x2x128xf32> to vector<2x128xf32>
    %c0_12 = arith.constant 0 : index
    %c0_13 = arith.constant 0 : index
    %11 = vector.load %arg0[%c0_12, %c0_13] : memref<16x32xf32, #tpu.memory_space<vmem>>, vector<16x32xf32>
    %c0_14 = arith.constant 0 : index
    %c0_15 = arith.constant 0 : index
    %12 = vector.load %arg1[%c0_14, %c0_15] : memref<16x32xf32, #tpu.memory_space<vmem>>, vector<16x32xf32>
    %13 = arith.subf %12, %11 : vector<16x32xf32>
    %14 = vector.extract_strided_slice %13 {offsets = [0, 0], sizes = [8, 32], strides = [1, 1]} : vector<16x32xf32> to vector<8x32xf32>
    %cst = arith.constant dense<0.000000e+00> : vector<32xf32>
    %15 = vector.multi_reduction <add>, %14, %cst [0] : vector<8x32xf32> to vector<32xf32>
    %16 = vector.shape_cast %15 : vector<32xf32> to vector<1x32xf32>
    %17 = vector.extract_strided_slice %13 {offsets = [8, 0], sizes = [8, 32], strides = [1, 1]} : vector<16x32xf32> to vector<8x32xf32>
    %cst_16 = arith.constant dense<0.000000e+00> : vector<32xf32>
    %18 = vector.multi_reduction <add>, %17, %cst_16 [0] : vector<8x32xf32> to vector<32xf32>
    %19 = vector.shape_cast %18 : vector<32xf32> to vector<1x32xf32>
    %20 = tpu.concatenate %16, %19 in 0 : vector<1x32xf32>, vector<1x32xf32> -> vector<2x32xf32>
    %cst_17 = arith.constant dense<0.000000e+00> : vector<2x128xf32>
    %21 = tpu.matmul %20, %0, %cst_17 {dimension_numbers = #tpu.dot_dimension_numbers<[1], [0], [0], [1], [0, 0, 1, 1], [], []>, precision = #tpu.contract_precision<fp32>} : vector<2x32xf32>, vector<32x128xf32>, vector<2x128xf32> -> vector<2x128xf32>
    %22 = vector.broadcast %6 : vector<1x128xf32> to vector<2x128xf32>
    %23 = arith.addf %21, %22 : vector<2x128xf32>
    %cst_18 = arith.constant 0.000000e+00 : f32
    %24 = vector.broadcast %cst_18 : f32 to vector<2x128xf32>
    %25 = arith.maximumf %23, %24 : vector<2x128xf32>
    %cst_19 = arith.constant dense<0.000000e+00> : vector<2x256xf32>
    %26 = tpu.matmul %25, %2, %cst_19 {dimension_numbers = #tpu.dot_dimension_numbers<[1], [0], [0], [1], [0, 0, 1, 1], [], []>, precision = #tpu.contract_precision<fp32>} : vector<2x128xf32>, vector<128x256xf32>, vector<2x256xf32> -> vector<2x256xf32>
    %27 = vector.broadcast %7 : vector<1x256xf32> to vector<2x256xf32>
    %28 = arith.addf %26, %27 : vector<2x256xf32>
    %29 = vector.extract_strided_slice %28 {offsets = [0, 0], sizes = [2, 128], strides = [1, 1]} : vector<2x256xf32> to vector<2x128xf32>
    %30 = vector.extract_strided_slice %28 {offsets = [0, 128], sizes = [2, 128], strides = [1, 1]} : vector<2x256xf32> to vector<2x128xf32>
    %31 = math.absf %30 : vector<2x128xf32>
    %cst_20 = arith.constant 0.000000e+00 : f32
    %32 = vector.broadcast %cst_20 : f32 to vector<2x128xf32>
    %33 = arith.subf %32, %31 : vector<2x128xf32>
    %cst_21 = arith.constant 5.000000e-01 : f32
    %34 = vector.broadcast %cst_21 : f32 to vector<2x128xf32>
    %35 = arith.mulf %34, %33 : vector<2x128xf32>
    %36 = math.exp %35 : vector<2x128xf32>
    %cst_22 = arith.constant 1.000000e+00 : f32
    %37 = vector.broadcast %cst_22 : f32 to vector<2x128xf32>
    %38 = arith.addf %37, %33 : vector<2x128xf32>
    %39 = arith.mulf %29, %29 : vector<2x128xf32>
    %40 = arith.subf %38, %39 : vector<2x128xf32>
    %41 = arith.mulf %36, %36 : vector<2x128xf32>
    %42 = arith.subf %40, %41 : vector<2x128xf32>
    %cst_23 = arith.constant dense<0.000000e+00> : vector<128xf32>
    %43 = vector.multi_reduction <add>, %42, %cst_23 [0] : vector<2x128xf32> to vector<128xf32>
    %44 = vector.shape_cast %43 : vector<128xf32> to vector<1x128xf32>
    %cst_24 = arith.constant -2.500000e-01 : f32
    %45 = vector.broadcast %cst_24 : f32 to vector<1x128xf32>
    %46 = arith.mulf %45, %44 : vector<1x128xf32>
    %47 = arith.mulf %36, %10 : vector<2x128xf32>
    %48 = arith.addf %29, %47 : vector<2x128xf32>
    %cst_25 = arith.constant dense<0.000000e+00> : vector<2x128xf32>
    %49 = tpu.matmul %48, %3, %cst_25 {dimension_numbers = #tpu.dot_dimension_numbers<[1], [0], [0], [1], [0, 0, 1, 1], [], []>, precision = #tpu.contract_precision<fp32>} : vector<2x128xf32>, vector<128x128xf32>, vector<2x128xf32> -> vector<2x128xf32>
    %50 = vector.broadcast %8 : vector<1x128xf32> to vector<2x128xf32>
    %51 = arith.addf %49, %50 : vector<2x128xf32>
    %cst_26 = arith.constant dense<0.000000e+00> : vector<16x128xf32>
    %52 = tpu.matmul %11, %1, %cst_26 {dimension_numbers = #tpu.dot_dimension_numbers<[1], [0], [0], [1], [0, 0, 1, 1], [], []>, precision = #tpu.contract_precision<fp32>} : vector<16x32xf32>, vector<32x128xf32>, vector<16x128xf32> -> vector<16x128xf32>
    %53 = vector.extract_strided_slice %52 {offsets = [0, 0], sizes = [8, 128], strides = [1, 1]} : vector<16x128xf32> to vector<8x128xf32>
    %54 = vector.extract_strided_slice %51 {offsets = [0, 0], sizes = [1, 128], strides = [1, 1]} : vector<2x128xf32> to vector<1x128xf32>
    %55 = vector.broadcast %54 : vector<1x128xf32> to vector<8x128xf32>
    %56 = arith.addf %53, %55 : vector<8x128xf32>
    %cst_27 = arith.constant 0.000000e+00 : f32
    %57 = vector.broadcast %cst_27 : f32 to vector<8x128xf32>
    %58 = arith.maximumf %56, %57 : vector<8x128xf32>
    %c0_28 = arith.constant 0 : index
    %c0_29 = arith.constant 0 : index
    %59 = vector.load %arg9[%c0_28, %c0_29] : memref<16x128xf32, #tpu.memory_space<vmem>>, vector<8x128xf32>
    tpu.vector_store %arg9[%c0_28, %c0_29], %58 {strides = array<i32>} : memref<16x128xf32, #tpu.memory_space<vmem>>, vector<8x128xf32>,
    %60 = vector.extract_strided_slice %52 {offsets = [8, 0], sizes = [8, 128], strides = [1, 1]} : vector<16x128xf32> to vector<8x128xf32>
    %61 = vector.extract_strided_slice %51 {offsets = [1, 0], sizes = [1, 128], strides = [1, 1]} : vector<2x128xf32> to vector<1x128xf32>
    %62 = vector.broadcast %61 : vector<1x128xf32> to vector<8x128xf32>
    %63 = arith.addf %60, %62 : vector<8x128xf32>
    %cst_30 = arith.constant 0.000000e+00 : f32
    %64 = vector.broadcast %cst_30 : f32 to vector<8x128xf32>
    %65 = arith.maximumf %63, %64 : vector<8x128xf32>
    %c8 = arith.constant 8 : index
    %c0_31 = arith.constant 0 : index
    %66 = vector.load %arg9[%c8, %c0_31] : memref<16x128xf32, #tpu.memory_space<vmem>>, vector<8x128xf32>
    tpu.vector_store %arg9[%c8, %c0_31], %65 {strides = array<i32>} : memref<16x128xf32, #tpu.memory_space<vmem>>, vector<8x128xf32>,
    %c64 = arith.constant 64 : index
    %c0_32 = arith.constant 0 : index
    %67 = vector.load %arg5[%c64, %c0_32] : memref<128x128xf32, #tpu.memory_space<vmem>>, vector<32x128xf32>
    %c96 = arith.constant 96 : index
    %c0_33 = arith.constant 0 : index
    %68 = vector.load %arg5[%c96, %c0_33] : memref<128x128xf32, #tpu.memory_space<vmem>>, vector<32x128xf32>
    %c128 = arith.constant 128 : index
    %c0_34 = arith.constant 0 : index
    %69 = vector.load %arg6[%c128, %c0_34] : memref<256x256xf32, #tpu.memory_space<vmem>>, vector<128x256xf32>
    %c128_35 = arith.constant 128 : index
    %c0_36 = arith.constant 0 : index
    %70 = vector.load %arg7[%c128_35, %c0_36] : memref<256x128xf32, #tpu.memory_space<vmem>>, vector<128x128xf32>
    %c1 = arith.constant 1 : index
    %c0_37 = arith.constant 0 : index
    %c0_38 = arith.constant 0 : index
    %71 = vector.load %arg8[%c1, %c0_37, %c0_38] : memref<2x4x256xf32, #tpu.memory_space<vmem>>, vector<1x4x256xf32>
    %72 = vector.shape_cast %71 : vector<1x4x256xf32> to vector<4x256xf32>
    %73 = vector.extract_strided_slice %72 {offsets = [0, 0], sizes = [1, 128], strides = [1, 1]} : vector<4x256xf32> to vector<1x128xf32>
    %74 = vector.extract_strided_slice %72 {offsets = [1, 0], sizes = [1, 256], strides = [1, 1]} : vector<4x256xf32> to vector<1x256xf32>
    %75 = vector.extract_strided_slice %72 {offsets = [2, 0], sizes = [1, 128], strides = [1, 1]} : vector<4x256xf32> to vector<1x128xf32>
    %c1_39 = arith.constant 1 : index
    %c0_40 = arith.constant 0 : index
    %c0_41 = arith.constant 0 : index
    %76 = vector.load %arg4[%c1_39, %c0_40, %c0_41] : memref<2x2x128xf32, #tpu.memory_space<vmem>>, vector<1x2x128xf32>
    %77 = vector.shape_cast %76 : vector<1x2x128xf32> to vector<2x128xf32>
    %c0_42 = arith.constant 0 : index
    %c0_43 = arith.constant 0 : index
    %78 = vector.load %arg2[%c0_42, %c0_43] : memref<32x32xf32, #tpu.memory_space<vmem>>, vector<32x32xf32>
    %c0_44 = arith.constant 0 : index
    %c0_45 = arith.constant 0 : index
    %79 = vector.load %arg3[%c0_44, %c0_45] : memref<32x32xf32, #tpu.memory_space<vmem>>, vector<32x32xf32>
    %80 = arith.subf %79, %78 : vector<32x32xf32>
    %81 = vector.extract_strided_slice %80 {offsets = [0, 0], sizes = [16, 32], strides = [1, 1]} : vector<32x32xf32> to vector<16x32xf32>
    %cst_46 = arith.constant dense<0.000000e+00> : vector<32xf32>
    %82 = vector.multi_reduction <add>, %81, %cst_46 [0] : vector<16x32xf32> to vector<32xf32>
    %83 = vector.shape_cast %82 : vector<32xf32> to vector<1x32xf32>
    %84 = vector.extract_strided_slice %80 {offsets = [16, 0], sizes = [16, 32], strides = [1, 1]} : vector<32x32xf32> to vector<16x32xf32>
    %cst_47 = arith.constant dense<0.000000e+00> : vector<32xf32>
    %85 = vector.multi_reduction <add>, %84, %cst_47 [0] : vector<16x32xf32> to vector<32xf32>
    %86 = vector.shape_cast %85 : vector<32xf32> to vector<1x32xf32>
    %87 = tpu.concatenate %83, %86 in 0 : vector<1x32xf32>, vector<1x32xf32> -> vector<2x32xf32>
    %cst_48 = arith.constant dense<0.000000e+00> : vector<2x128xf32>
    %88 = tpu.matmul %87, %67, %cst_48 {dimension_numbers = #tpu.dot_dimension_numbers<[1], [0], [0], [1], [0, 0, 1, 1], [], []>, precision = #tpu.contract_precision<fp32>} : vector<2x32xf32>, vector<32x128xf32>, vector<2x128xf32> -> vector<2x128xf32>
    %89 = vector.broadcast %73 : vector<1x128xf32> to vector<2x128xf32>
    %90 = arith.addf %88, %89 : vector<2x128xf32>
    %cst_49 = arith.constant 0.000000e+00 : f32
    %91 = vector.broadcast %cst_49 : f32 to vector<2x128xf32>
    %92 = arith.maximumf %90, %91 : vector<2x128xf32>
    %cst_50 = arith.constant dense<0.000000e+00> : vector<2x256xf32>
    %93 = tpu.matmul %92, %69, %cst_50 {dimension_numbers = #tpu.dot_dimension_numbers<[1], [0], [0], [1], [0, 0, 1, 1], [], []>, precision = #tpu.contract_precision<fp32>} : vector<2x128xf32>, vector<128x256xf32>, vector<2x256xf32> -> vector<2x256xf32>
    %94 = vector.broadcast %74 : vector<1x256xf32> to vector<2x256xf32>
    %95 = arith.addf %93, %94 : vector<2x256xf32>
    %96 = vector.extract_strided_slice %95 {offsets = [0, 0], sizes = [2, 128], strides = [1, 1]} : vector<2x256xf32> to vector<2x128xf32>
    %97 = vector.extract_strided_slice %95 {offsets = [0, 128], sizes = [2, 128], strides = [1, 1]} : vector<2x256xf32> to vector<2x128xf32>
    %98 = math.absf %97 : vector<2x128xf32>
    %cst_51 = arith.constant 0.000000e+00 : f32
    %99 = vector.broadcast %cst_51 : f32 to vector<2x128xf32>
    %100 = arith.subf %99, %98 : vector<2x128xf32>
    %cst_52 = arith.constant 5.000000e-01 : f32
    %101 = vector.broadcast %cst_52 : f32 to vector<2x128xf32>
    %102 = arith.mulf %101, %100 : vector<2x128xf32>
    %103 = math.exp %102 : vector<2x128xf32>
    %cst_53 = arith.constant 1.000000e+00 : f32
    %104 = vector.broadcast %cst_53 : f32 to vector<2x128xf32>
    %105 = arith.addf %104, %100 : vector<2x128xf32>
    %106 = arith.mulf %96, %96 : vector<2x128xf32>
    %107 = arith.subf %105, %106 : vector<2x128xf32>
    %108 = arith.mulf %103, %103 : vector<2x128xf32>
    %109 = arith.subf %107, %108 : vector<2x128xf32>
    %cst_54 = arith.constant dense<0.000000e+00> : vector<128xf32>
    %110 = vector.multi_reduction <add>, %109, %cst_54 [0] : vector<2x128xf32> to vector<128xf32>
    %111 = vector.shape_cast %110 : vector<128xf32> to vector<1x128xf32>
    %cst_55 = arith.constant -2.500000e-01 : f32
    %112 = vector.broadcast %cst_55 : f32 to vector<1x128xf32>
    %113 = arith.mulf %112, %111 : vector<1x128xf32>
    %114 = arith.mulf %103, %77 : vector<2x128xf32>
    %115 = arith.addf %96, %114 : vector<2x128xf32>
    %cst_56 = arith.constant dense<0.000000e+00> : vector<2x128xf32>
    %116 = tpu.matmul %115, %70, %cst_56 {dimension_numbers = #tpu.dot_dimension_numbers<[1], [0], [0], [1], [0, 0, 1, 1], [], []>, precision = #tpu.contract_precision<fp32>} : vector<2x128xf32>, vector<128x128xf32>, vector<2x128xf32> -> vector<2x128xf32>
    %117 = vector.broadcast %75 : vector<1x128xf32> to vector<2x128xf32>
    %118 = arith.addf %116, %117 : vector<2x128xf32>
    %cst_57 = arith.constant dense<0.000000e+00> : vector<32x128xf32>
    %119 = tpu.matmul %78, %68, %cst_57 {dimension_numbers = #tpu.dot_dimension_numbers<[1], [0], [0], [1], [0, 0, 1, 1], [], []>, precision = #tpu.contract_precision<fp32>} : vector<32x32xf32>, vector<32x128xf32>, vector<32x128xf32> -> vector<32x128xf32>
    %120 = vector.extract_strided_slice %119 {offsets = [0, 0], sizes = [16, 128], strides = [1, 1]} : vector<32x128xf32> to vector<16x128xf32>
    %121 = vector.extract_strided_slice %118 {offsets = [0, 0], sizes = [1, 128], strides = [1, 1]} : vector<2x128xf32> to vector<1x128xf32>
    %122 = vector.broadcast %121 : vector<1x128xf32> to vector<16x128xf32>
    %123 = arith.addf %120, %122 : vector<16x128xf32>
    %cst_58 = arith.constant 0.000000e+00 : f32
    %124 = vector.broadcast %cst_58 : f32 to vector<16x128xf32>
    %125 = arith.maximumf %123, %124 : vector<16x128xf32>
    %c0_59 = arith.constant 0 : index
    %c0_60 = arith.constant 0 : index
    %126 = vector.load %arg10[%c0_59, %c0_60] : memref<32x128xf32, #tpu.memory_space<vmem>>, vector<16x128xf32>
    tpu.vector_store %arg10[%c0_59, %c0_60], %125 {strides = array<i32>} : memref<32x128xf32, #tpu.memory_space<vmem>>, vector<16x128xf32>,
    %127 = vector.extract_strided_slice %119 {offsets = [16, 0], sizes = [16, 128], strides = [1, 1]} : vector<32x128xf32> to vector<16x128xf32>
    %128 = vector.extract_strided_slice %118 {offsets = [1, 0], sizes = [1, 128], strides = [1, 1]} : vector<2x128xf32> to vector<1x128xf32>
    %129 = vector.broadcast %128 : vector<1x128xf32> to vector<16x128xf32>
    %130 = arith.addf %127, %129 : vector<16x128xf32>
    %cst_61 = arith.constant 0.000000e+00 : f32
    %131 = vector.broadcast %cst_61 : f32 to vector<16x128xf32>
    %132 = arith.maximumf %130, %131 : vector<16x128xf32>
    %c16 = arith.constant 16 : index
    %c0_62 = arith.constant 0 : index
    %133 = vector.load %arg10[%c16, %c0_62] : memref<32x128xf32, #tpu.memory_space<vmem>>, vector<16x128xf32>
    tpu.vector_store %arg10[%c16, %c0_62], %132 {strides = array<i32>} : memref<32x128xf32, #tpu.memory_space<vmem>>, vector<16x128xf32>,
    %134 = arith.addf %46, %113 : vector<1x128xf32>
    %c0_63 = arith.constant 0 : index
    %c0_64 = arith.constant 0 : index
    %135 = vector.load %arg11[%c0_63, %c0_64] : memref<1x128xf32, #tpu.memory_space<vmem>>, vector<1x128xf32>
    tpu.vector_store %arg11[%c0_63, %c0_64], %134 {strides = array<i32>} : memref<1x128xf32, #tpu.memory_space<vmem>>, vector<1x128xf32>,
    return
  }
}

</mosaic_0001>

<bundles_post_ra>
// kernel: hier_cond_vgnn_core.1
= control target key start
LH: loop header
LB: loop body
LE: loop exit
PB: predicated region body
PF: predicated region fallthrough
CT: control target
= control target key end

     0   :  { %17 = vsyncpa [#allocation3], 0  ;;  %s9847_s0 = inlined_call_operand.hbm [shape: f32[16,32], index: 0, kind: input, shape index: {}]   ;;  %s9848_s1 = inlined_call_operand.hbm [shape: f32[16,32], index: 1, kind: input, shape index: {}]   ;;  %s9849_s2 = inlined_call_operand.vmem [shape: f32[32,32], index: 2, kind: input, shape index: {}]   ;;  %s9850_s3 = inlined_call_operand.vmem [shape: f32[32,32], index: 3, kind: input, shape index: {}]   ;;  %s9851_s4 = inlined_call_operand.vmem [shape: f32[2,2,128], index: 4, kind: input, shape index: {}]   ;;  %s9852_s5 = inlined_call_operand.hbm [shape: f32[128,128], index: 5, kind: input, shape index: {}]   ;;  %s9853_s6 = inlined_call_operand.hbm [shape: f32[256,256], index: 6, kind: input, shape index: {}]   ;;  %s9854_s7 = inlined_call_operand.vmem [shape: f32[256,128], index: 7, kind: input, shape index: {}]   ;;  %s9855_s8 = inlined_call_operand.hbm [shape: f32[2,4,256], index: 8, kind: input, shape index: {}]   ;;  %s9856_s9 = inlined_call_operand.hbm [shape: f32[16,128], index: 9, kind: output, shape index: {0}]   ;;  %s9857_s10 = inlined_call_operand.vmem [shape: f32[32,128], index: 10, kind: output, shape index: {1}]   ;;  %s9858_s11 = inlined_call_operand.vmem [shape: f32[1,128], index: 11, kind: output, shape index: {2}]  }
   0x1   :  { %18 = vsyncpa [#allocation6], 0 }
   0x2   :  { %19 = vsyncpa [#allocation9], 0 }
   0x3   :  { %20 = vsyncpa [#allocation4], 0  ;;  %s7717_s17 = smov [#allocation5]   ;;  %s7718_s19 = smov [#allocation8]  }
   0x4   :  { %s38_s18 = sshll.u32 %s7717_s17, 4  ;;  %s68_s20 = sshll.u32 %s7718_s19, 4  ;;  %s39_s18 = int_to_ptr.vmem [resolvable:$true] %s38_s18  ;;  %s7790_s20 = int_to_ptr.vmem [resolvable:$true] %s68_s20 }
   0x5   :  { %s7577_s23 = scalar_lea.hbm %s9848_s1, 256 }
   0x6   :  { %p7578_p0 = scmp.ne.s32.totalorder %s9848_s1, %s7577_s23  ;;  %p7581_p1 = scmp.lt.u32.totalorder %s7577_s23, %s9848_s1 }
   0x8   :  { %p7583_p2 = pnand %p7581_p1, %p7578_p0 }
   0xa   :  { %7586 = shalt.err (!%p7583_p2)
}
   0xb   :  { %s7587_s28 = scalar_lea.vmem %s39_s18, 256  ;;  %p7592_p4 = scmp.lt.s32.totalorder %s39_s18, %s39_s18 }
   0xc   :  { %p7588_p3 = scmp.ne.s32.totalorder %s39_s18, %s7587_s28  ;;  %p7593_p5 = scmp.lt.s32.totalorder %s7587_s28, %s7587_s28 }
   0xe   :  { %p7594_p6 = por %p7593_p5, %p7592_p4 }
  0x10   :  { %p7595_p7 = pnand %p7594_p6, %p7588_p3 }
  0x12   :  { %7598 = shalt.err (!%p7595_p7)
}
  0x13   :  { %s7719_s29 = smov 128   ;;  %s7720_s30 = smov 8  }
  0x14   :  { %44 = dma.hbm_to_vmem [thread:$0]  %s9848_s1, 256, %s39_s18, [#allocation6], %s7719_s29, %s7719_s29, %s7720_s30  }
  0x15   :  { %s7599_s16 = scalar_lea.hbm %s9853_s6, 8192 }
  0x16   :  { %p7600_p8 = scmp.ne.s32.totalorder %s9853_s6, %s7599_s16  ;;  %p7603_p9 = scmp.lt.u32.totalorder %s7599_s16, %s9853_s6 }
  0x18   :  { %p7605_p10 = pnand %p7603_p9, %p7600_p8 }
  0x1a   :  { %7608 = shalt.err (!%p7605_p10)
}
  0x1b   :  { %s7609_s23 = scalar_lea.vmem %s7790_s20, 8192  ;;  %p7614_p12 = scmp.lt.s32.totalorder %s7790_s20, %s7790_s20 }
  0x1c   :  { %p7610_p11 = scmp.ne.s32.totalorder %s7790_s20, %s7609_s23  ;;  %p7615_p13 = scmp.lt.s32.totalorder %s7609_s23, %s7609_s23 }
  0x1e   :  { %p7616_p0 = por %p7615_p13, %p7614_p12 }
  0x20   :  { %p7617_p1 = pnand %p7616_p0, %p7610_p11 }
  0x22   :  { %7620 = shalt.err (!%p7617_p1)
}
  0x23   :  { %s7721_s1 = smov 256   ;;  %s7722_s18 = smov 16  }
  0x24   :  { %74 = dma.hbm_to_vmem [thread:$0]  %s9853_s6, 8192, %s7790_s20, [#allocation9], %s7721_s1, %s7721_s1, %s7722_s18  }
  0x25   :  { %s7723_s26 = smov [#allocation2]   ;;  %s7724_s28 = smov [#allocation7]  }
  0x26   :  { %s26_s27 = sshll.u32 %s7723_s26, 4  ;;  %s56_s12 = sshll.u32 %s7724_s28, 4  ;;  %s27_s27 = int_to_ptr.vmem [resolvable:$true] %s26_s27  ;;  %s7824_s12 = int_to_ptr.vmem [resolvable:$true] %s56_s12 }
  0x27   :  { %s7621_s15 = scalar_lea.hbm %s9847_s0, 256 }
  0x28   :  { %p7622_p2 = scmp.ne.s32.totalorder %s9847_s0, %s7621_s15  ;;  %p7625_p3 = scmp.lt.u32.totalorder %s7621_s15, %s9847_s0 }
  0x2a   :  { %p7627_p4 = pnand %p7625_p3, %p7622_p2 }
  0x2c   :  { %7630 = shalt.err (!%p7627_p4)
}
  0x2d   :  { %s7631_s6 = scalar_lea.vmem %s27_s27, 256  ;;  %p7636_p6 = scmp.lt.s32.totalorder %s27_s27, %s27_s27 }
  0x2e   :  { %p7632_p5 = scmp.ne.s32.totalorder %s27_s27, %s7631_s6  ;;  %p7637_p7 = scmp.lt.s32.totalorder %s7631_s6, %s7631_s6 }
  0x30   :  { %p7638_p8 = por %p7637_p7, %p7636_p6 }
  0x32   :  { %p7639_p9 = pnand %p7638_p8, %p7632_p5 }
  0x34   :  { %7642 = shalt.err (!%p7639_p9)
}
  0x35   :  { %32 = dma.hbm_to_vmem [thread:$0]  %s9847_s0, 256, %s27_s27, [#allocation3], %s7719_s29, %s7719_s29, %s7720_s30  }
  0x36   :  { %s7643_s18 = scalar_lea.hbm %s9852_s5, 2048 }
  0x37   :  { %p7644_p10 = scmp.ne.s32.totalorder %s9852_s5, %s7643_s18  ;;  %p7647_p11 = scmp.lt.u32.totalorder %s7643_s18, %s9852_s5 }
  0x39   :  { %p7649_p12 = pnand %p7647_p11, %p7644_p10 }
  0x3b   :  { %7652 = shalt.err (!%p7649_p12)
}
  0x3c   :  { %s7653_s13 = scalar_lea.vmem %s7824_s12, 2048  ;;  %p7658_p0 = scmp.lt.s32.totalorder %s7824_s12, %s7824_s12 }
  0x3d   :  { %p7654_p13 = scmp.ne.s32.totalorder %s7824_s12, %s7653_s13  ;;  %p7659_p1 = scmp.lt.s32.totalorder %s7653_s13, %s7653_s13 }
  0x3f   :  { %p7660_p2 = por %p7659_p1, %p7658_p0 }
  0x41   :  { %p7661_p3 = pnand %p7660_p2, %p7654_p13 }
  0x43   :  { %7664 = shalt.err (!%p7661_p3)
}
  0x44   :  { %62 = dma.hbm_to_vmem [thread:$0]  %s9852_s5, 2048, %s7824_s12, [#allocation6], %s7719_s29, %s7719_s29, %s7720_s30  }
  0x45   :  { %s7725_s14 = smov [#allocation10]   ;;  %s7665_s19 = scalar_lea.hbm %s9855_s8, 256 }
  0x46   :  { %s82_s15 = sshll.u32 %s7725_s14, 4  ;;  %p7666_p4 = scmp.ne.s32.totalorder %s9855_s8, %s7665_s19  ;;  %s83_s15 = int_to_ptr.vmem [resolvable:$true] %s82_s15 }
  0x47   :  { %p7669_p5 = scmp.lt.u32.totalorder %s7665_s19, %s9855_s8 }
  0x49   :  { %p7671_p6 = pnand %p7669_p5, %p7666_p4 }
  0x4b   :  { %7674 = shalt.err (!%p7671_p6)
}
  0x4c   :  { %s7675_s23 = scalar_lea.vmem %s83_s15, 256  ;;  %p7680_p8 = scmp.lt.s32.totalorder %s83_s15, %s83_s15 }
  0x4d   :  { %p7676_p7 = scmp.ne.s32.totalorder %s83_s15, %s7675_s23  ;;  %p7681_p9 = scmp.lt.s32.totalorder %s7675_s23, %s7675_s23 }
  0x4f   :  { %p7682_p10 = por %p7681_p9, %p7680_p8 }
  0x51   :  { %p7683_p11 = pnand %p7682_p10, %p7676_p7 }
  0x53   :  { %7686 = shalt.err (!%p7683_p11)
}
  0x54   :  { %88 = dma.hbm_to_vmem [thread:$0]  %s9855_s8, 256, %s83_s15, [#allocation9], %s7719_s29, %s7719_s29, %s7720_s30  }
  0x55   :  { %7709 = dma.done.wait [#allocation3], 256  }
  0x56   :  { %7710 = vsyncadd [#allocation3], 4294967040 }
  0x57   :  { %7711 = dma.done.wait [#allocation6], 2304  }
  0x58   :  { %7712 = vsyncadd [#allocation6], 4294964992 }
  0x59   :  { %7713 = dma.done.wait [#allocation9], 8448  }
  0x5a   :  { %7714 = vsyncadd [#allocation9], 4294958848  ;;  %v9859_v0 = vmov 0.0|0.0   ;;  %vm7727_vm0 = vmmov 0   ;;  %v9861_v1 = vmov 0.0   ;;  %v104_v2 = vld [vmem:[#allocation7] sm:$0xff] }
  0x5b   :  { %6615 = vmatprep.subr.bf16.mxu0 %v9859_v0  ;;  %5921 = vmatprep.mubr.msk.f32.mxu0 %vm7727_vm0, %v9861_v1  ;;  %v105_v3 = vld [vmem:[#allocation7 + $0x8] sm:$0xff]  ;;  %v106_v4 = vld [vmem:[#allocation7 + $0x10] sm:$0xff]  ;;  %v193_v5 = vand.u32 4294901760, %v104_v2  ;;  %v107_v7 = vld [vmem:[#allocation7 + $0x18] sm:$0xff]  ;;  %vm168_vm1 = vcmask 261120   ;;  %vm183_vm2 = vcmask 1040384  }
  0x5c   :  { %793 = vmatprep.mubr.f32.mxu1 %v9861_v1  ;;  %v196_v6 = vand.u32 4294901760, %v105_v3  ;;  %v199_v8 = vand.u32 4294901760, %v106_v4  ;;  %v162_v9 = vld [vmem:[#allocation2] sm:$0xff]  ;;  %v163_v10 = vld [vmem:[#allocation2 + $0x8] sm:$0xff]  ;;  %v202_v11 = vand.u32 4294901760, %v107_v7  ;;  %v164_v12 = vld [vmem:[#allocation5] sm:$0xff] }
  0x5d   :  { %v165_v13 = vld [vmem:[#allocation5 + $0x8] sm:$0xff]  ;;  %v7882_v15 = vsub.f32 %v104_v2, %v193_v5  ;;  %v166_v19 = vsub.f32 %v164_v12, %v162_v9  ;;  %v113_v30 = vld [vmem:[#allocation8 + $0x8] sm:$0xff]  ;;  %v112_v33 = vld [vmem:[#allocation8] sm:$0xff]  ;;  %vm1562_vm3 = vcmask 1041408  }
  0x5e   :  { %v7880_v14 = vpack.c.bf16 %v196_v6, %v193_v5  ;;  %v7884_v16 = vsub.f32 %v105_v3, %v196_v6  ;;  %v7886_v17 = vsub.f32 %v106_v4, %v199_v8  ;;  %v7888_v18 = vsub.f32 %v107_v7, %v202_v11  ;;  %v115_v31 = vld [vmem:[#allocation8 + $0x18] sm:$0xff]  ;;  %v114_v40 = vld [vmem:[#allocation8 + $0x10] sm:$0xff]  ;;  %v117_v41 = vld [vmem:[#allocation8 + $0x28] sm:$0xff] }
  0x5f   :  { %v167_v20 = vsub.f32 %v165_v13, %v163_v10  ;;  %v7891_v21 = vpack.c.bf16 %v202_v11, %v199_v8  ;;  %v274_v22 = vand.u32 4294901760, %v7882_v15  ;;  %v169_v23 = vsel %vm168_vm1, %v166_v19, 0.0  ;;  %v119_v46 = vld [vmem:[#allocation8 + $0x38] sm:$0xff]  ;;  %v116_v47 = vld [vmem:[#allocation8 + $0x20] sm:$0xff]  ;;  %v118_v48 = vld [vmem:[#allocation8 + $0x30] sm:$0xff] }
  0x60   :  { %6617 = vmatpush3.bf16.msra.mxu0 %v7880_v14  ;;  %v281_v25 = vand.u32 4294901760, %v7884_v16  ;;  %v288_v26 = vand.u32 4294901760, %v7886_v17  ;;  %v170_v27 = vrot.slane %v169_v23, 4  ;;  %v295_v29 = vand.u32 4294901760, %v7888_v18  ;;  %v121_v61 = vld [vmem:[#allocation8 + $0x48] sm:$0xff]  ;;  %v123_v4 = vld [vmem:[#allocation8 + $0x58] sm:$0xff] }
  0x61   :  { %6618 = vmatprep.subr.bf16.mxu0 %v9859_v0  ;;  %v176_v24 = vsel %vm168_vm1, %v167_v20, 0.0  ;;  %v7903_v32 = vsub.f32 %v7882_v15, %v274_v22  ;;  %v697_v38 = vand.u32 4294901760, %v113_v30  ;;  %v701_v39 = vand.u32 4294901760, %v115_v31  ;;  %v120_v5 = vld [vmem:[#allocation8 + $0x40] sm:$0xff]  ;;  %v122_v6 = vld [vmem:[#allocation8 + $0x50] sm:$0xff]  ;;  %v125_v11 = vld [vmem:[#allocation8 + $0x68] sm:$0xff] }
  0x62   :  { %v177_v28 = vrot.slane %v176_v24, 4  ;;  %v171_v34 = vadd.f32 %v170_v27, %v169_v23  ;;  %v7910_v36 = vsub.f32 %v7884_v16, %v281_v25  ;;  %v7915_v37 = vsub.f32 %v7886_v17, %v288_v26  ;;  %v127_v12 = vld [vmem:[#allocation8 + $0x78] sm:$0xff]  ;;  %v124_v13 = vld [vmem:[#allocation8 + $0x60] sm:$0xff] }
  0x63   :  { %v7920_v44 = vsub.f32 %v7888_v18, %v295_v29  ;;  %v699_v45 = vand.u32 4294901760, %v112_v33  ;;  %v276_v49 = vand.u32 4294901760, %v7903_v32  ;;  %v7923_v50 = vpack.c.bf16 %v701_v39, %v697_v38 }
  0x64   :  { %6620 = vmatpush3.bf16.msra.mxu0 %v7891_v21  ;;  %v178_v35 = vadd.f32 %v177_v28, %v176_v24  ;;  %v172_v42 = vrot.slane %v171_v34, 2  ;;  %v7925_v51 = vsub.f32 %v113_v30, %v697_v38  ;;  %v7927_v52 = vsub.f32 %v115_v31, %v701_v39  ;;  %v126_v38 = vld [vmem:[#allocation8 + $0x70] sm:$0xff] }
  0x65   :  { %6621 = vmatprep.subr.bf16.mxu0 %v9859_v0  ;;  %v703_v55 = vand.u32 4294901760, %v114_v40  ;;  %v7929_v56 = vsub.f32 %v112_v33, %v699_v45  ;;  %6652 = vmatprep.subr.bf16.mxu1 %v7923_v50  ;;  %v705_v57 = vand.u32 4294901760, %v117_v41  ;;  %v709_v58 = vand.u32 4294901760, %v119_v46 }
  0x66   :  { %v179_v43 = vrot.slane %v178_v35, 2  ;;  %v173_v53 = vadd.f32 %v172_v42, %v171_v34  ;;  %v707_v59 = vand.u32 4294901760, %v116_v47  ;;  %v711_v60 = vand.u32 4294901760, %v118_v48 }
  0x67   :  { %v7932_v2 = vpack.c.bf16 %v703_v55, %v699_v45  ;;  %v7934_v3 = vsub.f32 %v114_v40, %v703_v55  ;;  %v7936_v7 = vpack.c.bf16 %v709_v58, %v705_v57  ;;  %v7938_v8 = vsub.f32 %v117_v41, %v705_v57  ;;  %v129_v45 = vld [vmem:[#allocation8 + $0x88] sm:$0xff]  ;;  %v128_v55 = vld [vmem:[#allocation8 + $0x80] sm:$0xff]  ;;  %v130_v57 = vld [vmem:[#allocation8 + $0x90] sm:$0xff] }
  0x68   :  { %v180_v54 = vadd.f32 %v179_v43, %v178_v35  ;;  %v174_v62 = vrot.slane %v173_v53, 1  ;;  %v7940_v9 = vsub.f32 %v119_v46, %v709_v58  ;;  %v7942_v10 = vpack.c.bf16 %v711_v60, %v707_v59  ;;  %v131_v46 = vld [vmem:[#allocation8 + $0x98] sm:$0xff] }
  0x69   :  { %10072 = vst [vmem:[#allocation16_spill] sm:$0xff] %v7936_v7  ;;  %6654 = vmatpush1.bf16.msra.mxu1 %v7932_v2  ;;  %v7945_v23 = vsub.f32 %v116_v47, %v707_v59  ;;  %v7947_v24 = vsub.f32 %v118_v48, %v711_v60  ;;  %v713_v27 = vand.u32 4294901760, %v121_v61  ;;  %v717_v28 = vand.u32 4294901760, %v123_v4 }
  0x6a   :  { %v181_v63 = vrot.slane %v180_v54, 1  ;;  %10073 = vst [vmem:[#allocation17_spill] sm:$0xff] %v7942_v10  ;;  %v175_v19 = vadd.f32 %v174_v62, %v173_v53  ;;  %6656 = vmatprep.subr.bf16.mxu1 %v7936_v7  ;;  %v715_v30 = vand.u32 4294901760, %v120_v5  ;;  %v719_v31 = vand.u32 4294901760, %v122_v6 }
  0x6b   :  { %v721_v34 = vand.u32 4294901760, %v125_v11  ;;  %v725_v35 = vand.u32 4294901760, %v127_v12  ;;  %v723_v39 = vand.u32 4294901760, %v124_v13  ;;  %v7952_v41 = vpack.c.bf16 %v717_v28, %v713_v27 }
  0x6c   :  { %v182_v20 = vadd.f32 %v181_v63, %v180_v54  ;;  %v7954_v42 = vsub.f32 %v121_v61, %v713_v27  ;;  %v7956_v43 = vsub.f32 %v123_v4, %v717_v28  ;;  %v7961_v48 = vpack.c.bf16 %v719_v31, %v715_v30 }
  0x6d   :  { %10074 = vst [vmem:[#allocation18_spill] sm:$0xff] %v7952_v41  ;;  %6658 = vmatpush1.bf16.msra.mxu1 %v7942_v10  ;;  %v7963_v53 = vsub.f32 %v120_v5, %v715_v30  ;;  %v7965_v54 = vsub.f32 %v122_v6, %v719_v31  ;;  %v7968_v58 = vpack.c.bf16 %v725_v35, %v721_v34  ;;  %v727_v61 = vand.u32 4294901760, %v126_v38 }
  0x6e   :  { %v184_v33 = vsel %vm183_vm2, %v175_v19, %v182_v20  ;;  %10075 = vst [vmem:[#allocation19_spill] sm:$0xff] %v7961_v48  ;;  %6660 = vmatprep.subr.bf16.mxu1 %v7952_v41  ;;  %v7970_v59 = vsub.f32 %v125_v11, %v721_v34  ;;  %v7972_v60 = vsub.f32 %v127_v12, %v725_v35  ;;  %v729_v4 = vand.u32 4294901760, %v129_v45 }
  0x6f   :  { %v190_v40 = vsel %vm168_vm1, %v184_v33, 0  ;;  %10076 = vst [vmem:[#allocation20_spill] sm:$0xff] %v7968_v58  ;;  %v7975_v63 = vsub.f32 %v124_v13, %v723_v39  ;;  %v733_v5 = vand.u32 4294901760, %v131_v46  ;;  %v283_v6 = vand.u32 4294901760, %v7910_v36 }
  0x70   :  { %v7958_v47 = vand.u32 4294901760, %v190_v40  ;;  %v7978_v19 = vsub.f32 %v126_v38, %v727_v61  ;;  %v731_v20 = vand.u32 4294901760, %v128_v55  ;;  %v735_v27 = vand.u32 4294901760, %v130_v57 }
  0x71   :  { %6662 = vmatpush1.bf16.msra.mxu1 %v7961_v48  ;;  %v7981_v11 = vpack.c.bf16 %v727_v61, %v723_v39  ;;  %v7983_v12 = vsub.f32 %v129_v45, %v729_v4  ;;  %v7985_v30 = vsub.f32 %v131_v46, %v733_v5  ;;  %v7988_v13 = vpack.c.bf16 %v733_v5, %v729_v4  ;;  %v136_v61 = vld [vmem:[#allocation8 + $0xc0] sm:$0xff] }
  0x72   :  { %v262_v62 = vsub.f32 %v190_v40, %v7958_v47  ;;  %6664 = vmatprep.subr.bf16.mxu1 %v7968_v58  ;;  %v7990_v31 = vsub.f32 %v128_v55, %v731_v20  ;;  %v7992_v36 = vsub.f32 %v130_v57, %v735_v27  ;;  %v6622_v34 = vpack.c.bf16 %v283_v6, %v276_v49  ;;  %v139_v55 = vld [vmem:[#allocation8 + $0xd8] sm:$0xff] }
  0x73   :  { %10077 = vst [vmem:[#allocation21_spill] sm:$0xff] %v7981_v11  ;;  %10078 = vst [vmem:[#allocation22_spill] sm:$0xff] %v7983_v12  ;;  %v290_v35 = vand.u32 4294901760, %v7915_v37  ;;  %v297_v38 = vand.u32 4294901760, %v7920_v44  ;;  %v7999_v40 = vpack.c.bf16 %v735_v27, %v731_v20  ;;  %v6628_v32 = vpack.c.bf16 %v7884_v16, %v7882_v15  ;;  %v133_v15 = vld [vmem:[#allocation8 + $0xa8] sm:$0xff]  ;;  %v135_v16 = vld [vmem:[#allocation8 + $0xb8] sm:$0xff] }
  0x74   :  { %v263_v28 = vand.u32 4294901760, %v262_v62  ;;  %10079 = vst [vmem:[#allocation23_spill] sm:$0xff] %v7985_v30  ;;  %10080 = vst [vmem:[#allocation24_spill] sm:$0xff] %v7988_v13  ;;  %v6631_v37 = vpack.c.bf16 %v7888_v18, %v7886_v17  ;;  %v6640_v44 = vpack.c.bf16 %v281_v25, %v274_v22  ;;  %v6643_v49 = vpack.c.bf16 %v295_v29, %v288_v26  ;;  %v132_v22 = vld [vmem:[#allocation8 + $0xa0] sm:$0xff]  ;;  %v141_v27 = vld [vmem:[#allocation8 + $0xe8] sm:$0xff] }
  0x75   :  { %10081 = vst [vmem:[#allocation25_spill] sm:$0xff] %v7992_v36  ;;  %6666 = vmatpush1.bf16.msra.mxu1 %v7981_v11  ;;  %10082 = vst [vmem:[#allocation26_spill] sm:$0xff] %v7999_v40  ;;  %v6625_v45 = vpack.c.bf16 %v297_v38, %v290_v35  ;;  %v737_v17 = vand.u32 4294901760, %v133_v15  ;;  %v741_v18 = vand.u32 4294901760, %v135_v16  ;;  %v739_v25 = vand.u32 4294901760, %v132_v22  ;;  %v140_v35 = vld [vmem:[#allocation8 + $0xe0] sm:$0xff] }
  0x76   :  { %v264_v33 = vsub.f32 %v262_v62, %v263_v28  ;;  %6668 = vmatprep.subr.bf16.mxu1 %v7988_v13  ;;  %v749_v57 = vand.u32 4294901760, %v139_v55  ;;  %v747_v4 = vand.u32 4294901760, %v136_v61 }
  0x77   :  { %v8044_v29 = vpack.c.bf16 %v741_v18, %v737_v17 }
  0x78   :  { %v265_v39 = vand.u32 4294901760, %v264_v33  ;;  %v753_v33 = vand.u32 4294901760, %v141_v27 }
  0x79   :  { %6670 = vmatpush1.bf16.msra.mxu1 %v7999_v40  ;;  %10083 = vst [vmem:[#allocation27_spill] sm:$0xff] %v8044_v29 }
  0x7a   :  { %5922 = vmatmul.mubr.f32.vlgmr.msra.gmra.mrb[0].mxu0 %v265_v39  ;;  %6672 = vmatprep.subr.bf16.mxu1 %v8044_v29 }
  0x7b   :  { %6623 = vmatpush3.bf16.msra.mxu0 %v6622_v34  ;;  %5932 = vmatprep.mubr.msk.f32.mxu0 %vm7727_vm0, %v9861_v1 }
  0x7c   :  { %6624 = vmatprep.subr.bf16.mxu0 %v9859_v0 }
  0x7f   :  { %6626 = vmatpush3.bf16.msra.mxu0 %v6625_v45  ;;  %v8057_v45 = vsub.f32 %v133_v15, %v737_v17  ;;  %v8076_v15 = vsub.f32 %v141_v27, %v753_v33  ;;  %v755_v17 = vand.u32 4294901760, %v140_v35 }
  0x80   :  { %6627 = vmatprep.subr.bf16.mxu0 %v9859_v0 }
  0x81   :  { %10087 = vst [vmem:[#allocation31_spill] sm:$0xff] %v8057_v45 }
  0x82   :  { %5933 = vmatmul.mubr.f32.vlgmr.msra.gmra.mrb[0].mxu0 %v7958_v47 }
  0x83   :  { %6629 = vmatpush3.bf16.msra.mxu0 %v6628_v32  ;;  %5943 = vmatprep.mubr.msk.f32.mxu0 %vm7727_vm0, %v9861_v1  ;;  %v8059_v32 = vsub.f32 %v135_v16, %v741_v18 }
  0x84   :  { %6630 = vmatprep.subr.bf16.mxu0 %v9859_v0 }
  0x85   :  { %10088 = vst [vmem:[#allocation32_spill] sm:$0xff] %v8059_v32 }
  0x87   :  { %6632 = vmatpush3.bf16.msra.mxu0 %v6631_v37  ;;  %v8061_v37 = vsub.f32 %v132_v22, %v739_v25  ;;  %v10097_v22 = vand.u32 4294901760, %v7925_v51 }
  0x88   :  { %6633 = vmatprep.subr.bf16.mxu0 %v9859_v0 }
  0x89   :  { %10089 = vst [vmem:[#allocation33_spill] sm:$0xff] %v8061_v37  ;;  %v9901_v29 = vand.u32 4294901760, %v8061_v37 }
  0x8a   :  { %5944 = vmatmul.mubr.f32.vlgmr.msra.gmra.mrb[0].mxu0 %v262_v62  ;;  %v138_v62 = vld [vmem:[#allocation8 + $0xd0] sm:$0xff] }
  0x8b   :  { %6635 = vmatpush3.bf16.msra.mxu0 %v7880_v14  ;;  %5954 = vmatprep.mubr.msk.f32.mxu0 %vm7727_vm0, %v9861_v1  ;;  %v751_v5 = vand.u32 4294901760, %v138_v62 }
  0x8c   :  { %6636 = vmatprep.subr.bf16.mxu0 %v9859_v0 }
  0x8d   :  { %v8052_v20 = vpack.c.bf16 %v751_v5, %v747_v4  ;;  %v8072_v38 = vsub.f32 %v138_v62, %v751_v5 }
  0x8f   :  { %6638 = vmatpush3.bf16.msra.mxu0 %v7891_v21  ;;  %10086 = vst [vmem:[#allocation30_spill] sm:$0xff] %v8052_v20  ;;  %10094 = vst [vmem:[#allocation38_spill] sm:$0xff] %v8072_v38 }
  0x90   :  { %6639 = vmatprep.subr.bf16.mxu0 %v9859_v0 }
  0x92   :  { %5955 = vmatmul.mubr.f32.vlgmr.msra.gmra.mrb[0].mxu0 %v263_v28  ;;  %v143_v28 = vld [vmem:[#allocation8 + $0xf8] sm:$0xff] }
  0x93   :  { %6641 = vmatpush3.bf16.msra.mxu0 %v6640_v44  ;;  %5965 = vmatprep.mubr.msk.f32.mxu0 %vm7727_vm0, %v9861_v1  ;;  %v757_v34 = vand.u32 4294901760, %v143_v28 }
  0x94   :  { %6642 = vmatprep.subr.bf16.mxu0 %v9859_v0 }
  0x95   :  { %v8074_v39 = vpack.c.bf16 %v757_v34, %v753_v33  ;;  %v8078_v16 = vsub.f32 %v143_v28, %v757_v34 }
  0x97   :  { %6644 = vmatpush3.bf16.msra.mxu0 %v6643_v49  ;;  %v142_v49 = vld [vmem:[#allocation8 + $0xf0] sm:$0xff]  ;;  %10095 = vst [vmem:[#allocation39_spill] sm:$0xff] %v8074_v39  ;;  %10096 = vst [vmem:[#allocation40_spill] sm:$0xff] %v8078_v16 }
  0x98   :  { %6645 = vmatprep.subr.bf16.mxu0 %v9859_v0  ;;  %v759_v18 = vand.u32 4294901760, %v142_v49 }
  0x9a   :  { %5966 = vmatmul.mubr.f32.vlgmr.msra.gmra.mrb[0].mxu0 %v7958_v47  ;;  %v8093_v62 = vpack.c.bf16 %v759_v18, %v755_v17 }
  0x9b   :  { %6647 = vmatpush3.bf16.msra.mxu0 %v7880_v14  ;;  %5976 = vmatprep.mubr.msk.f32.mxu0 %vm7727_vm0, %v9861_v1  ;;  %v134_v14 = vld [vmem:[#allocation8 + $0xb0] sm:$0xff] }
  0x9c   :  { %6648 = vmatprep.subr.bf16.mxu0 %v9859_v0  ;;  %v743_v26 = vand.u32 4294901760, %v134_v14  ;;  %10100 = vst [vmem:[#allocation42_spill] sm:$0xff] %v8093_v62 }
  0x9e   :  { %v8046_v46 = vpack.c.bf16 %v743_v26, %v739_v25  ;;  %v8063_v44 = vsub.f32 %v134_v14, %v743_v26  ;;  %v808_v14 = vsub.f32 %v7925_v51, %v10097_v22  ;;  %v10098_v25 = vand.u32 4294901760, %v7927_v52 }
  0x9f   :  { %6650 = vmatpush3.bf16.msra.mxu0 %v7891_v21  ;;  %v137_v21 = vld [vmem:[#allocation8 + $0xc8] sm:$0xff] }
  0xa0   :  { %6843 = vmatprep.subr.bf16.mxu0 %v9859_v0  ;;  %10084 = vst [vmem:[#allocation28_spill] sm:$0xff] %v8046_v46  ;;  %6674 = vmatpush1.bf16.msra.mxu1 %v8046_v46  ;;  %10090 = vst [vmem:[#allocation34_spill] sm:$0xff] %v8063_v44  ;;  %v820_v26 = vsub.f32 %v7927_v52, %v10098_v25  ;;  %v809_v5 = vand.u32 4294901760, %v808_v14 }
  0xa2   :  { %5977 = vmatmul.mubr.f32.vlgmr.msra.gmra.mrb[0].mxu0 %v7958_v47  ;;  %v745_v47 = vand.u32 4294901760, %v137_v21  ;;  %v821_v27 = vand.u32 4294901760, %v820_v26 }
  0xa3   :  { %6011 = vmatprep.mubr.msk.f32.mxu0 %vm7727_vm0, %v9861_v1  ;;  %v8068_v1 = vsub.f32 %v139_v55, %v749_v57  ;;  %v8088_v55 = vsub.f32 %v140_v35, %v755_v17  ;;  %v9871_v17 = vand.u32 4294901760, %v7945_v23 }
  0xa4   :  { %v8050_v6 = vpack.c.bf16 %v749_v57, %v745_v47  ;;  %v8066_v0 = vsub.f32 %v137_v21, %v745_v47  ;;  %v9868_v21 = vand.u32 4294901760, %v7929_v56  ;;  %v9867_v47 = vand.u32 4294901760, %v7934_v3 }
  0xa5   :  { %10092 = vst [vmem:[#allocation36_spill] sm:$0xff] %v8068_v1  ;;  %10099 = vst [vmem:[#allocation41_spill] sm:$0xff] %v8088_v55  ;;  %v9865_v57 = vand.u32 4294901760, %v7938_v8  ;;  %v9920_v58 = vand.u32 4294901760, %v8088_v55 }
  0xa6   :  { %10085 = vst [vmem:[#allocation29_spill] sm:$0xff] %v8050_v6  ;;  %6676 = vmatprep.subr.bf16.mxu1 %v8050_v6  ;;  %10091 = vst [vmem:[#allocation35_spill] sm:$0xff] %v8066_v0  ;;  %v8070_v6 = vsub.f32 %v136_v61, %v747_v4  ;;  %v9866_v61 = vand.u32 4294901760, %v7940_v9  ;;  %v8095_v4 = vsub.f32 %v142_v49, %v759_v18  ;;  %v9869_v18 = vand.u32 4294901760, %v7947_v24 }
  0xa7   :  { %6678 = vmatpush1.bf16.msra.mxu1 %v8052_v20  ;;  %v814_v28 = vsub.f32 %v7929_v56, %v9868_v21  ;;  %v826_v33 = vsub.f32 %v7934_v3, %v9867_v47  ;;  %v832_v34 = vsub.f32 %v7938_v8, %v9865_v57  ;;  %v6683_v49 = vpack.c.bf16 %v821_v27, %v809_v5 }
  0xa8   :  { %10093 = vst [vmem:[#allocation37_spill] sm:$0xff] %v8070_v6  ;;  %6680 = vmatprep.subr.bf16.mxu1 %v8074_v39  ;;  %10101 = vst [vmem:[#allocation43_spill] sm:$0xff] %v8095_v4  ;;  %v844_v35 = vsub.f32 %v7940_v9, %v9866_v61  ;;  %v838_v57 = vsub.f32 %v7945_v23, %v9871_v17  ;;  %v850_v61 = vsub.f32 %v7947_v24, %v9869_v18 }
  0xa9   :  { %v815_v22 = vand.u32 4294901760, %v814_v28  ;;  %v827_v14 = vand.u32 4294901760, %v826_v33  ;;  %v833_v25 = vand.u32 4294901760, %v832_v34  ;;  %v9870_v47 = vand.u32 4294901760, %v7954_v42 }
  0xaa   :  { %v845_v26 = vand.u32 4294901760, %v844_v35  ;;  %v9874_v5 = vand.u32 4294901760, %v7956_v43  ;;  %v9875_v28 = vand.u32 4294901760, %v7963_v53  ;;  %v9876_v33 = vand.u32 4294901760, %v7965_v54 }
  0xab   :  { %6682 = vmatpush1.bf16.msra.mxu1 %v8093_v62  ;;  %v8120_v27 = vpack.c.bf16 %v827_v14, %v815_v22  ;;  %v839_v34 = vand.u32 4294901760, %v838_v57  ;;  %v851_v35 = vand.u32 4294901760, %v850_v61  ;;  %v9882_v57 = vand.u32 4294901760, %v7972_v60 }
  0xac   :  { %6684 = vmatprep.subr.bf16.mxu1 %v6683_v49  ;;  %v8122_v21 = vpack.c.bf16 %v845_v26, %v833_v25  ;;  %v856_v49 = vsub.f32 %v7954_v42, %v9870_v47  ;;  %v868_v18 = vsub.f32 %v7956_v43, %v9874_v5  ;;  %v862_v22 = vsub.f32 %v7963_v53, %v9875_v28 }
  0xad   :  { %v874_v14 = vsub.f32 %v7965_v54, %v9876_v33  ;;  %v9881_v25 = vand.u32 4294901760, %v7970_v59  ;;  %v8140_v61 = vpack.c.bf16 %v851_v35, %v839_v34  ;;  %v9885_v17 = vand.u32 4294901760, %v7975_v63 }
  0xae   :  { %v857_v26 = vand.u32 4294901760, %v856_v49  ;;  %v869_v47 = vand.u32 4294901760, %v868_v18  ;;  %v863_v62 = vand.u32 4294901760, %v862_v22  ;;  %v892_v33 = vsub.f32 %v7972_v60, %v9882_v57 }
  0xaf   :  { %v875_v5 = vand.u32 4294901760, %v874_v14  ;;  %v880_v28 = vsub.f32 %v7970_v59, %v9881_v25  ;;  %v886_v34 = vsub.f32 %v7975_v63, %v9885_v17  ;;  %v9883_v18 = vand.u32 4294901760, %v7978_v19 }
  0xb0   :  { %v8149_v39 = vpack.c.bf16 %v869_v47, %v857_v26  ;;  %v893_v22 = vand.u32 4294901760, %v892_v33  ;;  %v9884_v14 = vand.u32 4294901760, %v7983_v12  ;;  %v9890_v47 = vand.u32 4294901760, %v7985_v30 }
  0xb1   :  { %v8155_v35 = vpack.c.bf16 %v875_v5, %v863_v62  ;;  %v881_v49 = vand.u32 4294901760, %v880_v28  ;;  %v887_v20 = vand.u32 4294901760, %v886_v34  ;;  %v898_v25 = vsub.f32 %v7978_v19, %v9883_v18 }
  0xb2   :  { %v9891_v26 = vand.u32 4294901760, %v7990_v31  ;;  %v904_v62 = vsub.f32 %v7983_v12, %v9884_v14  ;;  %v9892_v5 = vand.u32 4294901760, %v7992_v36  ;;  %v916_v33 = vsub.f32 %v7985_v30, %v9890_v47 }
  0xb3   :  { %v8163_v57 = vpack.c.bf16 %v893_v22, %v881_v49  ;;  %v899_v28 = vand.u32 4294901760, %v898_v25  ;;  %v9895_v22 = vand.u32 4294901760, %v8057_v45  ;;  %v9898_v14 = vand.u32 4294901760, %v8059_v32 }
  0xb4   :  { %v910_v34 = vsub.f32 %v7990_v31, %v9891_v26  ;;  %v905_v18 = vand.u32 4294901760, %v904_v62  ;;  %v922_v49 = vsub.f32 %v7992_v36, %v9892_v5  ;;  %v917_v25 = vand.u32 4294901760, %v916_v33 }
  0xb5   :  { %v8180_v17 = vpack.c.bf16 %v899_v28, %v887_v20  ;;  %v928_v26 = vsub.f32 %v8057_v45, %v9895_v22  ;;  %v940_v62 = vsub.f32 %v8059_v32, %v9898_v14  ;;  %v9903_v5 = vand.u32 4294901760, %v8063_v44 }
  0xb6   :  { %v911_v46 = vand.u32 4294901760, %v910_v34  ;;  %v923_v47 = vand.u32 4294901760, %v922_v49  ;;  %v8190_v40 = vpack.c.bf16 %v917_v25, %v905_v18  ;;  %v934_v20 = vsub.f32 %v8061_v37, %v9901_v29 }
  0xb7   :  { %v929_v33 = vand.u32 4294901760, %v928_v26  ;;  %v941_v34 = vand.u32 4294901760, %v940_v62  ;;  %v946_v49 = vsub.f32 %v8063_v44, %v9903_v5  ;;  %v9902_v13 = vand.u32 4294901760, %v8066_v0 }
  0xb8   :  { %v8195_v28 = vpack.c.bf16 %v923_v47, %v911_v46  ;;  %v935_v22 = vand.u32 4294901760, %v934_v20  ;;  %v9906_v14 = vand.u32 4294901760, %v8068_v1  ;;  %v9907_v18 = vand.u32 4294901760, %v8070_v6 }
  0xb9   :  { %v8203_v25 = vpack.c.bf16 %v941_v34, %v929_v33  ;;  %v947_v11 = vand.u32 4294901760, %v946_v49  ;;  %v9908_v29 = vand.u32 4294901760, %v8072_v38  ;;  %v952_v46 = vsub.f32 %v8066_v0, %v9902_v13 }
  0xba   :  { %v964_v47 = vsub.f32 %v8068_v1, %v9906_v14  ;;  %v958_v26 = vsub.f32 %v8070_v6, %v9907_v18  ;;  %v9913_v33 = vand.u32 4294901760, %v8076_v15  ;;  %v9918_v34 = vand.u32 4294901760, %v8078_v16 }
  0xbb   :  { %v8215_v62 = vpack.c.bf16 %v947_v11, %v935_v22  ;;  %v970_v20 = vsub.f32 %v8072_v38, %v9908_v29  ;;  %v953_v49 = vand.u32 4294901760, %v952_v46  ;;  %v9919_v22 = vand.u32 4294901760, %v8095_v4 }
  0xbc   :  { %v965_v13 = vand.u32 4294901760, %v964_v47  ;;  %v959_v5 = vand.u32 4294901760, %v958_v26  ;;  %v976_v18 = vsub.f32 %v8076_v15, %v9913_v33  ;;  %v988_v11 = vsub.f32 %v8078_v16, %v9918_v34 }
  0xbd   :  { %v971_v14 = vand.u32 4294901760, %v970_v20  ;;  %v982_v46 = vsub.f32 %v8088_v55, %v9920_v58  ;;  %v994_v20 = vsub.f32 %v8095_v4, %v9919_v22  ;;  %v6715_v34 = vpack.c.bf16 %v7927_v52, %v7925_v51 }
  0xbe   :  { %v6707_v29 = vpack.c.bf16 %v965_v13, %v953_v49  ;;  %v977_v26 = vand.u32 4294901760, %v976_v18  ;;  %v989_v48 = vand.u32 4294901760, %v988_v11  ;;  %v6717_v13 = vpack.c.bf16 %v7934_v3, %v7929_v56 }
  0xbf   :  { %v6709_v47 = vpack.c.bf16 %v971_v14, %v959_v5  ;;  %v983_v41 = vand.u32 4294901760, %v982_v46  ;;  %v995_v10 = vand.u32 4294901760, %v994_v20  ;;  %v6719_v49 = vpack.c.bf16 %v7940_v9, %v7938_v8 }
  0xc0   :  { %v6711_v33 = vpack.c.bf16 %v989_v48, %v977_v26  ;;  %v6721_v14 = vpack.c.bf16 %v7947_v24, %v7945_v23  ;;  %v6723_v5 = vpack.c.bf16 %v7956_v43, %v7954_v42  ;;  %v6725_v48 = vpack.c.bf16 %v7965_v54, %v7963_v53 }
  0xc1   :  { %v6713_v7 = vpack.c.bf16 %v995_v10, %v983_v41  ;;  %v6727_v10 = vpack.c.bf16 %v7972_v60, %v7970_v59  ;;  %v6729_v41 = vpack.c.bf16 %v7978_v19, %v7975_v63  ;;  %v6731_v18 = vpack.c.bf16 %v7985_v30, %v7983_v12 }
  0xc2   :  { %v6733_v11 = vpack.c.bf16 %v7992_v36, %v7990_v31  ;;  %v6735_v46 = vpack.c.bf16 %v8059_v32, %v8057_v45  ;;  %v6737_v26 = vpack.c.bf16 %v8063_v44, %v8061_v37  ;;  %v6739_v20 = vpack.c.bf16 %v8068_v1, %v8066_v0  ;;  %v8273_v45 = vld [vmem:[#allocation10] sm:$0xff] }
  0xc3   :  { %v6741_v22 = vpack.c.bf16 %v8072_v38, %v8070_v6  ;;  %v6743_v58 = vpack.c.bf16 %v8078_v16, %v8076_v15  ;;  %v6745_v30 = vpack.c.bf16 %v8095_v4, %v8088_v55  ;;  %v185_v12 = vlaneseq }
  0xc5   :  { %v8268_v36 = vshrl.u32 %v185_v12, 7 }
  0xc7   :  { %10102 = vst [vmem:[#allocation44_spill] sm:$0xff] %v8268_v36  ;;  %v8271_v32 = vsub.s32 0, %v8268_v36  ;;  %v10104_v36 = vmov 0.0  }
  0xc9   :  { %10103 = vst [vmem:[#allocation45_spill] sm:$0xff] %v8271_v32  ;;  %v188_v1 = vrot.slane %v8273_v45, %v8271_v32 }
 0x175   :  { %v673_v0 = vpop.f32.mrb[0].mxu0 }
 0x176   :  { %v7455_v44 = vadd.f32 %v673_v0, %v188_v1  ;;  %v5978_v38 = vpop.f32.mrb[1].mxu0  ;;  %v10105_v0 = vld [vmem:[#allocation16_spill] sm:$0xff]  ;;  %v10106_v1 = vld [vmem:[#allocation17_spill] sm:$0xff] }
 0x177   :  { %v10113_v38 = vld [vmem:[#allocation27_spill] sm:$0xff] }
 0x178   :  { %v677_v6 = vmax.f32 %v7455_v44, 0.0  ;;  %v10115_v44 = vld [vmem:[#allocation29_spill] sm:$0xff] }
 0x17a   :  { %v8277_v37 = vand.u32 4294901760, %v677_v6 }
 0x17c   :  { %v795_v16 = vsub.f32 %v677_v6, %v8277_v37  ;;  %v10110_v6 = vld [vmem:[#allocation21_spill] sm:$0xff] }
 0x17e   :  { %v796_v4 = vand.u32 4294901760, %v795_v16 }
 0x180   :  { %v797_v55 = vsub.f32 %v795_v16, %v796_v4 }
 0x182   :  { %v798_v12 = vand.u32 4294901760, %v797_v55  ;;  %v10118_v55 = vand.u32 4294901760, %v7925_v51  ;;  %v10125_v51 = vand.u32 4294901760, %v7945_v23  ;;  %v10131_v23 = vand.u32 4294901760, %v7970_v59 }
 0x184   :  { %799 = vmatmul.mubr.f32.vlgmr.msra.gmra.mrb[0].mxu1 %v798_v12 }
 0x185   :  { %6686 = vmatpush1.bf16.msra.mxu1 %v8120_v27  ;;  %1029 = vmatprep.mubr.f32.mxu1 %v10104_v36 }
 0x186   :  { %6688 = vmatprep.subr.bf16.mxu1 %v8122_v21  ;;  %v10117_v21 = vld [vmem:[#allocation39_spill] sm:$0xff] }
 0x189   :  { %6690 = vmatpush1.bf16.msra.mxu1 %v8140_v61  ;;  %v10121_v61 = vand.u32 4294901760, %v7929_v56  ;;  %v10127_v56 = vand.u32 4294901760, %v7954_v42  ;;  %v10134_v42 = vand.u32 4294901760, %v7978_v19  ;;  %v10146_v19 = vld [vmem:[#allocation33_spill] sm:$0xff] }
 0x18a   :  { %6692 = vmatprep.subr.bf16.mxu1 %v8149_v39  ;;  %v10114_v39 = vld [vmem:[#allocation28_spill] sm:$0xff] }
 0x18d   :  { %6694 = vmatpush1.bf16.msra.mxu1 %v8155_v35  ;;  %v10122_v35 = vand.u32 4294901760, %v7934_v3  ;;  %v10128_v3 = vand.u32 4294901760, %v7956_v43  ;;  %v10135_v43 = vld [vmem:[#allocation22_spill] sm:$0xff] }
 0x18e   :  { %6696 = vmatprep.subr.bf16.mxu1 %v8163_v57  ;;  %v10120_v57 = vld [vmem:[#allocation42_spill] sm:$0xff] }
 0x191   :  { %6698 = vmatpush1.bf16.msra.mxu1 %v8180_v17  ;;  %v10119_v17 = vand.u32 4294901760, %v7927_v52  ;;  %v10126_v52 = vand.u32 4294901760, %v7947_v24  ;;  %v10132_v24 = vand.u32 4294901760, %v7972_v60  ;;  %v10142_v60 = vld [vmem:[#allocation31_spill] sm:$0xff] }
 0x192   :  { %6700 = vmatprep.subr.bf16.mxu1 %v8190_v40  ;;  %v10108_v40 = vld [vmem:[#allocation19_spill] sm:$0xff] }
 0x193   :  { %v6779_v27 = vpack.c.bf16 %v10119_v17, %v10118_v55  ;;  %v10150_v17 = vld [vmem:[#allocation35_spill] sm:$0xff] }
 0x195   :  { %6702 = vmatpush1.bf16.msra.mxu1 %v8195_v28  ;;  %v6781_v28 = vpack.c.bf16 %v10122_v35, %v10121_v61  ;;  %v10152_v61 = vld [vmem:[#allocation36_spill] sm:$0xff] }
 0x196   :  { %6704 = vmatprep.subr.bf16.mxu1 %v8203_v25  ;;  %v10123_v25 = vand.u32 4294901760, %v7938_v8  ;;  %v10129_v8 = vand.u32 4294901760, %v7963_v53 }
 0x199   :  { %6706 = vmatpush1.bf16.msra.mxu1 %v8215_v62  ;;  %v10124_v62 = vand.u32 4294901760, %v7940_v9  ;;  %v10130_v9 = vand.u32 4294901760, %v7965_v54  ;;  %v10139_v54 = vand.u32 4294901760, %v7990_v31  ;;  %v10153_v31 = vand.u32 4294901760, %v10152_v61 }
 0x19a   :  { %6708 = vmatprep.subr.bf16.mxu1 %v6707_v29  ;;  %v10109_v29 = vld [vmem:[#allocation20_spill] sm:$0xff] }
 0x19d   :  { %6710 = vmatpush1.bf16.msra.mxu1 %v6709_v47  ;;  %v6791_v47 = vpack.c.bf16 %v10132_v24, %v10131_v23 }
 0x19e   :  { %6712 = vmatprep.subr.bf16.mxu1 %v6711_v33  ;;  %v6783_v33 = vpack.c.bf16 %v10124_v62, %v10123_v25  ;;  %v10156_v62 = vld [vmem:[#allocation38_spill] sm:$0xff] }
 0x1a1   :  { %6714 = vmatpush1.bf16.msra.mxu1 %v6713_v7  ;;  %v10107_v7 = vld [vmem:[#allocation18_spill] sm:$0xff] }
 0x1a2   :  { %6716 = vmatprep.subr.bf16.mxu1 %v6715_v34  ;;  %v6785_v34 = vpack.c.bf16 %v10126_v52, %v10125_v51  ;;  %v10158_v52 = vand.u32 4294901760, %v8076_v15 }
 0x1a4   :  { %1031 = vmatmul.mubr.f32.vlgmr.msra.gmra.mrb[0].mxu1 %v8277_v37 }
 0x1a5   :  { %6718 = vmatpush1.bf16.msra.mxu1 %v6717_v13  ;;  %1165 = vmatprep.mubr.f32.mxu1 %v10104_v36  ;;  %v10133_v13 = vand.u32 4294901760, %v7975_v63 }
 0x1a6   :  { %6720 = vmatprep.subr.bf16.mxu1 %v6719_v49 }
 0x1a7   :  { %v6793_v49 = vpack.c.bf16 %v10134_v42, %v10133_v13  ;;  %v152_v42 = vld [vmem:[%s9854_s7 + $0x40] sm:$0xff] }
 0x1a9   :  { %6722 = vmatpush1.bf16.msra.mxu1 %v6721_v14  ;;  %v10136_v14 = vand.u32 4294901760, %v10135_v43  ;;  %v1602_v43 = vand.u32 4294901760, %v152_v42 }
 0x1aa   :  { %6724 = vmatprep.subr.bf16.mxu1 %v6723_v5  ;;  %v10137_v5 = vld [vmem:[#allocation23_spill] sm:$0xff] }
 0x1ab   :  { %v10138_v53 = vand.u32 4294901760, %v10137_v5 }
 0x1ad   :  { %6726 = vmatpush1.bf16.msra.mxu1 %v6725_v48  ;;  %v6795_v48 = vpack.c.bf16 %v10138_v53, %v10136_v14  ;;  %v154_v53 = vld [vmem:[%s9854_s7 + $0x50] sm:$0xff] }
 0x1ae   :  { %6728 = vmatprep.subr.bf16.mxu1 %v6727_v10  ;;  %v10140_v10 = vld [vmem:[#allocation25_spill] sm:$0xff] }
 0x1af   :  { %v10141_v59 = vand.u32 4294901760, %v10140_v10 }
 0x1b1   :  { %6730 = vmatpush1.bf16.msra.mxu1 %v6729_v41  ;;  %v6797_v41 = vpack.c.bf16 %v10141_v59, %v10139_v54  ;;  %v1608_v54 = vand.u32 4294901760, %v154_v53 }
 0x1b2   :  { %6732 = vmatprep.subr.bf16.mxu1 %v6731_v18  ;;  %v10143_v18 = vand.u32 4294901760, %v10142_v60  ;;  %v157_v60 = vld [vmem:[%s9854_s7 + $0x68] sm:$0xff] }
 0x1b5   :  { %6734 = vmatpush1.bf16.msra.mxu1 %v6733_v11  ;;  %v10144_v11 = vld [vmem:[#allocation32_spill] sm:$0xff] }
 0x1b6   :  { %6736 = vmatprep.subr.bf16.mxu1 %v6735_v46  ;;  %v10145_v63 = vand.u32 4294901760, %v10144_v11  ;;  %v1617_v11 = vand.u32 4294901760, %v157_v60 }
 0x1b8   :  { %v6799_v46 = vpack.c.bf16 %v10145_v63, %v10143_v18 }
 0x1b9   :  { %6738 = vmatpush1.bf16.msra.mxu1 %v6737_v26  ;;  %v10147_v26 = vand.u32 4294901760, %v10146_v19 }
 0x1ba   :  { %6740 = vmatprep.subr.bf16.mxu1 %v6739_v20  ;;  %v10148_v20 = vld [vmem:[#allocation34_spill] sm:$0xff] }
 0x1bb   :  { %v10149_v12 = vand.u32 4294901760, %v10148_v20  ;;  %v159_v20 = vld [vmem:[%s9854_s7 + $0x78] sm:$0xff] }
 0x1bd   :  { %6742 = vmatpush1.bf16.msra.mxu1 %v6741_v22  ;;  %v6787_v22 = vpack.c.bf16 %v10128_v3, %v10127_v56  ;;  %v6801_v55 = vpack.c.bf16 %v10149_v12, %v10147_v26  ;;  %v158_v26 = vld [vmem:[%s9854_s7 + $0x70] sm:$0xff] }
 0x1be   :  { %6744 = vmatprep.subr.bf16.mxu1 %v6743_v58  ;;  %v10111_v58 = vld [vmem:[#allocation24_spill] sm:$0xff]  ;;  %v1620_v12 = vand.u32 4294901760, %v158_v26 }
 0x1c1   :  { %6746 = vmatpush1.bf16.msra.mxu1 %v6745_v30  ;;  %v10112_v30 = vld [vmem:[#allocation26_spill] sm:$0xff] }
 0x1c2   :  { %6748 = vmatprep.subr.bf16.mxu1 %v7923_v50 }
 0x1c4   :  { %1168 = vmatmul.mubr.f32.vlgmr.msra.gmra.mrb[0].mxu1 %v795_v16  ;;  %v10116_v16 = vld [vmem:[#allocation30_spill] sm:$0xff] }
 0x1c5   :  { %6750 = vmatpush1.bf16.msra.mxu1 %v7932_v2  ;;  %1270 = vmatprep.mubr.f32.mxu1 %v10104_v36 }
 0x1c6   :  { %6752 = vmatprep.subr.bf16.mxu1 %v10105_v0 }
 0x1c9   :  { %6754 = vmatpush1.bf16.msra.mxu1 %v10106_v1 }
 0x1ca   :  { %6756 = vmatprep.subr.bf16.mxu1 %v10107_v7 }
 0x1cd   :  { %6758 = vmatpush1.bf16.msra.mxu1 %v10108_v40 }
 0x1ce   :  { %6760 = vmatprep.subr.bf16.mxu1 %v10109_v29 }
 0x1d1   :  { %6762 = vmatpush1.bf16.msra.mxu1 %v10110_v6 }
 0x1d2   :  { %6764 = vmatprep.subr.bf16.mxu1 %v10111_v58 }
 0x1d5   :  { %6766 = vmatpush1.bf16.msra.mxu1 %v10112_v30 }
 0x1d6   :  { %6768 = vmatprep.subr.bf16.mxu1 %v10113_v38 }
 0x1d9   :  { %6770 = vmatpush1.bf16.msra.mxu1 %v10114_v39 }
 0x1da   :  { %6772 = vmatprep.subr.bf16.mxu1 %v10115_v44 }
 0x1dd   :  { %6774 = vmatpush1.bf16.msra.mxu1 %v10116_v16 }
 0x1de   :  { %6776 = vmatprep.subr.bf16.mxu1 %v10117_v21 }
 0x1e1   :  { %6778 = vmatpush1.bf16.msra.mxu1 %v10120_v57 }
 0x1e2   :  { %6780 = vmatprep.subr.bf16.mxu1 %v6779_v27  ;;  %v10151_v27 = vand.u32 4294901760, %v10150_v17 }
 0x1e4   :  { %1274 = vmatmul.mubr.f32.vlgmr.msra.gmra.mrb[0].mxu1 %v796_v4  ;;  %v6789_v4 = vpack.c.bf16 %v10130_v9, %v10129_v8  ;;  %v6803_v35 = vpack.c.bf16 %v10153_v31, %v10151_v27  ;;  %v10163_v9 = vld [vmem:[#allocation43_spill] sm:$0xff] }
 0x1e5   :  { %6782 = vmatpush1.bf16.msra.mxu1 %v6781_v28  ;;  %1440 = vmatprep.mubr.f32.mxu1 %v10104_v36  ;;  %v10154_v28 = vld [vmem:[#allocation37_spill] sm:$0xff] }
 0x1e6   :  { %6784 = vmatprep.subr.bf16.mxu1 %v6783_v33  ;;  %v10155_v25 = vand.u32 4294901760, %v10154_v28  ;;  %v10157_v33 = vand.u32 4294901760, %v10156_v62 }
 0x1e8   :  { %v6805_v51 = vpack.c.bf16 %v10157_v33, %v10155_v25 }
 0x1e9   :  { %6786 = vmatpush1.bf16.msra.mxu1 %v6785_v34  ;;  %v10159_v34 = vld [vmem:[#allocation40_spill] sm:$0xff] }
 0x1ea   :  { %6788 = vmatprep.subr.bf16.mxu1 %v6787_v22  ;;  %v10160_v56 = vand.u32 4294901760, %v10159_v34  ;;  %v10161_v22 = vld [vmem:[#allocation41_spill] sm:$0xff] }
 0x1eb   :  { %v10162_v8 = vand.u32 4294901760, %v10161_v22 }
 0x1ec   :  { %v6807_v3 = vpack.c.bf16 %v10160_v56, %v10158_v52 }
 0x1ed   :  { %6790 = vmatpush1.bf16.msra.mxu1 %v6789_v4  ;;  %v10164_v4 = vand.u32 4294901760, %v10163_v9 }
 0x1ee   :  { %6792 = vmatprep.subr.bf16.mxu1 %v6791_v47 }
 0x1ef   :  { %v6809_v23 = vpack.c.bf16 %v10164_v4, %v10162_v8 }
 0x1f1   :  { %6794 = vmatpush1.bf16.msra.mxu1 %v6793_v49  ;;  %v153_v49 = vld [vmem:[%s9854_s7 + $0x48] sm:$0xff] }
 0x1f2   :  { %6796 = vmatprep.subr.bf16.mxu1 %v6795_v48  ;;  %v1605_v14 = vand.u32 4294901760, %v153_v49  ;;  %v155_v48 = vld [vmem:[%s9854_s7 + $0x58] sm:$0xff] }
 0x1f3   :  { %v1611_v10 = vand.u32 4294901760, %v155_v48 }
 0x1f4   :  { %v8441_v5 = vpack.c.bf16 %v1605_v14, %v1602_v43 }
 0x1f5   :  { %6798 = vmatpush1.bf16.msra.mxu1 %v6797_v41  ;;  %v8451_v59 = vpack.c.bf16 %v1611_v10, %v1608_v54  ;;  %v156_v41 = vld [vmem:[%s9854_s7 + $0x60] sm:$0xff] }
 0x1f6   :  { %6800 = vmatprep.subr.bf16.mxu1 %v6799_v46  ;;  %v1614_v18 = vand.u32 4294901760, %v156_v41 }
 0x1f8   :  { %v8465_v19 = vpack.c.bf16 %v1617_v11, %v1614_v18 }
 0x1f9   :  { %6802 = vmatpush1.bf16.msra.mxu1 %v6801_v55  ;;  %v1623_v55 = vand.u32 4294901760, %v159_v20 }
 0x1fa   :  { %6804 = vmatprep.subr.bf16.mxu1 %v6803_v35 }
 0x1fb   :  { %v8481_v35 = vpack.c.bf16 %v1623_v55, %v1620_v12 }
 0x1fd   :  { %6806 = vmatpush1.bf16.msra.mxu1 %v6805_v51  ;;  %10166 = vst [vmem:[#allocation16_spill] sm:$0xff] %v8481_v35 }
 0x1fe   :  { %6808 = vmatprep.subr.bf16.mxu1 %v6807_v3 }
 0x201   :  { %6810 = vmatpush1.bf16.msra.mxu1 %v6809_v23 }
 0x202   :  { %6812 = vmatprep.subr.bf16.mxu1 %v7923_v50  ;;  %v144_v50 = vld [vmem:[%s9854_s7] sm:$0xff] }
 0x203   :  { %v1578_v15 = vand.u32 4294901760, %v144_v50 }
 0x204   :  { %1442 = vmatmul.mubr.f32.vlgmr.msra.gmra.mrb[0].mxu1 %v8277_v37 }
 0x205   :  { %6814 = vmatpush1.bf16.msra.mxu1 %v7932_v2  ;;  %1544 = vmatprep.mubr.f32.mxu1 %v10104_v36  ;;  %v145_v2 = vld [vmem:[%s9854_s7 + $0x8] sm:$0xff]  ;;  %v8461_v63 = vsub.f32 %v144_v50, %v1578_v15 }
 0x206   :  { %6816 = vmatprep.subr.bf16.mxu1 %v10105_v0  ;;  %v1581_v0 = vand.u32 4294901760, %v145_v2 }
 0x207   :  { %v9953_v17 = vand.u32 4294901760, %v8461_v63 }
 0x208   :  { %v8463_v46 = vsub.f32 %v145_v2, %v1581_v0 }
 0x209   :  { %6818 = vmatpush1.bf16.msra.mxu1 %v10106_v1  ;;  %v8401_v1 = vpack.c.bf16 %v1581_v0, %v1578_v15  ;;  %v1672_v28 = vsub.f32 %v8461_v63, %v9953_v17  ;;  %v8511_v0 = vsub.f32 %v152_v42, %v1602_v43  ;;  %v7570_v17 = vld [vmem:[#allocation2] sm:$0xff] }
 0x20a   :  { %6820 = vmatprep.subr.bf16.mxu1 %v10107_v7  ;;  %v146_v7 = vld [vmem:[%s9854_s7 + $0x10] sm:$0xff]  ;;  %v9952_v27 = vand.u32 4294901760, %v8463_v46 }
 0x20b   :  { %6845 = vmatpush3.bf16.msra.mxu0 %v8401_v1  ;;  %v1673_v62 = vand.u32 4294901760, %v1672_v28 }
 0x20c   :  { %v1679_v25 = vsub.f32 %v8463_v46, %v9952_v27  ;;  %v109_v27 = vld [vmem:[#allocation7 + $0x28] sm:$0xff] }
 0x20d   :  { %6822 = vmatpush1.bf16.msra.mxu1 %v10108_v40  ;;  %v1584_v40 = vand.u32 4294901760, %v146_v7 }
 0x20e   :  { %6824 = vmatprep.subr.bf16.mxu1 %v10109_v29  ;;  %v1680_v33 = vand.u32 4294901760, %v1679_v25 }
 0x20f   :  { %v8477_v61 = vsub.f32 %v146_v7, %v1584_v40  ;;  %v8513_v7 = vsub.f32 %v153_v49, %v1605_v14 }
 0x210   :  { %v8497_v3 = vpack.c.bf16 %v1680_v33, %v1673_v62 }
 0x211   :  { %6826 = vmatpush1.bf16.msra.mxu1 %v10110_v6  ;;  %v10165_v6 = vmov 0.0|0.0   ;;  %v9950_v51 = vand.u32 4294901760, %v8477_v61 }
 0x212   :  { %6828 = vmatprep.subr.bf16.mxu1 %v10111_v58  ;;  %6846 = vmatprep.subr.bf16.mxu0 %v10165_v6 }
 0x213   :  { %v1686_v22 = vsub.f32 %v8477_v61, %v9950_v51 }
 0x215   :  { %6830 = vmatpush1.bf16.msra.mxu1 %v10112_v30  ;;  %v148_v30 = vld [vmem:[%s9854_s7 + $0x20] sm:$0xff]  ;;  %v1687_v9 = vand.u32 4294901760, %v1686_v22 }
 0x216   :  { %6832 = vmatprep.subr.bf16.mxu1 %v10113_v38  ;;  %v149_v38 = vld [vmem:[%s9854_s7 + $0x28] sm:$0xff] }
 0x219   :  { %6834 = vmatpush1.bf16.msra.mxu1 %v10114_v39  ;;  %v1590_v39 = vand.u32 4294901760, %v148_v30 }
 0x21a   :  { %6836 = vmatprep.subr.bf16.mxu1 %v10115_v44  ;;  %v1593_v44 = vand.u32 4294901760, %v149_v38 }
 0x21b   :  { %v8493_v34 = vsub.f32 %v148_v30, %v1590_v39  ;;  %v8521_v30 = vsub.f32 %v157_v60, %v1617_v11 }
 0x21c   :  { %v8495_v56 = vsub.f32 %v149_v38, %v1593_v44  ;;  %v8523_v38 = vsub.f32 %v158_v26, %v1620_v12 }
 0x21d   :  { %6838 = vmatpush1.bf16.msra.mxu1 %v10116_v16  ;;  %v8421_v16 = vpack.c.bf16 %v1593_v44, %v1590_v39  ;;  %v9948_v23 = vand.u32 4294901760, %v8493_v34  ;;  %v8525_v39 = vsub.f32 %v159_v20, %v1623_v55 }
 0x21e   :  { %6840 = vmatprep.subr.bf16.mxu1 %v10117_v21  ;;  %v150_v21 = vld [vmem:[%s9854_s7 + $0x30] sm:$0xff]  ;;  %v9947_v50 = vand.u32 4294901760, %v8495_v56 }
 0x21f   :  { %v1596_v24 = vand.u32 4294901760, %v150_v21 }
 0x221   :  { %6842 = vmatpush1.bf16.msra.mxu1 %v10120_v57  ;;  %v151_v57 = vld [vmem:[%s9854_s7 + $0x38] sm:$0xff]  ;;  %v8507_v2 = vsub.f32 %v150_v21, %v1596_v24  ;;  %v1700_v21 = vsub.f32 %v8493_v34, %v9948_v23 }
 0x222   :  { %v1599_v47 = vand.u32 4294901760, %v151_v57 }
 0x223   :  { %v1701_v42 = vand.u32 4294901760, %v1700_v21 }
 0x224   :  { %1546 = vmatmul.mubr.f32.vlgmr.msra.gmra.mrb[0].mxu1 %v8277_v37  ;;  %v147_v37 = vld [vmem:[%s9854_s7 + $0x18] sm:$0xff]  ;;  %v8431_v13 = vpack.c.bf16 %v1599_v47, %v1596_v24  ;;  %v8509_v15 = vsub.f32 %v151_v57, %v1599_v47  ;;  %v1707_v57 = vsub.f32 %v8495_v56, %v9947_v50  ;;  %v9946_v24 = vand.u32 4294901760, %v8507_v2 }
 0x225   :  { %v1587_v29 = vand.u32 4294901760, %v147_v37 }
 0x226   :  { %v9945_v47 = vand.u32 4294901760, %v8509_v15  ;;  %v1708_v49 = vand.u32 4294901760, %v1707_v57  ;;  %v1714_v43 = vsub.f32 %v8507_v2, %v9946_v24 }
 0x227   :  { %v8411_v58 = vpack.c.bf16 %v1587_v29, %v1584_v40  ;;  %v8479_v31 = vsub.f32 %v147_v37, %v1587_v29  ;;  %v8515_v37 = vsub.f32 %v154_v53, %v1608_v54  ;;  %v8517_v40 = vsub.f32 %v155_v48, %v1611_v10 }
 0x228   :  { %v8519_v29 = vsub.f32 %v156_v41, %v1614_v18  ;;  %v1721_v14 = vsub.f32 %v8509_v15, %v9945_v47  ;;  %v8543_v53 = vpack.c.bf16 %v1708_v49, %v1701_v42  ;;  %v1715_v48 = vand.u32 4294901760, %v1714_v43 }
 0x229   :  { %6848 = vmatpush3.bf16.msra.mxu0 %v8411_v58  ;;  %v9949_v52 = vand.u32 4294901760, %v8479_v31  ;;  %v9944_v54 = vand.u32 4294901760, %v8511_v0  ;;  %v9943_v10 = vand.u32 4294901760, %v8513_v7  ;;  %v9942_v12 = vand.u32 4294901760, %v8515_v37 }
 0x22a   :  { %6849 = vmatprep.subr.bf16.mxu0 %v10165_v6  ;;  %v1722_v41 = vand.u32 4294901760, %v1721_v14  ;;  %v9941_v55 = vand.u32 4294901760, %v8517_v40  ;;  %v9938_v43 = vand.u32 4294901760, %v8523_v38  ;;  %v9937_v14 = vand.u32 4294901760, %v8525_v39 }
 0x22b   :  { %v1693_v8 = vsub.f32 %v8479_v31, %v9949_v52  ;;  %v1728_v60 = vsub.f32 %v8511_v0, %v9944_v54  ;;  %v1735_v18 = vsub.f32 %v8513_v7, %v9943_v10  ;;  %v1742_v25 = vsub.f32 %v8515_v37, %v9942_v12 }
 0x22c   :  { %v8553_v11 = vpack.c.bf16 %v1722_v41, %v1715_v48  ;;  %v1749_v62 = vsub.f32 %v8517_v40, %v9941_v55  ;;  %v1770_v41 = vsub.f32 %v8523_v38, %v9938_v43 }
 0x22d   :  { %6851 = vmatpush3.bf16.msra.mxu0 %v8421_v16  ;;  %v1694_v4 = vand.u32 4294901760, %v1693_v8  ;;  %v1729_v26 = vand.u32 4294901760, %v1728_v60  ;;  %v1736_v20 = vand.u32 4294901760, %v1735_v18  ;;  %v1743_v33 = vand.u32 4294901760, %v1742_v25 }
 0x22e   :  { %6852 = vmatprep.subr.bf16.mxu0 %v10165_v6  ;;  %v1750_v22 = vand.u32 4294901760, %v1749_v62  ;;  %v9940_v8 = vand.u32 4294901760, %v8519_v29  ;;  %v1777_v60 = vsub.f32 %v8525_v39, %v9937_v14  ;;  %v1771_v18 = vand.u32 4294901760, %v1770_v41  ;;  %v10167_v41 = vld [vmem:[#allocation44_spill] sm:$0xff] }
 0x22f   :  { %v8527_v44 = vpack.c.bf16 %v1694_v4, %v1687_v9  ;;  %v8557_v28 = vpack.c.bf16 %v1736_v20, %v1729_v26  ;;  %v9939_v9 = vand.u32 4294901760, %v8521_v30 }
 0x230   :  { %v8567_v4 = vpack.c.bf16 %v1750_v22, %v1743_v33  ;;  %v1756_v21 = vsub.f32 %v8519_v29, %v9940_v8  ;;  %v1778_v26 = vand.u32 4294901760, %v1777_v60  ;;  %v9951_v60 = vsub.s32 5, %v10167_v41 }
 0x231   :  { %6854 = vmatpush3.bf16.msra.mxu0 %v8431_v13  ;;  %v1763_v57 = vsub.f32 %v8521_v30, %v9939_v9 }
 0x232   :  { %6855 = vmatprep.subr.bf16.mxu0 %v10165_v6  ;;  %v1757_v42 = vand.u32 4294901760, %v1756_v21  ;;  %v8585_v20 = vpack.c.bf16 %v1778_v26, %v1771_v18  ;;  %v8605_v18 = vsub.s32 1, %v10167_v41  ;;  %v686_v26 = vrot.slane %v8273_v45, %v9951_v60  ;;  %v108_v60 = vld [vmem:[#allocation7 + $0x20] sm:$0xff] }
 0x233   :  { %v1764_v49 = vand.u32 4294901760, %v1763_v57 }
 0x234   :  { %10168 = vst [vmem:[#allocation17_spill] sm:$0xff] %v8605_v18  ;;  %v682_v14 = vrot.slane %v8273_v45, %v8605_v18  ;;  %v696_v43 = vrot.slane %v686_v26, %v8605_v18  ;;  %v161_v45 = vld [vmem:[%s9851_s4] sm:$0x3]  ;;  %v2225_v26 = vand.u32 4294901760, %v108_v60 }
 0x235   :  { %6857 = vmatpush3.bf16.msra.mxu0 %v8441_v5  ;;  %v8577_v48 = vpack.c.bf16 %v1764_v49, %v1757_v42  ;;  %v110_v49 = vld [vmem:[#allocation7 + $0x30] sm:$0xff]  ;;  %v111_v42 = vld [vmem:[#allocation7 + $0x38] sm:$0xff] }
 0x236   :  { %6858 = vmatprep.subr.bf16.mxu0 %v10165_v6  ;;  %v692_v9 = vrot.slane %v682_v14, %v8605_v18  ;;  %v2228_v14 = vand.u32 4294901760, %v109_v27  ;;  %v2231_v57 = vand.u32 4294901760, %v110_v49 }
 0x239   :  { %6860 = vmatpush3.bf16.msra.mxu0 %v8451_v59 }
 0x23a   :  { %6861 = vmatprep.subr.bf16.mxu0 %v10165_v6 }
 0x23d   :  { %6863 = vmatpush3.bf16.msra.mxu0 %v8465_v19 }
 0x23e   :  { %6864 = vmatprep.subr.bf16.mxu0 %v10165_v6 }
 0x241   :  { %6866 = vmatpush3.bf16.msra.mxu0 %v8481_v35 }
 0x242   :  { %6867 = vmatprep.subr.bf16.mxu0 %v10165_v6 }
 0x2f7   :  { %v1547_v8 = vpop.f32.mrb[0].mxu1 }
 0x2f8   :  { %v1549_v55 = vpop.f32.mrb[1].mxu1  ;;  %v7456_v10 = vadd.f32 %v1547_v8, %v692_v9 }
 0x2f9   :  { %v7457_v12 = vadd.f32 %v1549_v55, %v696_v43  ;;  %v2219_v55 = vsel %vm168_vm1, %v7570_v17, 0 }
 0x2fa   :  { %v1558_v24 = vmul.f32 %v7456_v10, %v7456_v10  ;;  %v8618_v8 = vand.u32 4294901760, %v2219_v55 }
 0x2fb   :  { %v1552_v54 = vand.u32 2147483647, %v7457_v12 }
 0x2fc   :  { %v8630_v17 = vsub.f32 %v2219_v55, %v8618_v8 }
 0x2fd   :  { %v1553_v47 = vsub.f32 0.0, %v1552_v54  ;;  %v7571_v54 = vld [vmem:[#allocation2 + $0x8] sm:$0xff] }
 0x2fe   :  { %v2222_v12 = vsel %vm168_vm1, %v7571_v54, 0  ;;  %v2234_v54 = vand.u32 4294901760, %v111_v42 }
 0x2ff   :  { %v1554_v50 = vmul.f32 0.5, %v1553_v47  ;;  %v1557_v23 = vadd.f32 1.0, %v1553_v47 }
 0x301   :  { %v1555_v52 = vmul.f32 1.442695, %v1554_v50  ;;  %v1559_v51 = vsub.f32 %v1557_v23, %v1558_v24  ;;  %v8621_v50 = vpack.c.bf16 %v2228_v14, %v2225_v26  ;;  %v8625_v23 = vsub.f32 %v108_v60, %v2225_v26 }
 0x302   :  { %v8627_v24 = vsub.f32 %v109_v27, %v2228_v14  ;;  %v8642_v14 = vpack.c.bf16 %v2234_v54, %v2231_v57 }
 0x303   :  { %7566 = vpow2.f32 %v1555_v52  ;;  %v8623_v52 = vand.u32 4294901760, %v2222_v12  ;;  %6988 = vmatprep.subr.bf16.mxu1 %v8621_v50  ;;  %v9954_v22 = vand.u32 4294901760, %v8625_v23 }
 0x304   :  { %6990 = vmatpush3.bf16.msra.mxu1 %v8621_v50  ;;  %v2323_v26 = vand.u32 4294901760, %v8627_v24 }
 0x305   :  { %v8634_v21 = vsub.f32 %v2222_v12, %v8623_v52  ;;  %v2317_v12 = vsub.f32 %v8625_v23, %v9954_v22  ;;  %6992 = vmatprep.subr.bf16.mxu1 %v8642_v14 }
 0x307   :  { %v9960_v55 = vand.u32 4294901760, %v8634_v21 }
 0x308   :  { %6994 = vmatpush3.bf16.msra.mxu1 %v8642_v14 }
 0x30d   :  { %v7567_v47 = vpop.eup %7566 }
 0x30e   :  { %v1560_v9 = vmul.f32 %v7567_v47, %v7567_v47  ;;  %v1571_v43 = vmul.f32 %v7567_v47, %v161_v45  ;;  %v2295_v45 = vand.u32 4294901760, %v8630_v17  ;;  %v2329_v47 = vsub.f32 %v110_v49, %v2231_v57 }
 0x30f   :  { %v2336_v49 = vsub.f32 %v111_v42, %v2234_v54 }
 0x310   :  { %v8637_v60 = vsub.f32 %v1559_v51, %v1560_v9  ;;  %v1572_v27 = vadd.f32 %v7456_v10, %v1571_v43  ;;  %v2296_v51 = vsub.f32 %v8630_v17, %v2295_v45  ;;  %v2306_v10 = vsub.f32 %v8634_v21, %v9960_v55 }
 0x311   :  { %v2318_v9 = vand.u32 4294901760, %v2317_v12  ;;  %v2324_v43 = vsub.f32 %v8627_v24, %v2323_v26  ;;  %v2330_v57 = vand.u32 4294901760, %v2329_v47  ;;  %v2337_v41 = vand.u32 4294901760, %v2336_v49 }
 0x312   :  { %10169 = vst [vmem:[#allocation18_spill] sm:$0xff] %v8637_v60  ;;  %v8648_v33 = vand.u32 4294901760, %v1572_v27  ;;  %v2297_v25 = vand.u32 4294901760, %v2296_v51  ;;  %v2307_v22 = vand.u32 4294901760, %v2306_v10 }
 0x313   :  { %v2325_v60 = vand.u32 4294901760, %v2324_v43  ;;  %v2331_v18 = vsub.f32 %v2329_v47, %v2330_v57  ;;  %v2338_v35 = vsub.f32 %v2336_v49, %v2337_v41 }
 0x314   :  { %v8657_v62 = vsub.f32 %v1572_v27, %v8648_v33  ;;  %6197 = vmatprep.mubr.f32.mxu1 %v2297_v25  ;;  %v7003_v25 = vpack.c.bf16 %v8627_v24, %v8625_v23  ;;  %v10183_v24 = vand.u32 4294901760, %v8477_v61 }
 0x315   :  { %6198 = vmatmul.mubr.f32.vlgmr.msra.gmra.mrb[2].mxu1 %v2307_v22  ;;  %v6995_v55 = vpack.c.bf16 %v2325_v60, %v2318_v9  ;;  %v2332_v27 = vand.u32 4294901760, %v2331_v18  ;;  %v2339_v42 = vand.u32 4294901760, %v2338_v35  ;;  %v7007_v22 = vpack.c.bf16 %v2336_v49, %v2329_v47 }
 0x316   :  { %v1660_v32 = vand.u32 4294901760, %v8657_v62  ;;  %6208 = vmatprep.mubr.f32.mxu1 %v8618_v8  ;;  %v10170_v35 = vand.u32 4294901760, %v8625_v23  ;;  %v10179_v18 = vpack.c.bf16 %v8525_v39, %v8523_v38  ;;  %v10188_v47 = vand.u32 4294901760, %v8509_v15 }
 0x317   :  { %6996 = vmatprep.subr.bf16.mxu1 %v6995_v55  ;;  %v6999_v54 = vpack.c.bf16 %v2339_v42, %v2332_v27  ;;  %v10190_v27 = vand.u32 4294901760, %v8513_v7 }
 0x318   :  { %v1661_v12 = vsub.f32 %v8657_v62, %v1660_v32  ;;  %6998 = vmatpush3.bf16.msra.mxu1 %v6995_v55  ;;  %v10187_v55 = vand.u32 4294901760, %v8507_v2 }
 0x319   :  { %7000 = vmatprep.subr.bf16.mxu1 %v6999_v54 }
 0x31a   :  { %v1662_v51 = vand.u32 4294901760, %v1661_v12  ;;  %v6949_v10 = vpack.c.bf16 %v10188_v47, %v10187_v55  ;;  %v10189_v12 = vand.u32 4294901760, %v8511_v0 }
 0x31c   :  { %6012 = vmatmul.mubr.f32.vlgmr.msra.gmra.mrb[2].mxu0 %v1662_v51  ;;  %7002 = vmatpush3.bf16.msra.mxu1 %v6999_v54  ;;  %v6952_v51 = vpack.c.bf16 %v10190_v27, %v10189_v12 }
 0x31d   :  { %6869 = vmatpush3.bf16.msra.mxu0 %v8497_v3  ;;  %6046 = vmatprep.mubr.msk.f32.mxu0 %vm7727_vm0, %v10104_v36  ;;  %v7019_v3 = vpack.c.bf16 %v2323_v26, %v10170_v35  ;;  %v2832_v26 = vld [vmem:[%s9850_s3 + $0x10] sm:$0xff] }
 0x31e   :  { %6870 = vmatprep.subr.bf16.mxu0 %v10165_v6  ;;  %7004 = vmatprep.subr.bf16.mxu1 %v7003_v25 }
 0x31f   :  { %6209 = vmatmul.mubr.f32.vlgmr.msra.gmra.mrb[2].mxu1 %v8623_v52 }
 0x320   :  { %7006 = vmatpush3.bf16.msra.mxu1 %v7003_v25  ;;  %6219 = vmatprep.mubr.f32.mxu1 %v8630_v17  ;;  %v10184_v17 = vand.u32 4294901760, %v8479_v31  ;;  %v10191_v25 = vand.u32 4294901760, %v8515_v37 }
 0x321   :  { %6872 = vmatpush3.bf16.msra.mxu0 %v8527_v44  ;;  %7008 = vmatprep.subr.bf16.mxu1 %v7007_v22  ;;  %v7023_v44 = vpack.c.bf16 %v2337_v41, %v2330_v57  ;;  %v10178_v41 = vpack.c.bf16 %v8521_v30, %v8519_v29 }
 0x322   :  { %6873 = vmatprep.subr.bf16.mxu0 %v10165_v6  ;;  %v6943_v60 = vpack.c.bf16 %v10184_v17, %v10183_v24 }
 0x324   :  { %7010 = vmatpush3.bf16.msra.mxu1 %v7007_v22  ;;  %v10192_v22 = vand.u32 4294901760, %v8517_v40 }
 0x325   :  { %6875 = vmatpush3.bf16.msra.mxu0 %v8543_v53  ;;  %7012 = vmatprep.subr.bf16.mxu1 %v8621_v50  ;;  %v10171_v53 = vand.u32 4294901760, %v8634_v21 }
 0x326   :  { %6876 = vmatprep.subr.bf16.mxu0 %v10165_v6  ;;  %v6955_v35 = vpack.c.bf16 %v10192_v22, %v10191_v25 }
 0x327   :  { %6220 = vmatmul.mubr.f32.vlgmr.msra.gmra.mrb[2].mxu1 %v8634_v21  ;;  %v10177_v21 = vpack.c.bf16 %v8517_v40, %v8515_v37  ;;  %v10195_v37 = vand.u32 4294901760, %v8523_v38  ;;  %v10196_v40 = vand.u32 4294901760, %v8525_v39 }
 0x328   :  { %7014 = vmatpush3.bf16.msra.mxu1 %v8621_v50  ;;  %6230 = vmatprep.mubr.f32.mxu1 %v2295_v45 }
 0x329   :  { %6878 = vmatpush3.bf16.msra.mxu0 %v8553_v11  ;;  %7016 = vmatprep.subr.bf16.mxu1 %v8642_v14  ;;  %v10172_v11 = vpack.c.bf16 %v8463_v46, %v8461_v63 }
 0x32a   :  { %6879 = vmatprep.subr.bf16.mxu0 %v10165_v6 }
 0x32c   :  { %7018 = vmatpush3.bf16.msra.mxu1 %v8642_v14 }
 0x32d   :  { %6881 = vmatpush3.bf16.msra.mxu0 %v8557_v28  ;;  %7020 = vmatprep.subr.bf16.mxu1 %v7019_v3  ;;  %v10173_v28 = vpack.c.bf16 %v8479_v31, %v8477_v61  ;;  %v2827_v61 = vld [vmem:[%s9849_s2 + $0x8] sm:$0xff]  ;;  %v2828_v31 = vld [vmem:[%s9849_s2 + $0x10] sm:$0xff] }
 0x32e   :  { %6882 = vmatprep.subr.bf16.mxu0 %v10165_v6  ;;  %v2836_v57 = vsub.f32 %v2832_v26, %v2828_v31 }
 0x32f   :  { %6231 = vmatmul.mubr.f32.vlgmr.msra.gmra.mrb[2].mxu1 %v10171_v53 }
 0x330   :  { %7022 = vmatpush3.bf16.msra.mxu1 %v7019_v3  ;;  %6241 = vmatprep.mubr.f32.mxu1 %v8618_v8  ;;  %v10193_v3 = vand.u32 4294901760, %v8519_v29 }
 0x331   :  { %6884 = vmatpush3.bf16.msra.mxu0 %v8567_v4  ;;  %7024 = vmatprep.subr.bf16.mxu1 %v7023_v44  ;;  %v10174_v4 = vpack.c.bf16 %v8495_v56, %v8493_v34 }
 0x332   :  { %6885 = vmatprep.subr.bf16.mxu0 %v10165_v6 }
 0x334   :  { %7026 = vmatpush3.bf16.msra.mxu1 %v7023_v44  ;;  %v10194_v44 = vand.u32 4294901760, %v8521_v30 }
 0x335   :  { %6887 = vmatpush3.bf16.msra.mxu0 %v8577_v48  ;;  %7028 = vmatprep.subr.bf16.mxu1 %v8621_v50  ;;  %v10175_v48 = vpack.c.bf16 %v8509_v15, %v8507_v2  ;;  %v2847_v15 = vsel %vm168_vm1, %v2836_v57, 0.0 }
 0x336   :  { %6888 = vmatprep.subr.bf16.mxu0 %v10165_v6  ;;  %v6958_v53 = vpack.c.bf16 %v10194_v44, %v10193_v3 }
 0x337   :  { %6242 = vmatmul.mubr.f32.vlgmr.msra.gmra.mrb[2].mxu1 %v8623_v52 }
 0x338   :  { %7030 = vmatpush3.bf16.msra.mxu1 %v8621_v50  ;;  %6252 = vmatprep.mubr.f32.mxu1 %v8618_v8  ;;  %v10180_v8 = vld [vmem:[#allocation16_spill] sm:$0xff]  ;;  %v10181_v50 = vand.u32 4294901760, %v8461_v63  ;;  %v10185_v63 = vand.u32 4294901760, %v8493_v34  ;;  %v2829_v34 = vld [vmem:[%s9849_s2 + $0x18] sm:$0xff] }
 0x339   :  { %6890 = vmatpush3.bf16.msra.mxu0 %v8585_v20  ;;  %7032 = vmatprep.subr.bf16.mxu1 %v8642_v14  ;;  %v10176_v20 = vpack.c.bf16 %v8513_v7, %v8511_v0 }
 0x33a   :  { %6891 = vmatprep.subr.bf16.mxu0 %v10165_v6 }
 0x33c   :  { %6047 = vmatmul.mubr.f32.vlgmr.msra.gmra.mrb[2].mxu0 %v8648_v33  ;;  %7034 = vmatpush3.bf16.msra.mxu1 %v8642_v14  ;;  %v2833_v14 = vld [vmem:[%s9850_s3 + $0x18] sm:$0xff] }
 0x33d   :  { %6893 = vmatpush3.bf16.msra.mxu0 %v10172_v11  ;;  %6081 = vmatprep.mubr.msk.f32.mxu0 %vm7727_vm0, %v10104_v36  ;;  %v2837_v49 = vsub.f32 %v2833_v14, %v2829_v34 }
 0x33e   :  { %6894 = vmatprep.subr.bf16.mxu0 %v10165_v6 }
 0x33f   :  { %6253 = vmatmul.mubr.f32.vlgmr.msra.gmra.mrb[2].mxu1 %v8623_v52  ;;  %v10182_v52 = vand.u32 4294901760, %v8463_v46  ;;  %v10186_v46 = vand.u32 4294901760, %v8495_v56  ;;  %v2830_v56 = vld [vmem:[%s9850_s3] sm:$0xff]  ;;  %v2848_v54 = vsel %vm168_vm1, %v2837_v49, 0.0 }
 0x340   :  { %3465 = vmatprep.mubr.f32.mxu1 %v10104_v36  ;;  %v2849_v7 = vadd.f32 %v2848_v54, %v2847_v15 }
 0x341   :  { %6896 = vmatpush3.bf16.msra.mxu0 %v10173_v28  ;;  %v6940_v23 = vpack.c.bf16 %v10182_v52, %v10181_v50  ;;  %v6946_v45 = vpack.c.bf16 %v10186_v46, %v10185_v63  ;;  %v2767_v52 = vld [vmem:[#allocation7 + $0x48] sm:$0xff] }
 0x342   :  { %6897 = vmatprep.subr.bf16.mxu0 %v10165_v6  ;;  %v2850_v28 = vrot.slane %v2849_v7, 4  ;;  %v2868_v24 = vand.u32 4294901760, %v2767_v52 }
 0x344   :  { %v2952_v46 = vsub.f32 %v2767_v52, %v2868_v24 }
 0x345   :  { %6899 = vmatpush3.bf16.msra.mxu0 %v10174_v4  ;;  %v6961_v4 = vpack.c.bf16 %v10196_v40, %v10195_v37  ;;  %v2781_v37 = vld [vmem:[#allocation8 + $0x138] sm:$0xff] }
 0x346   :  { %6900 = vmatprep.subr.bf16.mxu0 %v10165_v6 }
 0x349   :  { %6902 = vmatpush3.bf16.msra.mxu0 %v10175_v48 }
 0x34a   :  { %6903 = vmatprep.subr.bf16.mxu0 %v10165_v6 }
 0x34d   :  { %6905 = vmatpush3.bf16.msra.mxu0 %v10176_v20  ;;  %v2851_v20 = vadd.f32 %v2850_v28, %v2849_v7  ;;  %v2774_v7 = vld [vmem:[#allocation8 + $0x100] sm:$0xff]  ;;  %v2779_v28 = vld [vmem:[#allocation8 + $0x128] sm:$0xff] }
 0x34e   :  { %6906 = vmatprep.subr.bf16.mxu0 %v10165_v6 }
 0x34f   :  { %v2852_v30 = vrot.slane %v2851_v20, 2 }
 0x351   :  { %6908 = vmatpush3.bf16.msra.mxu0 %v10177_v21  ;;  %v2853_v39 = vadd.f32 %v2852_v30, %v2851_v20  ;;  %v2778_v20 = vld [vmem:[#allocation8 + $0x120] sm:$0xff]  ;;  %v2783_v30 = vld [vmem:[#allocation8 + $0x148] sm:$0xff] }
 0x352   :  { %6909 = vmatprep.subr.bf16.mxu0 %v10165_v6 }
 0x355   :  { %6911 = vmatpush3.bf16.msra.mxu0 %v10178_v41  ;;  %v2854_v41 = vrot.slane %v2853_v39, 1 }
 0x356   :  { %6912 = vmatprep.subr.bf16.mxu0 %v10165_v6 }
 0x357   :  { %v2855_v50 = vadd.f32 %v2854_v41, %v2853_v39  ;;  %v2782_v41 = vld [vmem:[#allocation8 + $0x140] sm:$0xff] }
 0x359   :  { %6914 = vmatpush3.bf16.msra.mxu0 %v10179_v18 }
 0x35a   :  { %6915 = vmatprep.subr.bf16.mxu0 %v10165_v6 }
 0x35c   :  { %6082 = vmatmul.mubr.f32.vlgmr.msra.gmra.mrb[2].mxu0 %v8657_v62  ;;  %v2831_v62 = vld [vmem:[%s9850_s3 + $0x8] sm:$0xff] }
 0x35d   :  { %6917 = vmatpush3.bf16.msra.mxu0 %v8401_v1  ;;  %6116 = vmatprep.mubr.msk.f32.mxu0 %vm7727_vm0, %v10104_v36  ;;  %v2835_v43 = vsub.f32 %v2831_v62, %v2827_v61 }
 0x35e   :  { %6918 = vmatprep.subr.bf16.mxu0 %v10165_v6 }
 0x35f   :  { %v2839_v2 = vsel %vm168_vm1, %v2835_v43, 0.0 }
 0x361   :  { %6920 = vmatpush3.bf16.msra.mxu0 %v8411_v58 }
 0x362   :  { %6921 = vmatprep.subr.bf16.mxu0 %v10165_v6 }
 0x365   :  { %6923 = vmatpush3.bf16.msra.mxu0 %v8421_v16 }
 0x366   :  { %6924 = vmatprep.subr.bf16.mxu0 %v10165_v6 }
 0x369   :  { %6926 = vmatpush3.bf16.msra.mxu0 %v8431_v13 }
 0x36a   :  { %6927 = vmatprep.subr.bf16.mxu0 %v10165_v6 }
 0x36d   :  { %6929 = vmatpush3.bf16.msra.mxu0 %v8441_v5 }
 0x36e   :  { %6930 = vmatprep.subr.bf16.mxu0 %v10165_v6 }
 0x371   :  { %6932 = vmatpush3.bf16.msra.mxu0 %v8451_v59 }
 0x372   :  { %6933 = vmatprep.subr.bf16.mxu0 %v10165_v6 }
 0x375   :  { %6935 = vmatpush3.bf16.msra.mxu0 %v8465_v19 }
 0x376   :  { %6936 = vmatprep.subr.bf16.mxu0 %v10165_v6 }
 0x379   :  { %6938 = vmatpush3.bf16.msra.mxu0 %v10180_v8 }
 0x37a   :  { %6939 = vmatprep.subr.bf16.mxu0 %v10165_v6 }
 0x37c   :  { %6117 = vmatmul.mubr.f32.vlgmr.msra.gmra.mrb[2].mxu0 %v1660_v32  ;;  %v2826_v32 = vld [vmem:[%s9849_s2] sm:$0xff] }
 0x37d   :  { %6941 = vmatpush3.bf16.msra.mxu0 %v6940_v23  ;;  %6151 = vmatprep.mubr.msk.f32.mxu0 %vm7727_vm0, %v10104_v36  ;;  %v2834_v9 = vsub.f32 %v2830_v56, %v2826_v32  ;;  %v2953_v56 = vand.u32 4294901760, %v2952_v46 }
 0x37e   :  { %6942 = vmatprep.subr.bf16.mxu0 %v10165_v6 }
 0x37f   :  { %v2838_v42 = vsel %vm168_vm1, %v2834_v9, 0.0  ;;  %v2954_v14 = vsub.f32 %v2952_v46, %v2953_v56 }
 0x380   :  { %v2840_v0 = vadd.f32 %v2839_v2, %v2838_v42 }
 0x381   :  { %6944 = vmatpush3.bf16.msra.mxu0 %v6943_v60  ;;  %v2769_v60 = vld [vmem:[#allocation7 + $0x58] sm:$0xff]  ;;  %v2955_v43 = vand.u32 4294901760, %v2954_v14  ;;  %v2790_v14 = vld [vmem:[#allocation8 + $0x180] sm:$0xff] }
 0x382   :  { %6945 = vmatprep.subr.bf16.mxu0 %v10165_v6  ;;  %v2841_v11 = vrot.slane %v2840_v0, 4  ;;  %v2874_v32 = vand.u32 4294901760, %v2769_v60 }
 0x384   :  { %v2842_v48 = vadd.f32 %v2841_v11, %v2840_v0  ;;  %v2966_v31 = vsub.f32 %v2769_v60, %v2874_v32  ;;  %v8891_v0 = vld [vmem:[#allocation8 + $0x118] sm:$0xff]  ;;  %v3371_v11 = vand.u32 4294901760, %v2774_v7  ;;  %v3385_v60 = vand.u32 4294901760, %v2783_v30 }
 0x385   :  { %6947 = vmatpush3.bf16.msra.mxu0 %v6946_v45  ;;  %v3373_v44 = vand.u32 4294901760, %v8891_v0 }
 0x386   :  { %6948 = vmatprep.subr.bf16.mxu0 %v10165_v6  ;;  %v2843_v29 = vrot.slane %v2842_v48, 2  ;;  %v2967_v47 = vand.u32 4294901760, %v2966_v31  ;;  %v8901_v39 = vsub.f32 %v2774_v7, %v3371_v11 }
 0x388   :  { %v2844_v38 = vadd.f32 %v2843_v29, %v2842_v48  ;;  %v2968_v49 = vsub.f32 %v2966_v31, %v2967_v47  ;;  %v3381_v48 = vand.u32 4294901760, %v2781_v37  ;;  %v2780_v29 = vld [vmem:[#allocation8 + $0x130] sm:$0xff] }
 0x389   :  { %6950 = vmatpush3.bf16.msra.mxu0 %v6949_v10 }
 0x38a   :  { %6951 = vmatprep.subr.bf16.mxu0 %v10165_v6  ;;  %v2845_v21 = vrot.slane %v2844_v38, 1 }
 0x38c   :  { %v2846_v18 = vadd.f32 %v2845_v21, %v2844_v38  ;;  %v2785_v21 = vld [vmem:[#allocation8 + $0x158] sm:$0xff] }
 0x38d   :  { %6953 = vmatpush3.bf16.msra.mxu0 %v6952_v51  ;;  %v2969_v51 = vand.u32 4294901760, %v2968_v49 }
 0x38e   :  { %6954 = vmatprep.subr.bf16.mxu0 %v10165_v6  ;;  %v2856_v23 = vsel %vm183_vm2, %v2846_v18, %v2855_v50  ;;  %v2784_v18 = vld [vmem:[#allocation8 + $0x150] sm:$0xff] }
 0x38f   :  { %v2862_v17 = vsel %vm168_vm1, %v2856_v23, 0 }
 0x390   :  { %v8846_v63 = vand.u32 4294901760, %v2862_v17 }
 0x391   :  { %6956 = vmatpush3.bf16.msra.mxu0 %v6955_v35  ;;  %v8889_v35 = vld [vmem:[#allocation8 + $0x108] sm:$0xff] }
 0x392   :  { %6957 = vmatprep.subr.bf16.mxu0 %v10165_v6  ;;  %v3369_v3 = vand.u32 4294901760, %v8889_v35 }
 0x394   :  { %v8899_v38 = vpack.c.bf16 %v3373_v44, %v3369_v3 }
 0x395   :  { %6959 = vmatpush3.bf16.msra.mxu0 %v6958_v53  ;;  %v2776_v53 = vld [vmem:[#allocation8 + $0x110] sm:$0xff] }
 0x396   :  { %6960 = vmatprep.subr.bf16.mxu0 %v10165_v6  ;;  %v3375_v40 = vand.u32 4294901760, %v2776_v53  ;;  %10197 = vst [vmem:[#allocation19_spill] sm:$0xff] %v8899_v38  ;;  %7072 = vmatprep.subr.bf16.mxu1 %v8899_v38 }
 0x398   :  { %v8903_v50 = vpack.c.bf16 %v3375_v40, %v3371_v11 }
 0x399   :  { %6962 = vmatpush3.bf16.msra.mxu0 %v6961_v4  ;;  %v3377_v4 = vand.u32 4294901760, %v2779_v28 }
 0x39a   :  { %6963 = vmatprep.subr.bf16.mxu0 %v10165_v6  ;;  %10198 = vst [vmem:[#allocation20_spill] sm:$0xff] %v8903_v50  ;;  %7074 = vmatpush1.bf16.msra.mxu1 %v8903_v50 }
 0x39b   :  { %v8907_v52 = vpack.c.bf16 %v3381_v48, %v3377_v4  ;;  %v8909_v23 = vsub.f32 %v2779_v28, %v3377_v4 }
 0x39c   :  { %6152 = vmatmul.mubr.f32.vlgmr.msra.gmra.mrb[2].mxu0 %v8648_v33 }
 0x39d   :  { %6965 = vmatpush3.bf16.msra.mxu0 %v8401_v1  ;;  %6186 = vmatprep.mubr.msk.f32.mxu0 %vm7727_vm0, %v10104_v36  ;;  %v2766_v1 = vld [vmem:[#allocation7 + $0x40] sm:$0xff]  ;;  %10199 = vst [vmem:[#allocation21_spill] sm:$0xff] %v8907_v52 }
 0x39e   :  { %6966 = vmatprep.subr.bf16.mxu0 %v10165_v6  ;;  %7076 = vmatprep.subr.bf16.mxu1 %v8907_v52 }
 0x3a1   :  { %6968 = vmatpush3.bf16.msra.mxu0 %v8411_v58  ;;  %v2865_v58 = vand.u32 4294901760, %v2766_v1 }
 0x3a2   :  { %6969 = vmatprep.subr.bf16.mxu0 %v10165_v6 }
 0x3a3   :  { %v7036_v62 = vpack.c.bf16 %v2868_v24, %v2865_v58  ;;  %v8912_v24 = vsub.f32 %v2781_v37, %v3381_v48 }
 0x3a5   :  { %6971 = vmatpush3.bf16.msra.mxu0 %v8421_v16  ;;  %v2768_v16 = vld [vmem:[#allocation7 + $0x50] sm:$0xff] }
 0x3a6   :  { %6972 = vmatprep.subr.bf16.mxu0 %v10165_v6  ;;  %v2871_v45 = vand.u32 4294901760, %v2768_v16 }
 0x3a8   :  { %v2959_v61 = vsub.f32 %v2768_v16, %v2871_v45  ;;  %v7039_v10 = vpack.c.bf16 %v2874_v32, %v2871_v45  ;;  %v3383_v16 = vand.u32 4294901760, %v2780_v29  ;;  %v3391_v45 = vand.u32 4294901760, %v2784_v18 }
 0x3a9   :  { %6974 = vmatpush3.bf16.msra.mxu0 %v8431_v13  ;;  %v2945_v13 = vsub.f32 %v2766_v1, %v2865_v58  ;;  %v8905_v1 = vsub.f32 %v2776_v53, %v3375_v40  ;;  %v2787_v58 = vld [vmem:[#allocation8 + $0x168] sm:$0xff] }
 0x3aa   :  { %6975 = vmatprep.subr.bf16.mxu0 %v10165_v6  ;;  %v2960_v55 = vand.u32 4294901760, %v2959_v61  ;;  %v7051_v2 = vpack.c.bf16 %v2966_v31, %v2959_v61  ;;  %v3393_v32 = vand.u32 4294901760, %v2787_v58 }
 0x3ab   :  { %v2946_v34 = vand.u32 4294901760, %v2945_v13  ;;  %v7048_v42 = vpack.c.bf16 %v2952_v46, %v2945_v13  ;;  %v3387_v46 = vand.u32 4294901760, %v2782_v41 }
 0x3ac   :  { %v2961_v57 = vsub.f32 %v2959_v61, %v2960_v55  ;;  %v7063_v54 = vpack.c.bf16 %v2967_v47, %v2960_v55  ;;  %v2788_v61 = vld [vmem:[#allocation8 + $0x170] sm:$0xff]  ;;  %v8934_v49 = vsub.f32 %v2787_v58, %v3393_v32 }
 0x3ad   :  { %6977 = vmatpush3.bf16.msra.mxu0 %v8441_v5  ;;  %v2934_v5 = vsub.f32 %v2862_v17, %v8846_v63  ;;  %v7060_v15 = vpack.c.bf16 %v2953_v56, %v2946_v34  ;;  %v3379_v17 = vand.u32 4294901760, %v2778_v20  ;;  %v8920_v56 = vsub.f32 %v2780_v29, %v3383_v16  ;;  %v2797_v29 = vld [vmem:[#allocation8 + $0x1b8] sm:$0xff] }
 0x3ae   :  { %6978 = vmatprep.subr.bf16.mxu0 %v10165_v6  ;;  %v2962_v27 = vand.u32 4294901760, %v2961_v57 }
 0x3af   :  { %v2935_v26 = vand.u32 4294901760, %v2934_v5  ;;  %v8916_v31 = vpack.c.bf16 %v3383_v16, %v3379_v17 }
 0x3b1   :  { %6980 = vmatpush3.bf16.msra.mxu0 %v8451_v59  ;;  %v2947_v59 = vsub.f32 %v2945_v13, %v2946_v34  ;;  %v3389_v13 = vand.u32 4294901760, %v2785_v21  ;;  %10200 = vst [vmem:[#allocation24_spill] sm:$0xff] %v8916_v31  ;;  %v8918_v34 = vsub.f32 %v2778_v20, %v3379_v17  ;;  %7078 = vmatpush1.bf16.msra.mxu1 %v8916_v31  ;;  %v2795_v20 = vld [vmem:[#allocation8 + $0x1a8] sm:$0xff] }
 0x3b2   :  { %6981 = vmatprep.subr.bf16.mxu0 %v10165_v6 }
 0x3b3   :  { %v2948_v9 = vand.u32 4294901760, %v2947_v59  ;;  %v2793_v59 = vld [vmem:[#allocation8 + $0x198] sm:$0xff]  ;;  %v8924_v55 = vpack.c.bf16 %v3389_v13, %v3385_v60  ;;  %v8926_v47 = vsub.f32 %v2785_v21, %v3389_v13  ;;  %v3413_v21 = vand.u32 4294901760, %v2797_v29 }
 0x3b4   :  { %v2801_v13 = vld [vmem:[#allocation8 + $0x1d8] sm:$0xff] }
 0x3b5   :  { %6983 = vmatpush3.bf16.msra.mxu0 %v8465_v19  ;;  %v2936_v19 = vsub.f32 %v2934_v5, %v2935_v26  ;;  %v7042_v12 = vpack.c.bf16 %v2955_v43, %v2948_v9  ;;  %10201 = vst [vmem:[#allocation26_spill] sm:$0xff] %v8924_v55  ;;  %v2792_v9 = vld [vmem:[#allocation8 + $0x190] sm:$0xff]  ;;  %v8932_v43 = vsub.f32 %v2784_v18, %v3391_v45 }
 0x3b6   :  { %6984 = vmatprep.subr.bf16.mxu0 %v10165_v6  ;;  %7080 = vmatprep.subr.bf16.mxu1 %v8924_v55  ;;  %v2796_v18 = vld [vmem:[#allocation8 + $0x1b0] sm:$0xff] }
 0x3b7   :  { %v3415_v17 = vand.u32 4294901760, %v2796_v18 }
 0x3b9   :  { %6986 = vmatpush3.bf16.msra.mxu0 %v10180_v8  ;;  %v2937_v8 = vand.u32 4294901760, %v2936_v19  ;;  %v8930_v19 = vsub.f32 %v2782_v41, %v3387_v46  ;;  %v2794_v41 = vld [vmem:[#allocation8 + $0x1a0] sm:$0xff] }
 0x3ba   :  { %7035 = vmatprep.subr.bf16.mxu0 %v10165_v6  ;;  %v3411_v58 = vand.u32 4294901760, %v2794_v41 }
 0x3bc   :  { %6187 = vmatmul.mubr.f32.vlgmr.msra.gmra.mrb[2].mxu0 %v8648_v33  ;;  %v7045_v33 = vpack.c.bf16 %v2969_v51, %v2962_v27  ;;  %v3405_v51 = vand.u32 4294901760, %v2793_v59  ;;  %v9012_v31 = vsub.f32 %v2794_v41, %v3411_v58 }
 0x3bd   :  { %7037 = vmatpush3.bf16.msra.mxu0 %v7036_v62  ;;  %6263 = vmatprep.mubr.msk.f32.mxu0 %vm7727_vm0, %v10104_v36 }
 0x3be   :  { %7038 = vmatprep.subr.bf16.mxu0 %v10165_v6  ;;  %v8948_v11 = vsub.f32 %v2793_v59, %v3405_v51  ;;  %10223 = vst [vmem:[#allocation16_spill] sm:$0xff] %v9012_v31 }
 0x3c0   :  { %10208 = vst [vmem:[#allocation22_spill] sm:$0xff] %v8948_v11 }
 0x3c1   :  { %7040 = vmatpush3.bf16.msra.mxu0 %v7039_v10 }
 0x3c2   :  { %7041 = vmatprep.subr.bf16.mxu0 %v10165_v6 }
 0x3c4   :  { %6264 = vmatmul.mubr.f32.vlgmr.msra.gmra.mrb[4].mxu0 %v2937_v8 }
 0x3c5   :  { %7043 = vmatpush3.bf16.msra.mxu0 %v7042_v12  ;;  %6274 = vmatprep.mubr.msk.f32.mxu0 %vm7727_vm0, %v10104_v36  ;;  %v3399_v12 = vand.u32 4294901760, %v2788_v61 }
 0x3c6   :  { %7044 = vmatprep.subr.bf16.mxu0 %v10165_v6 }
 0x3c7   :  { %v8944_v7 = vsub.f32 %v2788_v61, %v3399_v12  ;;  %v2798_v61 = vld [vmem:[#allocation8 + $0x1c0] sm:$0xff] }
 0x3c8   :  { %v3419_v59 = vand.u32 4294901760, %v2798_v61 }
 0x3c9   :  { %7046 = vmatpush3.bf16.msra.mxu0 %v7045_v33  ;;  %v3403_v33 = vand.u32 4294901760, %v2790_v14  ;;  %10206 = vst [vmem:[#allocation39_spill] sm:$0xff] %v8944_v7 }
 0x3ca   :  { %7047 = vmatprep.subr.bf16.mxu0 %v10165_v6 }
 0x3cb   :  { %v8950_v28 = vsub.f32 %v2790_v14, %v3403_v33 }
 0x3cc   :  { %6275 = vmatmul.mubr.f32.vlgmr.msra.gmra.mrb[4].mxu0 %v8846_v63 }
 0x3cd   :  { %7049 = vmatpush3.bf16.msra.mxu0 %v7048_v42  ;;  %6285 = vmatprep.mubr.msk.f32.mxu0 %vm7727_vm0, %v10104_v36  ;;  %10209 = vst [vmem:[#allocation23_spill] sm:$0xff] %v8950_v28 }
 0x3ce   :  { %7050 = vmatprep.subr.bf16.mxu0 %v10165_v6 }
 0x3d1   :  { %7052 = vmatpush3.bf16.msra.mxu0 %v7051_v2 }
 0x3d2   :  { %7053 = vmatprep.subr.bf16.mxu0 %v10165_v6 }
 0x3d4   :  { %6286 = vmatmul.mubr.f32.vlgmr.msra.gmra.mrb[4].mxu0 %v2934_v5  ;;  %v2786_v5 = vld [vmem:[#allocation8 + $0x160] sm:$0xff] }
 0x3d5   :  { %7055 = vmatpush3.bf16.msra.mxu0 %v7036_v62  ;;  %6296 = vmatprep.mubr.msk.f32.mxu0 %vm7727_vm0, %v10104_v36  ;;  %v3395_v8 = vand.u32 4294901760, %v2786_v5 }
 0x3d6   :  { %7056 = vmatprep.subr.bf16.mxu0 %v10165_v6 }
 0x3d7   :  { %v8955_v40 = vpack.c.bf16 %v3399_v12, %v3395_v8  ;;  %v2804_v12 = vld [vmem:[#allocation8 + $0x1f0] sm:$0xff] }
 0x3d9   :  { %7058 = vmatpush3.bf16.msra.mxu0 %v7039_v10  ;;  %10211 = vst [vmem:[#allocation31_spill] sm:$0xff] %v8955_v40 }
 0x3da   :  { %7059 = vmatprep.subr.bf16.mxu0 %v10165_v6 }
 0x3dc   :  { %6297 = vmatmul.mubr.f32.vlgmr.msra.gmra.mrb[4].mxu0 %v2935_v26  ;;  %v2791_v26 = vld [vmem:[#allocation8 + $0x188] sm:$0xff] }
 0x3dd   :  { %7061 = vmatpush3.bf16.msra.mxu0 %v7060_v15  ;;  %6307 = vmatprep.mubr.msk.f32.mxu0 %vm7727_vm0, %v10104_v36  ;;  %v3401_v27 = vand.u32 4294901760, %v2791_v26  ;;  %v8942_v15 = vsub.f32 %v2786_v5, %v3395_v8  ;;  %v3421_v5 = vand.u32 4294901760, %v2801_v13  ;;  %v2802_v8 = vld [vmem:[#allocation8 + $0x1e0] sm:$0xff] }
 0x3de   :  { %7062 = vmatprep.subr.bf16.mxu0 %v10165_v6 }
 0x3df   :  { %10205 = vst [vmem:[#allocation30_spill] sm:$0xff] %v8942_v15  ;;  %v8946_v53 = vsub.f32 %v2791_v26, %v3401_v27  ;;  %v8958_v4 = vpack.c.bf16 %v3405_v51, %v3401_v27  ;;  %v2800_v26 = vld [vmem:[#allocation8 + $0x1d0] sm:$0xff] }
 0x3e0   :  { %v3423_v14 = vand.u32 4294901760, %v2800_v26 }
 0x3e1   :  { %7064 = vmatpush3.bf16.msra.mxu0 %v7063_v54  ;;  %v3407_v54 = vand.u32 4294901760, %v2792_v9  ;;  %10207 = vst [vmem:[#allocation42_spill] sm:$0xff] %v8946_v53  ;;  %10212 = vst [vmem:[#allocation32_spill] sm:$0xff] %v8958_v4 }
 0x3e2   :  { %7065 = vmatprep.subr.bf16.mxu0 %v10165_v6 }
 0x3e3   :  { %v8952_v37 = vsub.f32 %v2792_v9, %v3407_v54  ;;  %v8961_v48 = vpack.c.bf16 %v3407_v54, %v3403_v33  ;;  %v3427_v33 = vand.u32 4294901760, %v2802_v8  ;;  %v3431_v54 = vand.u32 4294901760, %v2804_v12 }
 0x3e4   :  { %6308 = vmatmul.mubr.f32.vlgmr.msra.gmra.mrb[4].mxu0 %v8846_v63 }
 0x3e5   :  { %7067 = vmatpush3.bf16.msra.mxu0 %v7036_v62  ;;  %6318 = vmatprep.mubr.msk.f32.mxu0 %vm7727_vm0, %v10104_v36  ;;  %v8922_v62 = vsub.f32 %v2783_v30, %v3385_v60  ;;  %10210 = vst [vmem:[#allocation25_spill] sm:$0xff] %v8952_v37  ;;  %10213 = vst [vmem:[#allocation33_spill] sm:$0xff] %v8961_v48  ;;  %v3409_v30 = vand.u32 4294901760, %v2795_v20  ;;  %v8967_v60 = vpack.c.bf16 %v3415_v17, %v3411_v58 }
 0x3e6   :  { %7068 = vmatprep.subr.bf16.mxu0 %v10165_v6  ;;  %v10010_v58 = vand.u32 4294901760, %v8912_v24 }
 0x3e7   :  { %v8965_v16 = vpack.c.bf16 %v3413_v21, %v3409_v30  ;;  %10215 = vst [vmem:[#allocation35_spill] sm:$0xff] %v8967_v60  ;;  %v9008_v55 = vsub.f32 %v2795_v20, %v3409_v30  ;;  %v9029_v20 = vsub.f32 %v2802_v8, %v3427_v33 }
 0x3e9   :  { %7070 = vmatpush3.bf16.msra.mxu0 %v7039_v10  ;;  %v8928_v10 = vpack.c.bf16 %v3391_v45, %v3387_v46  ;;  %10214 = vst [vmem:[#allocation34_spill] sm:$0xff] %v8965_v16  ;;  %v8972_v46 = vsub.f32 %v8889_v35, %v3369_v3  ;;  %v8977_v45 = vsub.f32 %v8891_v0, %v3373_v44  ;;  %v2803_v35 = vld [vmem:[#allocation8 + $0x1e8] sm:$0xff]  ;;  %v2805_v3 = vld [vmem:[#allocation8 + $0x1f8] sm:$0xff]  ;;  %10221 = vst [vmem:[#allocation41_spill] sm:$0xff] %v9008_v55 }
 0x3ea   :  { %7263 = vmatprep.subr.bf16.mxu0 %v10165_v6  ;;  %v3425_v0 = vand.u32 4294901760, %v2803_v35  ;;  %v3429_v44 = vand.u32 4294901760, %v2805_v3  ;;  %v9990_v6 = vand.u32 4294901760, %v8901_v39 }
 0x3eb   :  { %10202 = vst [vmem:[#allocation27_spill] sm:$0xff] %v8928_v10  ;;  %7082 = vmatpush1.bf16.msra.mxu1 %v8928_v10  ;;  %v9984_v27 = vand.u32 4294901760, %v8972_v46  ;;  %v9987_v51 = vand.u32 4294901760, %v8977_v45 }
 0x3ec   :  { %6319 = vmatmul.mubr.f32.vlgmr.msra.gmra.mrb[4].mxu0 %v8846_v63  ;;  %v2789_v63 = vld [vmem:[#allocation8 + $0x178] sm:$0xff]  ;;  %v9025_v52 = vsub.f32 %v2803_v35, %v3425_v0 }
 0x3ed   :  { %6353 = vmatprep.mubr.msk.f32.mxu0 %vm7727_vm0, %v10104_v36  ;;  %v3397_v57 = vand.u32 4294901760, %v2789_v63 }
 0x3ee   :  { %10229 = vst [vmem:[#allocation51_spill] sm:$0xff] %v9025_v52 }
 0x3ef   :  { %v8938_v42 = vpack.c.bf16 %v3397_v57, %v3393_v32  ;;  %v8940_v2 = vsub.f32 %v2789_v63, %v3397_v57  ;;  %v2799_v63 = vld [vmem:[#allocation8 + $0x1c8] sm:$0xff]  ;;  %v8983_v57 = vpack.c.bf16 %v3423_v14, %v3419_v59 }
 0x3f0   :  { %v3417_v32 = vand.u32 4294901760, %v2799_v63 }
 0x3f1   :  { %10203 = vst [vmem:[#allocation28_spill] sm:$0xff] %v8938_v42  ;;  %10204 = vst [vmem:[#allocation29_spill] sm:$0xff] %v8940_v2  ;;  %7084 = vmatprep.subr.bf16.mxu1 %v8938_v42  ;;  %v10220_v42 = vand.u32 4294901760, %v8905_v1 }
 0x3f2   :  { %7086 = vmatpush1.bf16.msra.mxu1 %v8955_v40  ;;  %v8981_v9 = vpack.c.bf16 %v3421_v5, %v3417_v32  ;;  %10217 = vst [vmem:[#allocation37_spill] sm:$0xff] %v8983_v57 }
 0x3f3   :  { %7088 = vmatprep.subr.bf16.mxu1 %v8958_v4  ;;  %v8999_v4 = vpack.c.bf16 %v3431_v54, %v3427_v33  ;;  %v3498_v10 = vsub.f32 %v8905_v1, %v10220_v42  ;;  %v9027_v42 = vsub.f32 %v2805_v3, %v3429_v44  ;;  %v9998_v3 = vand.u32 4294901760, %v8932_v43 }
 0x3f4   :  { %10216 = vst [vmem:[#allocation36_spill] sm:$0xff] %v8981_v9 }
 0x3f5   :  { %10219 = vst [vmem:[#allocation40_spill] sm:$0xff] %v8999_v4  ;;  %10230 = vst [vmem:[#allocation52_spill] sm:$0xff] %v9027_v42  ;;  %v3499_v41 = vand.u32 4294901760, %v3498_v10  ;;  %v9993_v10 = vand.u32 4294901760, %v8930_v19 }
 0x3f6   :  { %7090 = vmatpush1.bf16.msra.mxu1 %v8961_v48  ;;  %v3492_v48 = vsub.f32 %v8977_v45, %v9987_v51  ;;  %v9014_v51 = vsub.f32 %v2796_v18, %v3415_v17  ;;  %v10013_v18 = vand.u32 4294901760, %v8909_v23  ;;  %v10007_v17 = vand.u32 4294901760, %v8918_v34 }
 0x3f7   :  { %7092 = vmatprep.subr.bf16.mxu1 %v8965_v16  ;;  %v8991_v16 = vpack.c.bf16 %v3429_v44, %v3425_v0  ;;  %v3534_v35 = vsub.f32 %v8930_v19, %v9993_v10  ;;  %v9996_v10 = vand.u32 4294901760, %v8940_v2 }
 0x3f8   :  { %v3493_v40 = vand.u32 4294901760, %v3492_v48  ;;  %10224 = vst [vmem:[#allocation46_spill] sm:$0xff] %v9014_v51  ;;  %v9019_v48 = vsub.f32 %v2801_v13, %v3421_v5  ;;  %v10000_v13 = vand.u32 4294901760, %v8922_v62  ;;  %v3504_v5 = vsub.f32 %v8909_v23, %v10013_v18 }
 0x3f9   :  { %10218 = vst [vmem:[#allocation38_spill] sm:$0xff] %v8991_v16  ;;  %v10025_v18 = vand.u32 4294901760, %v9029_v20 }
 0x3fa   :  { %7094 = vmatpush1.bf16.msra.mxu1 %v8967_v60  ;;  %v3486_v60 = vsub.f32 %v8901_v39, %v9990_v6  ;;  %10226 = vst [vmem:[#allocation48_spill] sm:$0xff] %v9019_v48  ;;  %v9023_v6 = vsub.f32 %v2800_v26, %v3423_v14  ;;  %v3505_v14 = vand.u32 4294901760, %v3504_v5 }
 0x3fb   :  { %7096 = vmatprep.subr.bf16.mxu1 %v8981_v9  ;;  %v3480_v9 = vsub.f32 %v8972_v46, %v9984_v27  ;;  %v9010_v27 = vsub.f32 %v2797_v29, %v3413_v21  ;;  %v9031_v29 = vsub.f32 %v2804_v12, %v3431_v54  ;;  %v3535_v54 = vand.u32 4294901760, %v3534_v35 }
 0x3fc   :  { %10228 = vst [vmem:[#allocation50_spill] sm:$0xff] %v9023_v6  ;;  %v3487_v21 = vand.u32 4294901760, %v3486_v60  ;;  %v3516_v60 = vsub.f32 %v8912_v24, %v10010_v58  ;;  %v10001_v35 = vand.u32 4294901760, %v8946_v53 }
 0x3fd   :  { %10222 = vst [vmem:[#allocation43_spill] sm:$0xff] %v9010_v27  ;;  %10231 = vst [vmem:[#allocation53_spill] sm:$0xff] %v9031_v29 }
 0x3fe   :  { %7098 = vmatpush1.bf16.msra.mxu1 %v8983_v57  ;;  %v3481_v57 = vand.u32 4294901760, %v3480_v9  ;;  %v9017_v9 = vsub.f32 %v2799_v63, %v3417_v32  ;;  %v10003_v63 = vand.u32 4294901760, %v8920_v56  ;;  %v9038_v32 = vpack.c.bf16 %v3499_v41, %v3487_v21 }
 0x3ff   :  { %7100 = vmatprep.subr.bf16.mxu1 %v8991_v16  ;;  %v9021_v16 = vsub.f32 %v2798_v61, %v3419_v59  ;;  %v3510_v61 = vsub.f32 %v8918_v34, %v10007_v17  ;;  %v3528_v59 = vsub.f32 %v8922_v62, %v10000_v13  ;;  %v3517_v0 = vand.u32 4294901760, %v3516_v60 }
 0x400   :  { %10225 = vst [vmem:[#allocation47_spill] sm:$0xff] %v9017_v9  ;;  %v7103_v30 = vpack.c.bf16 %v3493_v40, %v3481_v57  ;;  %v9994_v40 = vand.u32 4294901760, %v8926_v47  ;;  %v3522_v26 = vsub.f32 %v8920_v56, %v10003_v63  ;;  %v9995_v21 = vand.u32 4294901760, %v8934_v49 }
 0x401   :  { %10227 = vst [vmem:[#allocation49_spill] sm:$0xff] %v9021_v16  ;;  %v3511_v44 = vand.u32 4294901760, %v3510_v61  ;;  %v3529_v12 = vand.u32 4294901760, %v3528_v59  ;;  %v9068_v41 = vpack.c.bf16 %v3517_v0, %v3505_v14  ;;  %v9999_v59 = vand.u32 4294901760, %v8944_v7 }
 0x402   :  { %7102 = vmatpush1.bf16.msra.mxu1 %v8999_v4  ;;  %v3540_v57 = vsub.f32 %v8926_v47, %v9994_v40  ;;  %v3523_v8 = vand.u32 4294901760, %v3522_v26  ;;  %v9997_v40 = vand.u32 4294901760, %v8942_v15  ;;  %v3552_v26 = vsub.f32 %v8934_v49, %v9995_v21 }
 0x403   :  { %7104 = vmatprep.subr.bf16.mxu1 %v7103_v30  ;;  %v3546_v30 = vsub.f32 %v8932_v43, %v9998_v3  ;;  %v3564_v14 = vsub.f32 %v8940_v2, %v9996_v10  ;;  %v10002_v0 = vand.u32 4294901760, %v8948_v11  ;;  %v3576_v10 = vsub.f32 %v8946_v53, %v10001_v35 }
 0x404   :  { %v3541_v33 = vand.u32 4294901760, %v3540_v57  ;;  %v9070_v5 = vpack.c.bf16 %v3523_v8, %v3511_v44  ;;  %v3558_v57 = vsub.f32 %v8942_v15, %v9997_v40  ;;  %v3553_v8 = vand.u32 4294901760, %v3552_v26 }
 0x405   :  { %v3547_v61 = vand.u32 4294901760, %v3546_v30  ;;  %v3565_v30 = vand.u32 4294901760, %v3564_v14  ;;  %v3588_v40 = vsub.f32 %v8948_v11, %v10002_v0 }
 0x406   :  { %v9074_v60 = vpack.c.bf16 %v3541_v33, %v3529_v12  ;;  %v3570_v12 = vsub.f32 %v8944_v7, %v9999_v59  ;;  %v10006_v33 = vand.u32 4294901760, %v8950_v28  ;;  %v3559_v21 = vand.u32 4294901760, %v3558_v57 }
 0x407   :  { %v9088_v44 = vpack.c.bf16 %v3547_v61, %v3535_v54  ;;  %v10005_v61 = vand.u32 4294901760, %v8952_v37  ;;  %v9104_v26 = vpack.c.bf16 %v3565_v30, %v3553_v8  ;;  %v3577_v59 = vand.u32 4294901760, %v3576_v10 }
 0x408   :  { %v3571_v3 = vand.u32 4294901760, %v3570_v12  ;;  %v3582_v54 = vsub.f32 %v8950_v28, %v10006_v33  ;;  %v3589_v14 = vand.u32 4294901760, %v3588_v40  ;;  %v10004_v57 = vand.u32 4294901760, %v9008_v55 }
 0x409   :  { %v3594_v0 = vsub.f32 %v8952_v37, %v10005_v61  ;;  %v10008_v12 = vand.u32 4294901760, %v9010_v27  ;;  %v10009_v10 = vand.u32 4294901760, %v9012_v31  ;;  %v10012_v40 = vand.u32 4294901760, %v9014_v51 }
 0x40a   :  { %v9107_v13 = vpack.c.bf16 %v3571_v3, %v3559_v21  ;;  %v3583_v35 = vand.u32 4294901760, %v3582_v54  ;;  %v9113_v63 = vpack.c.bf16 %v3589_v14, %v3577_v59  ;;  %v3600_v8 = vsub.f32 %v9008_v55, %v10004_v57 }
 0x40b   :  { %v3595_v30 = vand.u32 4294901760, %v3594_v0  ;;  %v3612_v3 = vsub.f32 %v9010_v27, %v10008_v12  ;;  %v3606_v54 = vsub.f32 %v9012_v31, %v10009_v10  ;;  %v3618_v59 = vsub.f32 %v9014_v51, %v10012_v40 }
 0x40c   :  { %v3601_v21 = vand.u32 4294901760, %v3600_v8  ;;  %v10011_v14 = vand.u32 4294901760, %v9017_v9  ;;  %v10014_v0 = vand.u32 4294901760, %v9019_v48  ;;  %v10015_v33 = vand.u32 4294901760, %v9021_v16 }
 0x40d   :  { %v9130_v57 = vpack.c.bf16 %v3595_v30, %v3583_v35  ;;  %v3613_v61 = vand.u32 4294901760, %v3612_v3  ;;  %v3607_v17 = vand.u32 4294901760, %v3606_v54  ;;  %v3619_v12 = vand.u32 4294901760, %v3618_v59 }
 0x40e   :  { %v3624_v8 = vsub.f32 %v9017_v9, %v10011_v14  ;;  %v10016_v10 = vand.u32 4294901760, %v9023_v6  ;;  %v3636_v35 = vsub.f32 %v9019_v48, %v10014_v0  ;;  %v3630_v30 = vsub.f32 %v9021_v16, %v10015_v33 }
 0x40f   :  { %v9138_v58 = vpack.c.bf16 %v3613_v61, %v3601_v21  ;;  %v9146_v3 = vpack.c.bf16 %v3619_v12, %v3607_v17  ;;  %v10019_v14 = vand.u32 4294901760, %v9025_v52  ;;  %v10024_v21 = vand.u32 4294901760, %v9027_v42 }
 0x410   :  { %v3625_v54 = vand.u32 4294901760, %v3624_v8  ;;  %v3642_v59 = vsub.f32 %v9023_v6, %v10016_v10  ;;  %v3637_v40 = vand.u32 4294901760, %v3636_v35  ;;  %v3631_v61 = vand.u32 4294901760, %v3630_v30 }
 0x411   :  { %v3648_v33 = vsub.f32 %v9025_v52, %v10019_v14  ;;  %v10026_v17 = vand.u32 4294901760, %v9031_v29  ;;  %v3660_v8 = vsub.f32 %v9027_v42, %v10024_v21  ;;  %v3654_v35 = vsub.f32 %v9029_v20, %v10025_v18 }
 0x412   :  { %v8885_v25 = vpop.f32.mrb[2].mxu1  ;;  %v3643_v0 = vand.u32 4294901760, %v3642_v59  ;;  %v9158_v12 = vpack.c.bf16 %v3637_v40, %v3625_v54  ;;  %v7135_v54 = vpack.c.bf16 %v8977_v45, %v8972_v46  ;;  %v7137_v21 = vpack.c.bf16 %v8905_v1, %v8901_v39 }
 0x413   :  { %v8887_v22 = vpop.f32.mrb[3].mxu1  ;;  %v3649_v10 = vand.u32 4294901760, %v3648_v33  ;;  %v3666_v59 = vsub.f32 %v9031_v29, %v10026_v17  ;;  %v3661_v4 = vand.u32 4294901760, %v3660_v8  ;;  %v3655_v14 = vand.u32 4294901760, %v3654_v35 }
 0x414   :  { %v7129_v30 = vpack.c.bf16 %v3643_v0, %v3631_v61  ;;  %v7139_v18 = vpack.c.bf16 %v8912_v24, %v8909_v23  ;;  %v7141_v33 = vpack.c.bf16 %v8920_v56, %v8918_v34  ;;  %v7143_v0 = vpack.c.bf16 %v8926_v47, %v8922_v62 }
 0x415   :  { %v3667_v50 = vand.u32 4294901760, %v3666_v59  ;;  %v7131_v38 = vpack.c.bf16 %v3661_v4, %v3649_v10  ;;  %v7145_v61 = vpack.c.bf16 %v8932_v43, %v8930_v19  ;;  %v7149_v4 = vpack.c.bf16 %v8944_v7, %v8942_v15  ;;  %v10232_v15 = vld [vmem:[#allocation44_spill] sm:$0xff] }
 0x416   :  { %v7151_v10 = vpack.c.bf16 %v8948_v11, %v8946_v53  ;;  %v7155_v8 = vpack.c.bf16 %v9010_v27, %v9008_v55  ;;  %v7157_v35 = vpack.c.bf16 %v9014_v51, %v9012_v31  ;;  %v7159_v59 = vpack.c.bf16 %v9019_v48, %v9017_v9  ;;  %v10233_v53 = vld [vmem:[#allocation17_spill] sm:$0xff] }
 0x417   :  { %v7133_v40 = vpack.c.bf16 %v3667_v50, %v3655_v14  ;;  %v7147_v50 = vpack.c.bf16 %v8940_v2, %v8934_v49  ;;  %v7153_v14 = vpack.c.bf16 %v8952_v37, %v8950_v28  ;;  %v7161_v17 = vpack.c.bf16 %v9023_v6, %v9021_v16  ;;  %v7572_v28 = vld [vmem:[#allocation10] sm:$0xff]  ;;  %v10234_v9 = vld [vmem:[#allocation45_spill] sm:$0xff] }
 0x418   :  { %v7163_v7 = vpack.c.bf16 %v9027_v42, %v9025_v52  ;;  %v10045_v11 = vsub.s32 2, %v10232_v15  ;;  %v7165_v37 = vpack.c.bf16 %v9031_v29, %v9029_v20  ;;  %v9208_v29 = vld [vmem:[#allocation10 + $0x8] sm:$0xff] }
 0x41a   :  { %v1576_v27 = vrot.slane %v7572_v28, %v10045_v11  ;;  %v2860_v28 = vrot.slane %v9208_v29, %v10234_v9 }
 0x48f   :  { %v2214_v55 = vpop.f32.mrb[2].mxu0 }
 0x490   :  { %v7458_v51 = vadd.f32 %v2214_v55, %v1576_v27  ;;  %v6188_v31 = vpop.f32.mrb[3].mxu0 }
 0x492   :  { %v2762_v48 = vrot.slane %v7458_v51, %v10233_v53  ;;  %v2755_v2 = vrot.slane %v7458_v51, %v10234_v9 }
 0x494   :  { %v2763_v6 = vadd.f32 %v8885_v25, %v2762_v48  ;;  %v2756_v42 = vadd.f32 %v2755_v2, %v8887_v22  ;;  %v10238_v2 = vld [vmem:[#allocation24_spill] sm:$0xff] }
 0x496   :  { %v2764_v52 = vmax.f32 %v2763_v6, 0.0  ;;  %v2757_v16 = vmax.f32 %v2756_v42, 0.0  ;;  %v10235_v6 = vld [vmem:[#allocation19_spill] sm:$0xff]  ;;  %v10241_v42 = vld [vmem:[#allocation28_spill] sm:$0xff] }
 0x498   :  { %2765 = vst [vmem:[#allocation11 + $0x8] sm:$0xff] %v2764_v52  ;;  %2758 = vst [vmem:[#allocation11] sm:$0xff] %v2757_v16  ;;  %v10237_v52 = vld [vmem:[#allocation21_spill] sm:$0xff]  ;;  %v10240_v16 = vld [vmem:[#allocation27_spill] sm:$0xff] }
 0x4bf   :  { %v3345_v11 = vpop.f32.mrb[4].mxu0 }
 0x4c0   :  { %v7459_v55 = vadd.f32 %v3345_v11, %v2860_v28  ;;  %v6320_v31 = vpop.f32.mrb[5].mxu0  ;;  %v10239_v11 = vld [vmem:[#allocation26_spill] sm:$0xff] }
 0x4c2   :  { %v3349_v27 = vmax.f32 %v7459_v55, 0.0  ;;  %v10276_v55 = vld [vmem:[#allocation25_spill] sm:$0xff] }
 0x4c4   :  { %v9212_v53 = vand.u32 4294901760, %v3349_v27 }
 0x4c6   :  { %v3467_v51 = vsub.f32 %v3349_v27, %v9212_v53  ;;  %v10278_v27 = vld [vmem:[#allocation41_spill] sm:$0xff] }
 0x4c8   :  { %v3468_v25 = vand.u32 4294901760, %v3467_v51 }
 0x4ca   :  { %v3469_v48 = vsub.f32 %v3467_v51, %v3468_v25 }
 0x4cc   :  { %v3470_v22 = vand.u32 4294901760, %v3469_v48 }
 0x4ce   :  { %3471 = vmatmul.mubr.f32.vlgmr.msra.gmra.mrb[4].mxu1 %v3470_v22 }
 0x4cf   :  { %7106 = vmatpush1.bf16.msra.mxu1 %v9038_v32  ;;  %3701 = vmatprep.mubr.f32.mxu1 %v10104_v36  ;;  %v10248_v32 = vld [vmem:[#allocation37_spill] sm:$0xff] }
 0x4d0   :  { %7108 = vmatprep.subr.bf16.mxu1 %v9068_v41  ;;  %v10249_v41 = vld [vmem:[#allocation38_spill] sm:$0xff] }
 0x4d3   :  { %7110 = vmatpush1.bf16.msra.mxu1 %v9070_v5  ;;  %v10250_v5 = vand.u32 4294901760, %v8972_v46  ;;  %v10257_v46 = vand.u32 4294901760, %v8918_v34  ;;  %v10263_v34 = vand.u32 4294901760, %v8934_v49  ;;  %v10277_v49 = vand.u32 4294901760, %v10276_v55 }
 0x4d4   :  { %7112 = vmatprep.subr.bf16.mxu1 %v9074_v60  ;;  %v10251_v60 = vand.u32 4294901760, %v8977_v45  ;;  %v10258_v45 = vand.u32 4294901760, %v8920_v56 }
 0x4d7   :  { %7114 = vmatpush1.bf16.msra.mxu1 %v9088_v44  ;;  %v7199_v44 = vpack.c.bf16 %v10251_v60, %v10250_v5  ;;  %v10282_v5 = vld [vmem:[#allocation16_spill] sm:$0xff] }
 0x4d8   :  { %7116 = vmatprep.subr.bf16.mxu1 %v9104_v26  ;;  %v10252_v26 = vld [vmem:[#allocation40_spill] sm:$0xff]  ;;  %v10283_v60 = vand.u32 4294901760, %v10282_v5 }
 0x4db   :  { %7118 = vmatpush1.bf16.msra.mxu1 %v9107_v13  ;;  %v10247_v13 = vld [vmem:[#allocation36_spill] sm:$0xff] }
 0x4dc   :  { %7120 = vmatprep.subr.bf16.mxu1 %v9113_v63  ;;  %v10246_v63 = vld [vmem:[#allocation35_spill] sm:$0xff] }
 0x4df   :  { %7122 = vmatpush1.bf16.msra.mxu1 %v9130_v57  ;;  %v10253_v57 = vand.u32 4294901760, %v8901_v39  ;;  %v10259_v39 = vand.u32 4294901760, %v8922_v62 }
 0x4e0   :  { %7124 = vmatprep.subr.bf16.mxu1 %v9138_v58  ;;  %v10245_v58 = vld [vmem:[#allocation34_spill] sm:$0xff] }
 0x4e3   :  { %7126 = vmatpush1.bf16.msra.mxu1 %v9146_v3  ;;  %v10254_v3 = vand.u32 4294901760, %v8905_v1  ;;  %v10260_v1 = vand.u32 4294901760, %v8926_v47  ;;  %v10270_v47 = vld [vmem:[#allocation42_spill] sm:$0xff] }
 0x4e4   :  { %7128 = vmatprep.subr.bf16.mxu1 %v9158_v12  ;;  %v10256_v12 = vand.u32 4294901760, %v8912_v24  ;;  %v10262_v24 = vand.u32 4294901760, %v8932_v43  ;;  %v10274_v43 = vld [vmem:[#allocation23_spill] sm:$0xff] }
 0x4e5   :  { %v10275_v28 = vand.u32 4294901760, %v10274_v43  ;;  %v2816_v43 = vld [vmem:[%s9854_s7 + $0xd0] sm:$0xff] }
 0x4e6   :  { %v4279_v55 = vand.u32 4294901760, %v2816_v43 }
 0x4e7   :  { %7130 = vmatpush1.bf16.msra.mxu1 %v7129_v30  ;;  %v7217_v31 = vpack.c.bf16 %v10277_v49, %v10275_v28  ;;  %v2817_v28 = vld [vmem:[%s9854_s7 + $0xd8] sm:$0xff] }
 0x4e8   :  { %7132 = vmatprep.subr.bf16.mxu1 %v7131_v38  ;;  %v10236_v38 = vld [vmem:[#allocation20_spill] sm:$0xff]  ;;  %v4282_v49 = vand.u32 4294901760, %v2817_v28 }
 0x4eb   :  { %7134 = vmatpush1.bf16.msra.mxu1 %v7133_v40  ;;  %v7205_v40 = vpack.c.bf16 %v10258_v45, %v10257_v46  ;;  %v10290_v45 = vld [vmem:[#allocation49_spill] sm:$0xff] }
 0x4ec   :  { %7136 = vmatprep.subr.bf16.mxu1 %v7135_v54  ;;  %v7207_v54 = vpack.c.bf16 %v10260_v1, %v10259_v39  ;;  %v10292_v39 = vld [vmem:[#allocation50_spill] sm:$0xff] }
 0x4ed   :  { %v10293_v1 = vand.u32 4294901760, %v10292_v39 }
 0x4ee   :  { %3703 = vmatmul.mubr.f32.vlgmr.msra.gmra.mrb[4].mxu1 %v9212_v53 }
 0x4ef   :  { %7138 = vmatpush1.bf16.msra.mxu1 %v7137_v21  ;;  %3837 = vmatprep.mubr.f32.mxu1 %v10104_v36  ;;  %v7201_v21 = vpack.c.bf16 %v10254_v3, %v10253_v57 }
 0x4f0   :  { %7140 = vmatprep.subr.bf16.mxu1 %v7139_v18  ;;  %v10242_v18 = vld [vmem:[#allocation31_spill] sm:$0xff] }
 0x4f3   :  { %7142 = vmatpush1.bf16.msra.mxu1 %v7141_v33 }
 0x4f4   :  { %7144 = vmatprep.subr.bf16.mxu1 %v7143_v0  ;;  %v10264_v0 = vld [vmem:[#allocation29_spill] sm:$0xff] }
 0x4f5   :  { %v10265_v56 = vand.u32 4294901760, %v10264_v0 }
 0x4f7   :  { %7146 = vmatpush1.bf16.msra.mxu1 %v7145_v61  ;;  %v7211_v61 = vpack.c.bf16 %v10265_v56, %v10263_v34  ;;  %v10298_v56 = vand.u32 4294901760, %v9029_v20  ;;  %v2806_v20 = vld [vmem:[%s9854_s7 + $0x80] sm:$0xff] }
 0x4f8   :  { %7148 = vmatprep.subr.bf16.mxu1 %v7147_v50  ;;  %v10266_v50 = vld [vmem:[#allocation30_spill] sm:$0xff] }
 0x4fb   :  { %7150 = vmatpush1.bf16.msra.mxu1 %v7149_v4  ;;  %v10267_v4 = vand.u32 4294901760, %v10266_v50 }
 0x4fc   :  { %7152 = vmatprep.subr.bf16.mxu1 %v7151_v10  ;;  %v10268_v10 = vld [vmem:[#allocation39_spill] sm:$0xff] }
 0x4fd   :  { %v10269_v62 = vand.u32 4294901760, %v10268_v10 }
 0x4ff   :  { %7154 = vmatpush1.bf16.msra.mxu1 %v7153_v14  ;;  %v7213_v14 = vpack.c.bf16 %v10269_v62, %v10267_v4 }
 0x500   :  { %7156 = vmatprep.subr.bf16.mxu1 %v7155_v8  ;;  %v10271_v8 = vand.u32 4294901760, %v10270_v47  ;;  %v2814_v47 = vld [vmem:[%s9854_s7 + $0xc0] sm:$0xff] }
 0x503   :  { %7158 = vmatpush1.bf16.msra.mxu1 %v7157_v35  ;;  %v10272_v35 = vld [vmem:[#allocation22_spill] sm:$0xff] }
 0x504   :  { %7160 = vmatprep.subr.bf16.mxu1 %v7159_v59 }
 0x507   :  { %7162 = vmatpush1.bf16.msra.mxu1 %v7161_v17  ;;  %v10255_v17 = vand.u32 4294901760, %v8909_v23  ;;  %v10261_v23 = vand.u32 4294901760, %v8930_v19  ;;  %v10273_v19 = vand.u32 4294901760, %v10272_v35  ;;  %v4273_v35 = vand.u32 4294901760, %v2814_v47 }
 0x508   :  { %7164 = vmatprep.subr.bf16.mxu1 %v7163_v7  ;;  %v10243_v7 = vld [vmem:[#allocation32_spill] sm:$0xff] }
 0x509   :  { %v7203_v30 = vpack.c.bf16 %v10256_v12, %v10255_v17  ;;  %v7209_v33 = vpack.c.bf16 %v10262_v24, %v10261_v23  ;;  %v7215_v59 = vpack.c.bf16 %v10273_v19, %v10271_v8  ;;  %v10288_v12 = vld [vmem:[#allocation48_spill] sm:$0xff]  ;;  %v10294_v23 = vld [vmem:[#allocation51_spill] sm:$0xff]  ;;  %v2815_v8 = vld [vmem:[%s9854_s7 + $0xc8] sm:$0xff] }
 0x50a   :  { %v10295_v24 = vand.u32 4294901760, %v10294_v23  ;;  %v4276_v19 = vand.u32 4294901760, %v2815_v8 }
 0x50b   :  { %7166 = vmatpush1.bf16.msra.mxu1 %v7165_v37  ;;  %v10244_v37 = vld [vmem:[#allocation33_spill] sm:$0xff] }
 0x50c   :  { %7168 = vmatprep.subr.bf16.mxu1 %v10235_v6 }
 0x50e   :  { %3840 = vmatmul.mubr.f32.vlgmr.msra.gmra.mrb[4].mxu1 %v3467_v51  ;;  %v10279_v51 = vand.u32 4294901760, %v10278_v27  ;;  %v2818_v27 = vld [vmem:[%s9854_s7 + $0xe0] sm:$0xff] }
 0x50f   :  { %7170 = vmatpush1.bf16.msra.mxu1 %v10236_v38  ;;  %3942 = vmatprep.mubr.f32.mxu1 %v10104_v36 }
 0x510   :  { %7172 = vmatprep.subr.bf16.mxu1 %v10237_v52 }
 0x513   :  { %7174 = vmatpush1.bf16.msra.mxu1 %v10238_v2 }
 0x514   :  { %7176 = vmatprep.subr.bf16.mxu1 %v10239_v11 }
 0x517   :  { %7178 = vmatpush1.bf16.msra.mxu1 %v10240_v16 }
 0x518   :  { %7180 = vmatprep.subr.bf16.mxu1 %v10241_v42 }
 0x51b   :  { %7182 = vmatpush1.bf16.msra.mxu1 %v10242_v18 }
 0x51c   :  { %7184 = vmatprep.subr.bf16.mxu1 %v10243_v7 }
 0x51f   :  { %7186 = vmatpush1.bf16.msra.mxu1 %v10244_v37 }
 0x520   :  { %7188 = vmatprep.subr.bf16.mxu1 %v10245_v58 }
 0x523   :  { %7190 = vmatpush1.bf16.msra.mxu1 %v10246_v63 }
 0x524   :  { %7192 = vmatprep.subr.bf16.mxu1 %v10247_v13 }
 0x527   :  { %7194 = vmatpush1.bf16.msra.mxu1 %v10248_v32 }
 0x528   :  { %7196 = vmatprep.subr.bf16.mxu1 %v10249_v41 }
 0x52b   :  { %7198 = vmatpush1.bf16.msra.mxu1 %v10252_v26 }
 0x52c   :  { %7200 = vmatprep.subr.bf16.mxu1 %v7199_v44  ;;  %v10284_v44 = vld [vmem:[#allocation46_spill] sm:$0xff] }
 0x52d   :  { %v10285_v57 = vand.u32 4294901760, %v10284_v44  ;;  %v2820_v44 = vld [vmem:[%s9854_s7 + $0xf0] sm:$0xff] }
 0x52e   :  { %3946 = vmatmul.mubr.f32.vlgmr.msra.gmra.mrb[4].mxu1 %v3468_v25  ;;  %v10280_v25 = vld [vmem:[#allocation43_spill] sm:$0xff] }
 0x52f   :  { %7202 = vmatpush1.bf16.msra.mxu1 %v7201_v21  ;;  %4112 = vmatprep.mubr.f32.mxu1 %v10104_v36  ;;  %v10281_v48 = vand.u32 4294901760, %v10280_v25  ;;  %v7221_v3 = vpack.c.bf16 %v10285_v57, %v10283_v60  ;;  %v10286_v21 = vld [vmem:[#allocation47_spill] sm:$0xff]  ;;  %v4285_v25 = vand.u32 4294901760, %v2818_v27 }
 0x530   :  { %7204 = vmatprep.subr.bf16.mxu1 %v7203_v30  ;;  %v10287_v17 = vand.u32 4294901760, %v10286_v21  ;;  %v10289_v30 = vand.u32 4294901760, %v10288_v12  ;;  %v2821_v57 = vld [vmem:[%s9854_s7 + $0xf8] sm:$0xff] }
 0x531   :  { %v7219_v22 = vpack.c.bf16 %v10281_v48, %v10279_v51  ;;  %v2819_v51 = vld [vmem:[%s9854_s7 + $0xe8] sm:$0xff]  ;;  %v4294_v21 = vand.u32 4294901760, %v2821_v57 }
 0x532   :  { %v7223_v46 = vpack.c.bf16 %v10289_v30, %v10287_v17  ;;  %v4288_v48 = vand.u32 4294901760, %v2819_v51 }
 0x533   :  { %7206 = vmatpush1.bf16.msra.mxu1 %v7205_v40  ;;  %v10291_v40 = vand.u32 4294901760, %v10290_v45 }
 0x534   :  { %7208 = vmatprep.subr.bf16.mxu1 %v7207_v54  ;;  %v9401_v60 = vpack.c.bf16 %v4288_v48, %v4285_v25 }
 0x535   :  { %v7225_v54 = vpack.c.bf16 %v10293_v1, %v10291_v40 }
 0x536   :  { %10302 = vst [vmem:[#allocation44_spill] sm:$0xff] %v9401_v60 }
 0x537   :  { %7210 = vmatpush1.bf16.msra.mxu1 %v7209_v33  ;;  %v10296_v33 = vld [vmem:[#allocation52_spill] sm:$0xff] }
 0x538   :  { %7212 = vmatprep.subr.bf16.mxu1 %v7211_v61  ;;  %v10297_v34 = vand.u32 4294901760, %v10296_v33  ;;  %v10299_v61 = vld [vmem:[#allocation53_spill] sm:$0xff] }
 0x539   :  { %v10300_v50 = vand.u32 4294901760, %v10299_v61 }
 0x53a   :  { %v7227_v0 = vpack.c.bf16 %v10297_v34, %v10295_v24 }
 0x53b   :  { %7214 = vmatpush1.bf16.msra.mxu1 %v7213_v14  ;;  %v7229_v4 = vpack.c.bf16 %v10300_v50, %v10298_v56 }
 0x53c   :  { %7216 = vmatprep.subr.bf16.mxu1 %v7215_v59  ;;  %v9377_v59 = vpack.c.bf16 %v4276_v19, %v4273_v35 }
 0x53f   :  { %7218 = vmatpush1.bf16.msra.mxu1 %v7217_v31  ;;  %v9387_v31 = vpack.c.bf16 %v4282_v49, %v4279_v55 }
 0x540   :  { %7220 = vmatprep.subr.bf16.mxu1 %v7219_v22 }
 0x543   :  { %7222 = vmatpush1.bf16.msra.mxu1 %v7221_v3  ;;  %v4291_v3 = vand.u32 4294901760, %v2820_v44 }
 0x544   :  { %7224 = vmatprep.subr.bf16.mxu1 %v7223_v46 }
 0x545   :  { %v9417_v45 = vpack.c.bf16 %v4294_v21, %v4291_v3 }
 0x547   :  { %7226 = vmatpush1.bf16.msra.mxu1 %v7225_v54  ;;  %10303 = vst [vmem:[#allocation19_spill] sm:$0xff] %v9417_v45 }
 0x548   :  { %7228 = vmatprep.subr.bf16.mxu1 %v7227_v0 }
 0x54b   :  { %7230 = vmatpush1.bf16.msra.mxu1 %v7229_v4 }
 0x54c   :  { %7232 = vmatprep.subr.bf16.mxu1 %v10235_v6  ;;  %v2807_v6 = vld [vmem:[%s9854_s7 + $0x88] sm:$0xff] }
 0x54e   :  { %4114 = vmatmul.mubr.f32.vlgmr.msra.gmra.mrb[4].mxu1 %v9212_v53 }
 0x54f   :  { %7234 = vmatpush1.bf16.msra.mxu1 %v10236_v38  ;;  %4216 = vmatprep.mubr.f32.mxu1 %v10104_v36  ;;  %v4249_v38 = vand.u32 4294901760, %v2806_v20 }
 0x550   :  { %7236 = vmatprep.subr.bf16.mxu1 %v10237_v52  ;;  %v4252_v52 = vand.u32 4294901760, %v2807_v6 }
 0x551   :  { %v9397_v22 = vsub.f32 %v2806_v20, %v4249_v38 }
 0x552   :  { %v9399_v5 = vsub.f32 %v2807_v6, %v4252_v52 }
 0x553   :  { %7238 = vmatpush1.bf16.msra.mxu1 %v10238_v2  ;;  %v9337_v2 = vpack.c.bf16 %v4252_v52, %v4249_v38  ;;  %v10061_v17 = vand.u32 4294901760, %v9397_v22 }
 0x554   :  { %7240 = vmatprep.subr.bf16.mxu1 %v10239_v11  ;;  %v2808_v11 = vld [vmem:[%s9854_s7 + $0x90] sm:$0xff]  ;;  %v10060_v12 = vand.u32 4294901760, %v9399_v5 }
 0x555   :  { %7265 = vmatpush3.bf16.msra.mxu0 %v9337_v2  ;;  %v4343_v40 = vsub.f32 %v9397_v22, %v10061_v17 }
 0x556   :  { %v4350_v39 = vsub.f32 %v9399_v5, %v10060_v12 }
 0x557   :  { %7242 = vmatpush1.bf16.msra.mxu1 %v10240_v16  ;;  %v4255_v16 = vand.u32 4294901760, %v2808_v11  ;;  %v4344_v1 = vand.u32 4294901760, %v4343_v40  ;;  %v9467_v40 = vsub.f32 %v2819_v51, %v4288_v48 }
 0x558   :  { %7244 = vmatprep.subr.bf16.mxu1 %v10241_v42  ;;  %v4351_v54 = vand.u32 4294901760, %v4350_v39  ;;  %v9469_v39 = vsub.f32 %v2820_v44, %v4291_v3 }
 0x559   :  { %v9413_v30 = vsub.f32 %v2808_v11, %v4255_v16 }
 0x55a   :  { %v9433_v0 = vpack.c.bf16 %v4351_v54, %v4344_v1  ;;  %v9471_v1 = vsub.f32 %v2821_v57, %v4294_v21 }
 0x55b   :  { %7246 = vmatpush1.bf16.msra.mxu1 %v10242_v18  ;;  %v10301_v18 = vmov 0.0|0.0   ;;  %v10059_v23 = vand.u32 4294901760, %v9413_v30 }
 0x55c   :  { %7248 = vmatprep.subr.bf16.mxu1 %v10243_v7  ;;  %7266 = vmatprep.subr.bf16.mxu0 %v10301_v18 }
 0x55d   :  { %v4357_v56 = vsub.f32 %v9413_v30, %v10059_v23 }
 0x55f   :  { %7250 = vmatpush1.bf16.msra.mxu1 %v10244_v37  ;;  %v2810_v37 = vld [vmem:[%s9854_s7 + $0xa0] sm:$0xff]  ;;  %v4358_v50 = vand.u32 4294901760, %v4357_v56 }
 0x560   :  { %7252 = vmatprep.subr.bf16.mxu1 %v10245_v58  ;;  %v2811_v58 = vld [vmem:[%s9854_s7 + $0xa8] sm:$0xff] }
 0x563   :  { %7254 = vmatpush1.bf16.msra.mxu1 %v10246_v63  ;;  %v4261_v63 = vand.u32 4294901760, %v2810_v37 }
 0x564   :  { %7256 = vmatprep.subr.bf16.mxu1 %v10247_v13  ;;  %v4264_v13 = vand.u32 4294901760, %v2811_v58 }
 0x565   :  { %v9429_v33 = vsub.f32 %v2810_v37, %v4261_v63 }
 0x566   :  { %v9431_v34 = vsub.f32 %v2811_v58, %v4264_v13 }
 0x567   :  { %7258 = vmatpush1.bf16.msra.mxu1 %v10248_v32  ;;  %v9357_v32 = vpack.c.bf16 %v4264_v13, %v4261_v63  ;;  %v10057_v20 = vand.u32 4294901760, %v9429_v33  ;;  %v9457_v13 = vsub.f32 %v2814_v47, %v4273_v35 }
 0x568   :  { %7260 = vmatprep.subr.bf16.mxu1 %v10249_v41  ;;  %v2812_v41 = vld [vmem:[%s9854_s7 + $0xb0] sm:$0xff]  ;;  %v10056_v6 = vand.u32 4294901760, %v9431_v34 }
 0x569   :  { %v4267_v10 = vand.u32 4294901760, %v2812_v41  ;;  %v10053_v35 = vand.u32 4294901760, %v9457_v13 }
 0x56b   :  { %7262 = vmatpush1.bf16.msra.mxu1 %v10252_v26  ;;  %v2813_v26 = vld [vmem:[%s9854_s7 + $0xb8] sm:$0xff]  ;;  %v9443_v38 = vsub.f32 %v2812_v41, %v4267_v10  ;;  %v9459_v41 = vsub.f32 %v2815_v8, %v4276_v19 }
 0x56c   :  { %v4270_v62 = vand.u32 4294901760, %v2813_v26 }
 0x56d   :  { %v10055_v58 = vand.u32 4294901760, %v9443_v38  ;;  %v10052_v19 = vand.u32 4294901760, %v9459_v41 }
 0x56e   :  { %4218 = vmatmul.mubr.f32.vlgmr.msra.gmra.mrb[4].mxu1 %v9212_v53  ;;  %v2809_v53 = vld [vmem:[%s9854_s7 + $0x98] sm:$0xff]  ;;  %v9367_v14 = vpack.c.bf16 %v4270_v62, %v4267_v10  ;;  %v9445_v52 = vsub.f32 %v2813_v26, %v4270_v62  ;;  %v9461_v26 = vsub.f32 %v2816_v43, %v4279_v55  ;;  %v9463_v10 = vsub.f32 %v2817_v28, %v4282_v49 }
 0x56f   :  { %v4258_v42 = vand.u32 4294901760, %v2809_v53  ;;  %v9465_v62 = vsub.f32 %v2818_v27, %v4285_v25  ;;  %v4385_v47 = vsub.f32 %v9443_v38, %v10055_v58  ;;  %v4399_v55 = vsub.f32 %v9457_v13, %v10053_v35 }
 0x570   :  { %v10054_v63 = vand.u32 4294901760, %v9445_v52  ;;  %v4406_v49 = vsub.f32 %v9459_v41, %v10052_v19  ;;  %v10051_v48 = vand.u32 4294901760, %v9461_v26  ;;  %v10050_v44 = vand.u32 4294901760, %v9463_v10 }
 0x571   :  { %v9347_v7 = vpack.c.bf16 %v4258_v42, %v4255_v16  ;;  %v9415_v46 = vsub.f32 %v2809_v53, %v4258_v42  ;;  %v4371_v53 = vsub.f32 %v9429_v33, %v10057_v20  ;;  %v4378_v16 = vsub.f32 %v9431_v34, %v10056_v6  ;;  %v2772_v6 = vld [vmem:[#allocation7 + $0x70] sm:$0xff]  ;;  %v2773_v20 = vld [vmem:[#allocation7 + $0x78] sm:$0xff] }
 0x572   :  { %v4392_v8 = vsub.f32 %v9445_v52, %v10054_v63  ;;  %v4386_v43 = vand.u32 4294901760, %v4385_v47  ;;  %v4400_v51 = vand.u32 4294901760, %v4399_v55  ;;  %v4407_v25 = vand.u32 4294901760, %v4406_v49 }
 0x573   :  { %7268 = vmatpush3.bf16.msra.mxu0 %v9347_v7  ;;  %v10058_v24 = vand.u32 4294901760, %v9415_v46  ;;  %v4372_v42 = vand.u32 4294901760, %v4371_v53  ;;  %v4379_v37 = vand.u32 4294901760, %v4378_v16  ;;  %v4413_v3 = vsub.f32 %v9461_v26, %v10051_v48 }
 0x574   :  { %7269 = vmatprep.subr.bf16.mxu0 %v10301_v18  ;;  %v4393_v28 = vand.u32 4294901760, %v4392_v8  ;;  %v9493_v57 = vpack.c.bf16 %v4407_v25, %v4400_v51  ;;  %v4420_v21 = vsub.f32 %v9463_v10, %v10050_v44  ;;  %v10047_v8 = vand.u32 4294901760, %v9469_v39  ;;  %v7574_v44 = vld [vmem:[%s9849_s2 + $0x8] sm:$0xff] }
 0x575   :  { %v4364_v61 = vsub.f32 %v9415_v46, %v10058_v24  ;;  %v9473_v54 = vpack.c.bf16 %v4379_v37, %v4372_v42  ;;  %v4414_v56 = vand.u32 4294901760, %v4413_v3  ;;  %v4893_v48 = vsel %vm168_vm1, %v7574_v44, 0 }
 0x576   :  { %v9489_v27 = vpack.c.bf16 %v4393_v28, %v4386_v43  ;;  %v10046_v43 = vand.u32 4294901760, %v9471_v1  ;;  %v4441_v55 = vsub.f32 %v9469_v39, %v10047_v8  ;;  %v7573_v8 = vld [vmem:[%s9849_s2] sm:$0xff]  ;;  %v9551_v35 = vand.u32 4294901760, %v4893_v48 }
 0x577   :  { %7271 = vmatpush3.bf16.msra.mxu0 %v9357_v32  ;;  %v4365_v4 = vand.u32 4294901760, %v4364_v61  ;;  %v10049_v61 = vand.u32 4294901760, %v9465_v62  ;;  %v4908_v24 = vand.u32 4294901760, %v2772_v6  ;;  %v4911_v23 = vand.u32 4294901760, %v2773_v20 }
 0x578   :  { %7272 = vmatprep.subr.bf16.mxu0 %v10301_v18  ;;  %v4448_v49 = vsub.f32 %v9471_v1, %v10046_v43  ;;  %v4442_v51 = vand.u32 4294901760, %v4441_v55  ;;  %v9562_v12 = vsub.f32 %v4893_v48, %v9551_v35 }
 0x579   :  { %v9447_v11 = vpack.c.bf16 %v4365_v4, %v4358_v50  ;;  %v10048_v50 = vand.u32 4294901760, %v9467_v40  ;;  %v4421_v4 = vand.u32 4294901760, %v4420_v21  ;;  %v4427_v53 = vsub.f32 %v9465_v62, %v10049_v61 }
 0x57a   :  { %v4449_v25 = vand.u32 4294901760, %v4448_v49  ;;  %v2770_v49 = vld [vmem:[#allocation7 + $0x60] sm:$0xff]  ;;  %v9576_v17 = vpack.c.bf16 %v4911_v23, %v4908_v24  ;;  %v10068_v55 = vand.u32 4294901760, %v9562_v12 }
 0x57b   :  { %7274 = vmatpush3.bf16.msra.mxu0 %v9367_v14  ;;  %v4434_v16 = vsub.f32 %v9467_v40, %v10048_v50  ;;  %v9509_v42 = vpack.c.bf16 %v4421_v4, %v4414_v56  ;;  %v4428_v37 = vand.u32 4294901760, %v4427_v53  ;;  %v4890_v50 = vsel %vm168_vm1, %v7573_v8, 0 }
 0x57c   :  { %7275 = vmatprep.subr.bf16.mxu0 %v10301_v18  ;;  %v9521_v3 = vpack.c.bf16 %v4449_v25, %v4442_v51  ;;  %v2771_v51 = vld [vmem:[#allocation7 + $0x68] sm:$0xff]  ;;  %v4902_v25 = vand.u32 4294901760, %v2770_v49  ;;  %v9543_v61 = vand.u32 4294901760, %v4890_v50  ;;  %v4983_v4 = vsub.f32 %v9562_v12, %v10068_v55 }
 0x57d   :  { %v4435_v47 = vand.u32 4294901760, %v4434_v16  ;;  %v4905_v43 = vand.u32 4294901760, %v2771_v51 }
 0x57e   :  { %v9553_v63 = vsub.f32 %v2770_v49, %v4902_v25  ;;  %v9558_v8 = vsub.f32 %v4890_v50, %v9543_v61  ;;  %v7575_v50 = vld [vmem:[%s9849_s2 + $0x10] sm:$0xff] }
 0x57f   :  { %7277 = vmatpush3.bf16.msra.mxu0 %v9377_v59  ;;  %v9513_v28 = vpack.c.bf16 %v4435_v47, %v4428_v37  ;;  %v9549_v19 = vpack.c.bf16 %v4905_v43, %v4902_v25  ;;  %v9555_v58 = vsub.f32 %v2771_v51, %v4905_v43  ;;  %v4896_v51 = vsel %vm168_vm1, %v7575_v50, 0  ;;  %v7576_v25 = vld [vmem:[%s9849_s2 + $0x18] sm:$0xff] }
 0x580   :  { %7278 = vmatprep.subr.bf16.mxu0 %v10301_v18  ;;  %v10062_v44 = vand.u32 4294901760, %v9553_v63  ;;  %v10063_v49 = vand.u32 4294901760, %v9558_v8  ;;  %v4899_v48 = vsel %vm168_vm1, %v7576_v25, 0  ;;  %v9582_v37 = vand.u32 4294901760, %v4896_v51 }
 0x581   :  { %7408 = vmatprep.subr.bf16.mxu1 %v9549_v19  ;;  %v10064_v43 = vand.u32 4294901760, %v9555_v58  ;;  %v9590_v53 = vand.u32 4294901760, %v4899_v48  ;;  %v9592_v25 = vsub.f32 %v2772_v6, %v4908_v24  ;;  %v4984_v6 = vand.u32 4294901760, %v4983_v4 }
 0x582   :  { %7410 = vmatpush3.bf16.msra.mxu1 %v9549_v19  ;;  %v5014_v47 = vsub.f32 %v9553_v63, %v10062_v44  ;;  %v4973_v50 = vsub.f32 %v9558_v8, %v10063_v49  ;;  %v9599_v21 = vsub.f32 %v4896_v51, %v9582_v37  ;;  %v9601_v44 = vsub.f32 %v2773_v20, %v4911_v23 }
 0x583   :  { %7280 = vmatpush3.bf16.msra.mxu0 %v9387_v31  ;;  %v5021_v16 = vsub.f32 %v9555_v58, %v10064_v43  ;;  %7412 = vmatprep.subr.bf16.mxu1 %v9576_v17  ;;  %v9605_v9 = vsub.f32 %v4899_v48, %v9590_v53  ;;  %v10071_v24 = vand.u32 4294901760, %v9592_v25 }
 0x584   :  { %7281 = vmatprep.subr.bf16.mxu0 %v10301_v18  ;;  %v5015_v56 = vand.u32 4294901760, %v5014_v47  ;;  %v4974_v49 = vand.u32 4294901760, %v4973_v50  ;;  %v5034_v55 = vand.u32 4294901760, %v9601_v44 }
 0x585   :  { %v5022_v43 = vand.u32 4294901760, %v5021_v16  ;;  %v5002_v51 = vand.u32 4294901760, %v9605_v9  ;;  %v5028_v23 = vsub.f32 %v9592_v25, %v10071_v24 }
 0x586   :  { %7414 = vmatpush3.bf16.msra.mxu1 %v9576_v17  ;;  %6539 = vmatprep.mubr.f32.mxu1 %v4974_v49  ;;  %v5035_v16 = vsub.f32 %v9601_v44, %v5034_v55 }
 0x587   :  { %7283 = vmatpush3.bf16.msra.mxu0 %v9401_v60  ;;  %v7415_v47 = vpack.c.bf16 %v5022_v43, %v5015_v56  ;;  %v5003_v4 = vsub.f32 %v9605_v9, %v5002_v51  ;;  %v5029_v48 = vand.u32 4294901760, %v5028_v23  ;;  %v7423_v43 = vpack.c.bf16 %v9555_v58, %v9553_v63  ;;  %v10305_v23 = vld [vmem:[#allocation17_spill] sm:$0xff] }
 0x588   :  { %7284 = vmatprep.subr.bf16.mxu0 %v10301_v18  ;;  %v5036_v60 = vand.u32 4294901760, %v5035_v16 }
 0x589   :  { %6540 = vmatmul.mubr.f32.vlgmr.msra.gmra.mrb[6].mxu1 %v4984_v6  ;;  %7416 = vmatprep.subr.bf16.mxu1 %v7415_v47  ;;  %v5004_v49 = vand.u32 4294901760, %v5003_v4  ;;  %v10304_v6 = vsub.s32 5, %v10232_v15 }
 0x58a   :  { %7418 = vmatpush3.bf16.msra.mxu1 %v7415_v47  ;;  %v7419_v56 = vpack.c.bf16 %v5036_v60, %v5029_v48  ;;  %v3354_v47 = vrot.slane %v9208_v29, %v10305_v23  ;;  %v7427_v60 = vpack.c.bf16 %v9601_v44, %v9592_v25 }
 0x58b   :  { %7286 = vmatpush3.bf16.msra.mxu0 %v9417_v45  ;;  %v4992_v45 = vand.u32 4294901760, %v9599_v21  ;;  %v3358_v24 = vrot.slane %v9208_v29, %v10304_v6 }
 0x58c   :  { %7287 = vmatprep.subr.bf16.mxu0 %v10301_v18  ;;  %7420 = vmatprep.subr.bf16.mxu1 %v7419_v56  ;;  %v3364_v16 = vrot.slane %v3354_v47, %v10305_v23  ;;  %v10306_v47 = vand.u32 4294901760, %v9553_v63  ;;  %v10311_v63 = vand.u32 4294901760, %v9592_v25 }
 0x58d   :  { %v4993_v20 = vsub.f32 %v9599_v21, %v4992_v45 }
 0x58e   :  { %7422 = vmatpush3.bf16.msra.mxu1 %v7419_v56 }
 0x58f   :  { %v4994_v50 = vand.u32 4294901760, %v4993_v20  ;;  %7424 = vmatprep.subr.bf16.mxu1 %v7423_v43  ;;  %v3368_v20 = vrot.slane %v3358_v24, %v10305_v23 }
 0x591   :  { %6542 = vmatprep.mubr.f32.mxu1 %v4994_v50 }
 0x592   :  { %6543 = vmatmul.mubr.f32.gmra.mrb[8].mxu1 %v5004_v49 }
 0x593   :  { %6553 = vmatprep.mubr.f32.mxu1 %v9543_v61 }
 0x596   :  { %6554 = vmatmul.mubr.f32.vlgmr.msra.gmra.mrb[6].mxu1 %v9551_v35 }
 0x597   :  { %7426 = vmatpush3.bf16.msra.mxu1 %v7423_v43  ;;  %6556 = vmatprep.mubr.f32.mxu1 %v9582_v37 }
 0x598   :  { %7428 = vmatprep.subr.bf16.mxu1 %v7427_v60 }
 0x59a   :  { %6557 = vmatmul.mubr.f32.gmra.mrb[8].mxu1 %v9590_v53 }
 0x59b   :  { %7430 = vmatpush3.bf16.msra.mxu1 %v7427_v60  ;;  %6567 = vmatprep.mubr.f32.mxu1 %v9558_v8  ;;  %v10307_v60 = vand.u32 4294901760, %v9555_v58  ;;  %v7443_v58 = vpack.c.bf16 %v5034_v55, %v10311_v63 }
 0x59c   :  { %7432 = vmatprep.subr.bf16.mxu1 %v9549_v19 }
 0x59e   :  { %6568 = vmatmul.mubr.f32.vlgmr.msra.gmra.mrb[6].mxu1 %v9562_v12 }
 0x59f   :  { %7434 = vmatpush3.bf16.msra.mxu1 %v9549_v19  ;;  %6570 = vmatprep.mubr.f32.mxu1 %v9599_v21  ;;  %v10309_v21 = vld [vmem:[#allocation18_spill] sm:$0xff] }
 0x5a0   :  { %7436 = vmatprep.subr.bf16.mxu1 %v9576_v17 }
 0x5a2   :  { %6571 = vmatmul.mubr.f32.gmra.mrb[8].mxu1 %v9605_v9  ;;  %v10310_v9 = vand.u32 4294901760, %v9562_v12 }
 0x5a3   :  { %7438 = vmatpush3.bf16.msra.mxu1 %v9576_v17 }
 0x641   :  { %v4219_v4 = vpop.f32.mrb[4].mxu1 }
 0x642   :  { %v4221_v48 = vpop.f32.mrb[5].mxu1  ;;  %v7460_v49 = vadd.f32 %v4219_v4, %v3364_v16 }
 0x643   :  { %v7461_v50 = vadd.f32 %v4221_v48, %v3368_v20  ;;  %v7439_v20 = vpack.c.bf16 %v10307_v60, %v10306_v47  ;;  %v10308_v48 = vand.u32 4294901760, %v9558_v8 }
 0x644   :  { %v4230_v56 = vmul.f32 %v7460_v49, %v7460_v49 }
 0x645   :  { %v4224_v44 = vand.u32 2147483647, %v7461_v50  ;;  %6581 = vmatprep.mubr.f32.mxu1 %v10308_v48  ;;  %7440 = vmatprep.subr.bf16.mxu1 %v7439_v20  ;;  %v1563_v50 = vsel %vm1562_vm3, %v10309_v21, 0.0 }
 0x646   :  { %6582 = vmatmul.mubr.f32.vlgmr.msra.gmra.mrb[6].mxu1 %v10310_v9 }
 0x647   :  { %v4225_v24 = vsub.f32 0.0, %v4224_v44  ;;  %7442 = vmatpush3.bf16.msra.mxu1 %v7439_v20  ;;  %6584 = vmatprep.mubr.f32.mxu1 %v4992_v45  ;;  %v1564_v44 = vrot.slane %v1563_v50, 4 }
 0x648   :  { %7444 = vmatprep.subr.bf16.mxu1 %v7443_v58 }
 0x649   :  { %v4226_v43 = vmul.f32 0.5, %v4225_v24  ;;  %v4229_v6 = vadd.f32 1.0, %v4225_v24  ;;  %v1565_v8 = vadd.f32 %v1564_v44, %v1563_v50  ;;  %v5564_v24 = vld [vmem:[%s9851_s4 + $0x2] sm:$0x3]  ;;  %v10322_v44 = vand.u32 4294901760, %v9397_v22 }
 0x64a   :  { %6585 = vmatmul.mubr.f32.gmra.mrb[8].mxu1 %v5002_v51 }
 0x64b   :  { %v4227_v16 = vmul.f32 1.442695, %v4226_v43  ;;  %v4231_v4 = vsub.f32 %v4229_v6, %v4230_v56  ;;  %7446 = vmatpush3.bf16.msra.mxu1 %v7443_v58  ;;  %6595 = vmatprep.mubr.f32.mxu1 %v9543_v61  ;;  %v1566_v25 = vrot.slane %v1565_v8, 2  ;;  %v10321_v58 = vld [vmem:[#allocation19_spill] sm:$0xff] }
 0x64c   :  { %7448 = vmatprep.subr.bf16.mxu1 %v9549_v19 }
 0x64d   :  { %7568 = vpow2.f32 %v4227_v16 }
 0x64e   :  { %6596 = vmatmul.mubr.f32.vlgmr.msra.gmra.mrb[6].mxu1 %v9551_v35 }
 0x64f   :  { %7450 = vmatpush3.bf16.msra.mxu1 %v9549_v19  ;;  %6598 = vmatprep.mubr.f32.mxu1 %v9582_v37  ;;  %v1567_v19 = vadd.f32 %v1566_v25, %v1565_v8  ;;  %v10323_v8 = vand.u32 4294901760, %v9399_v5 }
 0x650   :  { %7452 = vmatprep.subr.bf16.mxu1 %v9576_v17 }
 0x651   :  { %v1568_v16 = vrot.slane %v1567_v19, 1 }
 0x652   :  { %6599 = vmatmul.mubr.f32.gmra.mrb[8].mxu1 %v9590_v53 }
 0x653   :  { %7454 = vmatpush3.bf16.msra.mxu1 %v9576_v17  ;;  %6609 = vmatprep.mubr.f32.mxu1 %v9543_v61  ;;  %v1569_v21 = vadd.f32 %v1568_v16, %v1567_v19 }
 0x656   :  { %6610 = vmatmul.mubr.f32.vlgmr.msra.gmra.mrb[6].mxu1 %v9551_v35  ;;  %v1570_v35 = vmul.f32 -0.25, %v1569_v21 }
 0x657   :  { %v7569_v12 = vpop.eup %7568  ;;  %6612 = vmatprep.mubr.f32.mxu1 %v9582_v37 }
 0x658   :  { %v4232_v45 = vmul.f32 %v7569_v12, %v7569_v12  ;;  %v4242_v55 = vmul.f32 %v7569_v12, %v5564_v24  ;;  %v7360_v24 = vpack.c.bf16 %v10323_v8, %v10322_v44  ;;  %v10324_v12 = vand.u32 4294901760, %v9413_v30 }
 0x65a   :  { %v4233_v51 = vsub.f32 %v4231_v4, %v4232_v45  ;;  %v4243_v56 = vadd.f32 %v7460_v49, %v4242_v55  ;;  %6613 = vmatmul.mubr.f32.gmra.mrb[8].mxu1 %v9590_v53  ;;  %v10320_v53 = vld [vmem:[#allocation44_spill] sm:$0xff]  ;;  %v10325_v45 = vand.u32 4294901760, %v9415_v46 }
 0x65c   :  { %v4234_v43 = vsel %vm1562_vm3, %v4233_v51, 0.0  ;;  %v9665_v6 = vand.u32 4294901760, %v4243_v56  ;;  %v7363_v55 = vpack.c.bf16 %v10325_v45, %v10324_v12  ;;  %v10328_v51 = vand.u32 4294901760, %v9443_v38 }
 0x65d   :  { %v4235_v47 = vrot.slane %v4234_v43, 4 }
 0x65e   :  { %v9668_v60 = vsub.f32 %v4243_v56, %v9665_v6  ;;  %v10330_v56 = vand.u32 4294901760, %v9457_v13 }
 0x65f   :  { %v4236_v20 = vadd.f32 %v4235_v47, %v4234_v43  ;;  %v10331_v43 = vand.u32 4294901760, %v9459_v41 }
 0x660   :  { %v4331_v49 = vand.u32 4294901760, %v9668_v60 }
 0x661   :  { %v4237_v17 = vrot.slane %v4236_v20, 2  ;;  %v7372_v19 = vpack.c.bf16 %v10331_v43, %v10330_v56 }
 0x662   :  { %v4332_v61 = vsub.f32 %v9668_v60, %v4331_v49 }
 0x663   :  { %v4238_v4 = vadd.f32 %v4237_v17, %v4236_v20 }
 0x664   :  { %v4333_v48 = vand.u32 4294901760, %v4332_v61 }
 0x665   :  { %v4239_v50 = vrot.slane %v4238_v4, 1 }
 0x666   :  { %6354 = vmatmul.mubr.f32.vlgmr.msra.gmra.mrb[6].mxu0 %v4333_v48 }
 0x667   :  { %v4240_v9 = vadd.f32 %v4239_v50, %v4238_v4  ;;  %7289 = vmatpush3.bf16.msra.mxu0 %v9433_v0  ;;  %6388 = vmatprep.mubr.msk.f32.mxu0 %vm7727_vm0, %v10104_v36  ;;  %v10312_v0 = vpack.c.bf16 %v9399_v5, %v9397_v22  ;;  %v10326_v22 = vand.u32 4294901760, %v9429_v33  ;;  %v10327_v5 = vand.u32 4294901760, %v9431_v34 }
 0x668   :  { %7290 = vmatprep.subr.bf16.mxu0 %v10301_v18 }
 0x669   :  { %v4241_v37 = vmul.f32 -0.25, %v4240_v9  ;;  %v7366_v25 = vpack.c.bf16 %v10327_v5, %v10326_v22 }
 0x66b   :  { %v5535_v63 = vadd.f32 %v4241_v37, %v1570_v35  ;;  %7292 = vmatpush3.bf16.msra.mxu0 %v9447_v11  ;;  %v10313_v11 = vpack.c.bf16 %v9415_v46, %v9413_v30  ;;  %v10329_v30 = vand.u32 4294901760, %v9445_v52 }
 0x66c   :  { %7293 = vmatprep.subr.bf16.mxu0 %v10301_v18 }
 0x66d   :  { %5536 = vst [vmem:[%s9858_s11] sm:$0x1] %v5535_v63  ;;  %v7369_v46 = vpack.c.bf16 %v10329_v30, %v10328_v51  ;;  %s7729_s11 = smov [#allocation11]  }
 0x66e   :  { %s5542_s1 = sshll.u32 %s7729_s11, 4  ;;  %s5543_s1 = int_to_ptr.vmem [resolvable:$true] %s5542_s1 }
 0x66f   :  { %7295 = vmatpush3.bf16.msra.mxu0 %v9473_v54  ;;  %v10314_v54 = vpack.c.bf16 %v9431_v34, %v9429_v33  ;;  %v10332_v33 = vand.u32 4294901760, %v9461_v26  ;;  %v10333_v34 = vand.u32 4294901760, %v9463_v10  ;;  %s7687_s18 = scalar_lea.vmem %s5543_s1, 256  ;;  %p7692_p13 = scmp.lt.s32.totalorder %s5543_s1, %s5543_s1 }
 0x670   :  { %7296 = vmatprep.subr.bf16.mxu0 %v10301_v18  ;;  %p7688_p12 = scmp.ne.s32.totalorder %s5543_s1, %s7687_s18  ;;  %p7693_p0 = scmp.lt.s32.totalorder %s7687_s18, %s7687_s18 }
 0x671   :  { %v7375_v47 = vpack.c.bf16 %v10333_v34, %v10332_v33 }
 0x672   :  { %p7694_p1 = por %p7693_p0, %p7692_p13 }
 0x673   :  { %7298 = vmatpush3.bf16.msra.mxu0 %v9489_v27  ;;  %v10315_v27 = vpack.c.bf16 %v9445_v52, %v9443_v38  ;;  %v10334_v38 = vand.u32 4294901760, %v9465_v62  ;;  %v10335_v52 = vand.u32 4294901760, %v9467_v40 }
 0x674   :  { %7299 = vmatprep.subr.bf16.mxu0 %v10301_v18  ;;  %p7695_p2 = pnand %p7694_p1, %p7688_p12 }
 0x677   :  { %7301 = vmatpush3.bf16.msra.mxu0 %v9493_v57  ;;  %v10316_v57 = vpack.c.bf16 %v9459_v41, %v9457_v13  ;;  %v10336_v13 = vand.u32 4294901760, %v9469_v39  ;;  %v10337_v41 = vand.u32 4294901760, %v9471_v1 }
 0x678   :  { %7302 = vmatprep.subr.bf16.mxu0 %v10301_v18 }
 0x679   :  { %v7381_v20 = vpack.c.bf16 %v10337_v41, %v10336_v13 }
 0x67b   :  { %7304 = vmatpush3.bf16.msra.mxu0 %v9509_v42  ;;  %v10317_v42 = vpack.c.bf16 %v9463_v10, %v9461_v26 }
 0x67c   :  { %7305 = vmatprep.subr.bf16.mxu0 %v10301_v18 }
 0x67f   :  { %7307 = vmatpush3.bf16.msra.mxu0 %v9513_v28  ;;  %v10318_v28 = vpack.c.bf16 %v9467_v40, %v9465_v62 }
 0x680   :  { %7308 = vmatprep.subr.bf16.mxu0 %v10301_v18 }
 0x683   :  { %7310 = vmatpush3.bf16.msra.mxu0 %v9521_v3  ;;  %v10319_v3 = vpack.c.bf16 %v9471_v1, %v9469_v39 }
 0x684   :  { %7311 = vmatprep.subr.bf16.mxu0 %v10301_v18 }
 0x686   :  { %6389 = vmatmul.mubr.f32.vlgmr.msra.gmra.mrb[6].mxu0 %v9665_v6 }
 0x687   :  { %7313 = vmatpush3.bf16.msra.mxu0 %v10312_v0  ;;  %6423 = vmatprep.mubr.msk.f32.mxu0 %vm7727_vm0, %v10104_v36 }
 0x688   :  { %7314 = vmatprep.subr.bf16.mxu0 %v10301_v18 }
 0x68b   :  { %7316 = vmatpush3.bf16.msra.mxu0 %v10313_v11 }
 0x68c   :  { %7317 = vmatprep.subr.bf16.mxu0 %v10301_v18 }
 0x68f   :  { %7319 = vmatpush3.bf16.msra.mxu0 %v10314_v54 }
 0x690   :  { %7320 = vmatprep.subr.bf16.mxu0 %v10301_v18 }
 0x693   :  { %7322 = vmatpush3.bf16.msra.mxu0 %v10315_v27 }
 0x694   :  { %7323 = vmatprep.subr.bf16.mxu0 %v10301_v18 }
 0x697   :  { %7325 = vmatpush3.bf16.msra.mxu0 %v10316_v57 }
 0x698   :  { %7326 = vmatprep.subr.bf16.mxu0 %v10301_v18 }
 0x69b   :  { %7328 = vmatpush3.bf16.msra.mxu0 %v10317_v42 }
 0x69c   :  { %7329 = vmatprep.subr.bf16.mxu0 %v10301_v18 }
 0x69f   :  { %7331 = vmatpush3.bf16.msra.mxu0 %v10318_v28 }
 0x6a0   :  { %7332 = vmatprep.subr.bf16.mxu0 %v10301_v18 }
 0x6a3   :  { %7334 = vmatpush3.bf16.msra.mxu0 %v10319_v3 }
 0x6a4   :  { %7335 = vmatprep.subr.bf16.mxu0 %v10301_v18 }
 0x6a6   :  { %6424 = vmatmul.mubr.f32.vlgmr.msra.gmra.mrb[6].mxu0 %v9668_v60  ;;  %v7378_v60 = vpack.c.bf16 %v10335_v52, %v10334_v38 }
 0x6a7   :  { %7337 = vmatpush3.bf16.msra.mxu0 %v9337_v2  ;;  %6458 = vmatprep.mubr.msk.f32.mxu0 %vm7727_vm0, %v10104_v36 }
 0x6a8   :  { %7338 = vmatprep.subr.bf16.mxu0 %v10301_v18 }
 0x6ab   :  { %7340 = vmatpush3.bf16.msra.mxu0 %v9347_v7 }
 0x6ac   :  { %7341 = vmatprep.subr.bf16.mxu0 %v10301_v18 }
 0x6af   :  { %7343 = vmatpush3.bf16.msra.mxu0 %v9357_v32 }
 0x6b0   :  { %7344 = vmatprep.subr.bf16.mxu0 %v10301_v18 }
 0x6b3   :  { %7346 = vmatpush3.bf16.msra.mxu0 %v9367_v14 }
 0x6b4   :  { %7347 = vmatprep.subr.bf16.mxu0 %v10301_v18 }
 0x6b7   :  { %7349 = vmatpush3.bf16.msra.mxu0 %v9377_v59 }
 0x6b8   :  { %7350 = vmatprep.subr.bf16.mxu0 %v10301_v18 }
 0x6bb   :  { %7352 = vmatpush3.bf16.msra.mxu0 %v9387_v31 }
 0x6bc   :  { %7353 = vmatprep.subr.bf16.mxu0 %v10301_v18 }
 0x6bf   :  { %7355 = vmatpush3.bf16.msra.mxu0 %v10320_v53 }
 0x6c0   :  { %7356 = vmatprep.subr.bf16.mxu0 %v10301_v18 }
 0x6c3   :  { %7358 = vmatpush3.bf16.msra.mxu0 %v10321_v58 }
 0x6c4   :  { %7359 = vmatprep.subr.bf16.mxu0 %v10301_v18 }
 0x6c6   :  { %6459 = vmatmul.mubr.f32.vlgmr.msra.gmra.mrb[6].mxu0 %v4331_v49 }
 0x6c7   :  { %7361 = vmatpush3.bf16.msra.mxu0 %v7360_v24  ;;  %6493 = vmatprep.mubr.msk.f32.mxu0 %vm7727_vm0, %v10104_v36 }
 0x6c8   :  { %7362 = vmatprep.subr.bf16.mxu0 %v10301_v18 }
 0x6cb   :  { %7364 = vmatpush3.bf16.msra.mxu0 %v7363_v55 }
 0x6cc   :  { %7365 = vmatprep.subr.bf16.mxu0 %v10301_v18 }
 0x6cf   :  { %7367 = vmatpush3.bf16.msra.mxu0 %v7366_v25 }
 0x6d0   :  { %7368 = vmatprep.subr.bf16.mxu0 %v10301_v18 }
 0x6d3   :  { %7370 = vmatpush3.bf16.msra.mxu0 %v7369_v46 }
 0x6d4   :  { %7371 = vmatprep.subr.bf16.mxu0 %v10301_v18 }
 0x6d7   :  { %7373 = vmatpush3.bf16.msra.mxu0 %v7372_v19 }
 0x6d8   :  { %7374 = vmatprep.subr.bf16.mxu0 %v10301_v18 }
 0x6db   :  { %7376 = vmatpush3.bf16.msra.mxu0 %v7375_v47 }
 0x6dc   :  { %7377 = vmatprep.subr.bf16.mxu0 %v10301_v18 }
 0x6df   :  { %7379 = vmatpush3.bf16.msra.mxu0 %v7378_v60 }
 0x6e0   :  { %7380 = vmatprep.subr.bf16.mxu0 %v10301_v18 }
 0x6e3   :  { %7382 = vmatpush3.bf16.msra.mxu0 %v7381_v20 }
 0x6e4   :  { %7383 = vmatprep.subr.bf16.mxu0 %v10301_v18 }
 0x6e6   :  { %6494 = vmatmul.mubr.f32.vlgmr.msra.gmra.mrb[6].mxu0 %v9665_v6 }
 0x6e7   :  { %7385 = vmatpush3.bf16.msra.mxu0 %v9337_v2  ;;  %6528 = vmatprep.mubr.msk.f32.mxu0 %vm7727_vm0, %v10104_v36 }
 0x6e8   :  { %7386 = vmatprep.subr.bf16.mxu0 %v10301_v18 }
 0x6eb   :  { %7388 = vmatpush3.bf16.msra.mxu0 %v9347_v7 }
 0x6ec   :  { %7389 = vmatprep.subr.bf16.mxu0 %v10301_v18 }
 0x6ef   :  { %7391 = vmatpush3.bf16.msra.mxu0 %v9357_v32 }
 0x6f0   :  { %7392 = vmatprep.subr.bf16.mxu0 %v10301_v18 }
 0x6f3   :  { %7394 = vmatpush3.bf16.msra.mxu0 %v9367_v14 }
 0x6f4   :  { %7395 = vmatprep.subr.bf16.mxu0 %v10301_v18 }
 0x6f7   :  { %7397 = vmatpush3.bf16.msra.mxu0 %v9377_v59 }
 0x6f8   :  { %7398 = vmatprep.subr.bf16.mxu0 %v10301_v18 }
 0x6fb   :  { %7400 = vmatpush3.bf16.msra.mxu0 %v9387_v31 }
 0x6fc   :  { %7401 = vmatprep.subr.bf16.mxu0 %v10301_v18 }
 0x6ff   :  { %7403 = vmatpush3.bf16.msra.mxu0 %v10320_v53 }
 0x700   :  { %7404 = vmatprep.subr.bf16.mxu0 %v10301_v18 }
 0x703   :  { %7406 = vmatpush3.bf16.msra.mxu0 %v10321_v58 }
 0x706   :  { %6529 = vmatmul.mubr.f32.vlgmr.msra.gmra.mrb[6].mxu0 %v9665_v6 }
 0x729   :  { %v6611_v36 = vpop.f32.mrb[6].mxu1 }
 0x72a   :  { %v5493_v2 = vpop.f32.mrb[7].mxu1 }
 0x72d   :  { %v6614_v7 = vpop.f32.mrb[8].mxu1 }
 0x72e   :  { %v5505_v32 = vpop.f32.mrb[9].mxu1 }
 0x72f   :  { %7698 = shalt.err (!%p7695_p2)
}
 0x730   :  { %s7699_s26 = scalar_lea.hbm %s9856_s9, 256 }
 0x731   :  { %p7700_p3 = scmp.ne.s32.totalorder %s9856_s9, %s7699_s26  ;;  %p7703_p4 = scmp.lt.u32.totalorder %s7699_s26, %s9856_s9 }
 0x733   :  { %p7705_p5 = pnand %p7703_p4, %p7700_p3 }
 0x735   :  { %7708 = shalt.err (!%p7705_p5)
}
 0x736   :  { %5548 = dma.vmem_to_hbm [thread:$0]  %s5543_s1, 256, %s9856_s9, [#allocation4], %s7719_s29, %s7719_s29, %s7720_s30   ;;  %v10338_v18 = vsub.s32 2, %v10232_v15  ;;  %v10339_v10 = vld [vmem:[#allocation45_spill] sm:$0xff] }
 0x738   :  { %v4247_v14 = vrot.slane %v9208_v29, %v10338_v18 }
 0x7d9   :  { %v4885_v59 = vpop.f32.mrb[6].mxu0 }
 0x7da   :  { %v7462_v31 = vadd.f32 %v4885_v59, %v4247_v14  ;;  %v6530_v26 = vpop.f32.mrb[7].mxu0 }
 0x7dc   :  { %v5518_v62 = vrot.slane %v7462_v31, %v10339_v10  ;;  %v5528_v40 = vrot.slane %v7462_v31, %v10305_v23 }
 0x7de   :  { %v5519_v39 = vadd.f32 %v5518_v62, %v5493_v2  ;;  %v5520_v1 = vadd.f32 %v6611_v36, %v5518_v62  ;;  %v5529_v6 = vadd.f32 %v5528_v40, %v5505_v32  ;;  %v5530_v49 = vadd.f32 %v6614_v7, %v5528_v40 }
 0x7e0   :  { %v5521_v16 = vmax.f32 %v5519_v39, 0.0  ;;  %v5522_v17 = vmax.f32 %v5520_v1, 0.0  ;;  %v5531_v61 = vmax.f32 %v5529_v6, 0.0  ;;  %v5532_v4 = vmax.f32 %v5530_v49, 0.0 }
 0x7e2   :  { %5523 = vst [vmem:[%s9857_s10] sm:$0xff] %v5521_v16  ;;  %5524 = vst [vmem:[%s9857_s10 + $0x8] sm:$0xff] %v5522_v17 }
 0x7e3   :  { %5533 = vst [vmem:[%s9857_s10 + $0x10] sm:$0xff] %v5531_v61  ;;  %5534 = vst [vmem:[%s9857_s10 + $0x18] sm:$0xff] %v5532_v4 }
 0x7e4   :  { %7715 = dma.done.wait [#allocation4], 256  }
 0x7e5   :  { %7716 = vsyncadd [#allocation4], 4294967040 }
 0x7e6   :  { %5560 = vsyncpa [#allocation3], 1 }
 0x7e7   :  { %5561 = vsyncpa [#allocation6], 1 }
 0x7e8   :  { %5562 = vsyncpa [#allocation9], 1 }
 0x7e9   :  { %5563 = vsyncpa [#allocation4], 1 }

</bundles_post_ra>
